<compile_context>
chip_gen: v6e
topology: v6e:2x2x1
jax: 0.10.0
libtpu: 0.0.40
codegen_flags: <defaults>
</compile_context>

<pallas_src>
import functools

import jax
import jax.numpy as jnp
from jax import lax
from jax.experimental import pallas as pl
from jax.experimental.pallas import tpu as pltpu

H = 128  # hidden size (matches nn.LSTM(hidden_size=128))


def _lstm_kernel(x_ref,       # (T, Bp, 2)   raw input sequence
                 wih1_ref,    # (2, 4H)      layer-1 input weights, gates [i,f,o,g]
                 whh1_ref,    # (H, 4H)      layer-1 recurrent weights
                 b1_ref,      # (1, 4H)      layer-1 combined bias (b_ih + b_hh)
                 w2_ref,      # (2H, 4H)     stacked [W_ih2; W_hh2]
                 b2_ref,      # (1, 4H)      layer-2 combined bias
                 whead_ref,   # (H, Cp)      folded fc @ softmax-linear weights
                 bhead_ref,   # (1, Cp)      folded head bias
                 out_ref):    # (Bp, Cp)
    T, Bp, _ = x_ref.shape
    H4 = whh1_ref.shape[1]
    Hh = H4 // 4

    # ---- hoists: weight loads, bf16 casts, bias/row broadcasts (JAX does not
    # CSE broadcast_in_dim, so do these once, outside the recurrence) ----
    whh1_bf = whh1_ref[...].astype(jnp.bfloat16)                 # MXU operand
    w2_bf = w2_ref[...].astype(jnp.bfloat16)                     # MXU operand
    w_in0 = jnp.broadcast_to(wih1_ref[0:1, :], (Bp, H4))         # VPU FMA rows
    w_in1 = jnp.broadcast_to(wih1_ref[1:2, :], (Bp, H4))
    b1b = jnp.broadcast_to(b1_ref[...], (Bp, H4))
    b2b = jnp.broadcast_to(b2_ref[...], (Bp, H4))

    def gates(g):
        # gate order [i, f, o | g]: one contiguous sigmoid, one tanh
        s = jax.nn.sigmoid(g[:, :3 * Hh])
        i = s[:, 0 * Hh:1 * Hh]
        f = s[:, 1 * Hh:2 * Hh]
        o = s[:, 2 * Hh:3 * Hh]
        gg = jnp.tanh(g[:, 3 * Hh:])
        return i, f, o, gg

    def step(t, carry):
        h1, c1, h2, c2 = carry

        # ---- layer 1: K=2 input projection as broadcast FMAs + bf16 recurrent GEMM
        xt = x_ref[t]                           # (Bp, 2)
        x0 = xt[:, 0:1]                         # (Bp, 1) -> lane-broadcast
        x1 = xt[:, 1:2]
        g1 = (x0 * w_in0 + x1 * w_in1 + b1b
              + jnp.dot(h1.astype(jnp.bfloat16), whh1_bf,
                        preferred_element_type=jnp.float32))
        i1, f1, o1, gg1 = gates(g1)
        c1 = f1 * c1 + i1 * gg1
        h1 = o1 * jnp.tanh(c1)

        # ---- layer 2: fused (Bp, 2H) x (2H, 4H) GEMM, bf16 operands, f32 acc
        h12 = jnp.concatenate([h1.astype(jnp.bfloat16),
                               h2.astype(jnp.bfloat16)], axis=1)
        g2 = jnp.dot(h12, w2_bf, preferred_element_type=jnp.float32) + b2b
        i2, f2, o2, gg2 = gates(g2)
        c2 = f2 * c2 + i2 * gg2
        h2 = o2 * jnp.tanh(c2)

        return (h1, c1, h2, c2)

    z = jnp.zeros((Bp, Hh), jnp.float32)
    # Unroll so the scheduler can overlap layer-1(t+1) with layer-2(t).
    unroll = True if T <= 32 else 4
    _, _, h2, _ = lax.fori_loop(0, T, step, (z, z, z, z), unroll=unroll)

    # ---- folded head: single (Bp, H) x (H, Cp) GEMM on the last timestep ----
    out_ref[...] = (jnp.dot(h2, whead_ref[...], preferred_element_type=jnp.float32)
                    + bhead_ref[...])


def _round_up(x, m):
    return (x + m - 1) // m * m


def _permute_gates(w):
    """PyTorch LSTM gate order [i, f, g, o] -> kernel order [i, f, o, g]."""
    return jnp.concatenate([w[..., 0 * H:1 * H], w[..., 1 * H:2 * H],
                            w[..., 3 * H:4 * H], w[..., 2 * H:3 * H]], axis=-1)


@functools.partial(jax.jit, static_argnames=("classes",))
def lstm_forward(batch_x, params, classes):
    """batch_x: (B, 2, T) float32 — same layout as the PyTorch module's input."""
    B, C_in, T = batch_x.shape
    assert C_in == 2
    (wih1, whh1, b1, wih2, whh2, b2, wfc, bfc, wsm, bsm) = params

    Bp = _round_up(max(B, 8), 8)            # sublane-aligned batch
    Cp = _round_up(max(classes, 128), 128)  # lane-dense output

    # Gate permutation (done once, outside the kernel).
    wih1_p = _permute_gates(wih1)
    whh1_p = _permute_gates(whh1)
    b1_p = _permute_gates(b1)
    w2_p = _permute_gates(jnp.concatenate([wih2, whh2], axis=0))   # (2H, 4H)
    b2_p = _permute_gates(b2)

    # Fold fc -> output-linear (no nonlinearity between them), lane-pad classes.
    wsm_p = jnp.pad(wsm, ((0, 0), (0, Cp - classes)))
    bsm_p = jnp.pad(bsm, ((0, 0), (0, Cp - classes)))
    w_head = wfc @ wsm_p                       # (H, Cp)
    b_head = bfc @ wsm_p + bsm_p               # (1, Cp)

    # glue: (B, 2, T) -> (T, Bp, 2), zero-pad batch (raw sequence, no xp blow-up)
    x_tm = jnp.transpose(batch_x, (2, 0, 1)).astype(jnp.float32)
    x_tm = jnp.pad(x_tm, ((0, 0), (0, Bp - B), (0, 0)))

    out = pl.pallas_call(
        _lstm_kernel,
        out_shape=jax.ShapeDtypeStruct((Bp, Cp), jnp.float32),
        # No grid: problem is tiny and fully VMEM-resident; the time loop runs
        # inside the kernel with register-carried h/c state.
        in_specs=[pl.BlockSpec(memory_space=pltpu.MemorySpace.VMEM)] * 8,
        out_specs=pl.BlockSpec(memory_space=pltpu.MemorySpace.VMEM),
    )(x_tm, wih1_p, whh1_p, b1_p, w2_p, b2_p, w_head, b_head)

    return out[:B, :classes]


def init_params(key, classes):
    ks = jax.random.split(key, 10)
    s = 0.1
    wih1 = s * jax.random.normal(ks[0], (2, 4 * H), jnp.float32)
    whh1 = s * jax.random.normal(ks[1], (H, 4 * H), jnp.float32)
    b1 = s * jax.random.normal(ks[2], (1, 4 * H), jnp.float32)   # b_ih + b_hh combined
    wih2 = s * jax.random.normal(ks[3], (H, 4 * H), jnp.float32)
    whh2 = s * jax.random.normal(ks[4], (H, 4 * H), jnp.float32)
    b2 = s * jax.random.normal(ks[5], (1, 4 * H), jnp.float32)
    wfc = s * jax.random.normal(ks[6], (H, H), jnp.float32)
    bfc = s * jax.random.normal(ks[7], (1, H), jnp.float32)
    wsm = s * jax.random.normal(ks[8], (H, classes), jnp.float32)
    bsm = s * jax.random.normal(ks[9], (1, classes), jnp.float32)
    return (wih1, whh1, b1, wih2, whh2, b2, wfc, bfc, wsm, bsm)


def lstm_ref(batch_x, params):
    """Pure-JAX f32 reference matching nn.LSTM semantics (zero initial state)."""
    (wih1, whh1, b1, wih2, whh2, b2, wfc, bfc, wsm, bsm) = params
    B = batch_x.shape[0]
    x_tm = jnp.transpose(batch_x, (2, 0, 1))  # (T, B, 2)

    def make_cell(wih, whh, b):
        def step(carry, x_t):
            h, c = carry
            g = x_t @ wih + h @ whh + b
            i = jax.nn.sigmoid(g[:, 0 * H:1 * H])
            f = jax.nn.sigmoid(g[:, 1 * H:2 * H])
            gg = jnp.tanh(g[:, 2 * H:3 * H])
            o = jax.nn.sigmoid(g[:, 3 * H:4 * H])
            c = f * c + i * gg
            h = o * jnp.tanh(c)
            return (h, c), h
        return step

    zeros = (jnp.zeros((B, H), jnp.float32), jnp.zeros((B, H), jnp.float32))
    _, h1_seq = jax.lax.scan(make_cell(wih1, whh1, b1), zeros, x_tm)
    (h2, _), _ = jax.lax.scan(make_cell(wih2, whh2, b2), zeros, h1_seq)
    fc = h2 @ wfc + bfc
    return fc @ wsm + bsm


if __name__ == "__main__":
    B, T, CLASSES = 2, 8, 10
    key = jax.random.PRNGKey(0)
    k_x, k_p = jax.random.split(key)
    batch_x = jax.random.normal(k_x, (B, 2, T), jnp.float32)
    params = init_params(k_p, CLASSES)

    y = lstm_forward(batch_x, params, CLASSES)
    jax.block_until_ready(y)

    y_ref = lstm_ref(batch_x, params)
    assert y.shape == (B, CLASSES)
    # bf16 MXU operands in the recurrence => relaxed tolerance vs f32 reference
    assert jnp.allclose(y, y_ref, atol=3e-2, rtol=3e-2), (y, y_ref)
    print("KERNEL_OK")
</pallas_src>

<mosaic_0001>
module attributes {stable_mosaic.version = 11 : i64} {
  func.func @_lstm_kernel(%arg0: memref<8x8x2xf32, #tpu.memory_space<vmem>>, %arg1: memref<2x512xf32, #tpu.memory_space<vmem>>, %arg2: memref<128x512xf32, #tpu.memory_space<vmem>>, %arg3: memref<1x512xf32, #tpu.memory_space<vmem>>, %arg4: memref<256x512xf32, #tpu.memory_space<vmem>>, %arg5: memref<1x512xf32, #tpu.memory_space<vmem>>, %arg6: memref<128x128xf32, #tpu.memory_space<vmem>>, %arg7: memref<1x128xf32, #tpu.memory_space<vmem>>, %arg8: memref<8x128xf32, #tpu.memory_space<vmem>>) attributes {dimension_semantics = [], scalar_prefetch = 0 : i64, scratch_operands = 0 : i64, tpu.core_type = #tpu.core_type<tc>} {
    %c0 = arith.constant 0 : index
    %c0_0 = arith.constant 0 : index
    %0 = vector.load %arg2[%c0, %c0_0] : memref<128x512xf32, #tpu.memory_space<vmem>>, vector<128x512xf32>
    %1 = arith.truncf %0 : vector<128x512xf32> to vector<128x512xbf16>
    %c0_1 = arith.constant 0 : index
    %c0_2 = arith.constant 0 : index
    %2 = vector.load %arg4[%c0_1, %c0_2] : memref<256x512xf32, #tpu.memory_space<vmem>>, vector<256x512xf32>
    %3 = arith.truncf %2 : vector<256x512xf32> to vector<256x512xbf16>
    %c0_3 = arith.constant 0 : index
    %c0_4 = arith.constant 0 : index
    %4 = vector.load %arg1[%c0_3, %c0_4] : memref<2x512xf32, #tpu.memory_space<vmem>>, vector<1x512xf32>
    %5 = vector.shape_cast %4 : vector<1x512xf32> to vector<1x512xf32>
    %6 = vector.broadcast %5 : vector<1x512xf32> to vector<8x512xf32>
    %c1 = arith.constant 1 : index
    %c0_5 = arith.constant 0 : index
    %7 = vector.load %arg1[%c1, %c0_5] : memref<2x512xf32, #tpu.memory_space<vmem>>, vector<1x512xf32>
    %8 = vector.shape_cast %7 : vector<1x512xf32> to vector<1x512xf32>
    %9 = vector.broadcast %8 : vector<1x512xf32> to vector<8x512xf32>
    %c0_6 = arith.constant 0 : index
    %c0_7 = arith.constant 0 : index
    %10 = vector.load %arg3[%c0_6, %c0_7] : memref<1x512xf32, #tpu.memory_space<vmem>>, vector<1x512xf32>
    %11 = vector.shape_cast %10 : vector<1x512xf32> to vector<1x512xf32>
    %12 = vector.broadcast %11 : vector<1x512xf32> to vector<8x512xf32>
    %c0_8 = arith.constant 0 : index
    %c0_9 = arith.constant 0 : index
    %13 = vector.load %arg5[%c0_8, %c0_9] : memref<1x512xf32, #tpu.memory_space<vmem>>, vector<1x512xf32>
    %14 = vector.shape_cast %13 : vector<1x512xf32> to vector<1x512xf32>
    %15 = vector.broadcast %14 : vector<1x512xf32> to vector<8x512xf32>
    %cst = arith.constant 0.000000e+00 : f32
    %16 = vector.broadcast %cst : f32 to vector<8x128xf32>
    %c0_i32 = arith.constant 0 : i32
    %17 = arith.index_cast %c0_i32 : i32 to index
    %c0_10 = arith.constant 0 : index
    %c0_11 = arith.constant 0 : index
    %18 = vector.load %arg0[%17, %c0_10, %c0_11] : memref<8x8x2xf32, #tpu.memory_space<vmem>>, vector<1x8x2xf32>
    %19 = vector.shape_cast %18 : vector<1x8x2xf32> to vector<8x2xf32>
    %20 = vector.extract_strided_slice %19 {offsets = [0, 0], sizes = [8, 1], strides = [1, 1]} : vector<8x2xf32> to vector<8x1xf32>
    %21 = vector.extract_strided_slice %19 {offsets = [0, 1], sizes = [8, 1], strides = [1, 1]} : vector<8x2xf32> to vector<8x1xf32>
    %22 = vector.broadcast %20 : vector<8x1xf32> to vector<8x512xf32>
    %23 = arith.mulf %22, %6 : vector<8x512xf32>
    %24 = vector.broadcast %21 : vector<8x1xf32> to vector<8x512xf32>
    %25 = arith.mulf %24, %9 : vector<8x512xf32>
    %26 = arith.addf %23, %25 : vector<8x512xf32>
    %27 = arith.addf %26, %12 : vector<8x512xf32>
    %28 = arith.truncf %16 : vector<8x128xf32> to vector<8x128xbf16>
    %cst_12 = arith.constant dense<0.000000e+00> : vector<8x512xf32>
    %29 = tpu.matmul %28, %1, %cst_12 {dimension_numbers = #tpu.dot_dimension_numbers<[1], [0], [0], [1], [0, 0, 1, 1], [], []>} : vector<8x128xbf16>, vector<128x512xbf16>, vector<8x512xf32> -> vector<8x512xf32>
    %30 = arith.addf %27, %29 : vector<8x512xf32>
    %31 = vector.extract_strided_slice %30 {offsets = [0, 0], sizes = [8, 384], strides = [1, 1]} : vector<8x512xf32> to vector<8x384xf32>
    %32 = arith.negf %31 : vector<8x384xf32>
    %33 = math.exp %32 : vector<8x384xf32>
    %cst_13 = arith.constant 1.000000e+00 : f32
    %34 = vector.broadcast %cst_13 : f32 to vector<8x384xf32>
    %35 = arith.addf %34, %33 : vector<8x384xf32>
    %36 = arith.divf %34, %35 : vector<8x384xf32>
    %37 = vector.extract_strided_slice %36 {offsets = [0, 0], sizes = [8, 128], strides = [1, 1]} : vector<8x384xf32> to vector<8x128xf32>
    %38 = vector.extract_strided_slice %36 {offsets = [0, 128], sizes = [8, 128], strides = [1, 1]} : vector<8x384xf32> to vector<8x128xf32>
    %39 = vector.extract_strided_slice %36 {offsets = [0, 256], sizes = [8, 128], strides = [1, 1]} : vector<8x384xf32> to vector<8x128xf32>
    %40 = vector.extract_strided_slice %30 {offsets = [0, 384], sizes = [8, 128], strides = [1, 1]} : vector<8x512xf32> to vector<8x128xf32>
    %41 = math.tanh %40 : vector<8x128xf32>
    %42 = arith.mulf %38, %16 : vector<8x128xf32>
    %43 = arith.mulf %37, %41 : vector<8x128xf32>
    %44 = arith.addf %42, %43 : vector<8x128xf32>
    %45 = math.tanh %44 : vector<8x128xf32>
    %46 = arith.mulf %39, %45 : vector<8x128xf32>
    %47 = arith.truncf %46 : vector<8x128xf32> to vector<8x128xbf16>
    %48 = arith.truncf %16 : vector<8x128xf32> to vector<8x128xbf16>
    %49 = tpu.concatenate %47, %48 in 1 : vector<8x128xbf16>, vector<8x128xbf16> -> vector<8x256xbf16>
    %cst_14 = arith.constant dense<0.000000e+00> : vector<8x512xf32>
    %50 = tpu.matmul %49, %3, %cst_14 {dimension_numbers = #tpu.dot_dimension_numbers<[1], [0], [0], [1], [0, 0, 1, 1], [], []>} : vector<8x256xbf16>, vector<256x512xbf16>, vector<8x512xf32> -> vector<8x512xf32>
    %51 = arith.addf %50, %15 : vector<8x512xf32>
    %52 = vector.extract_strided_slice %51 {offsets = [0, 0], sizes = [8, 384], strides = [1, 1]} : vector<8x512xf32> to vector<8x384xf32>
    %53 = arith.negf %52 : vector<8x384xf32>
    %54 = math.exp %53 : vector<8x384xf32>
    %cst_15 = arith.constant 1.000000e+00 : f32
    %55 = vector.broadcast %cst_15 : f32 to vector<8x384xf32>
    %56 = arith.addf %55, %54 : vector<8x384xf32>
    %57 = arith.divf %55, %56 : vector<8x384xf32>
    %58 = vector.extract_strided_slice %57 {offsets = [0, 0], sizes = [8, 128], strides = [1, 1]} : vector<8x384xf32> to vector<8x128xf32>
    %59 = vector.extract_strided_slice %57 {offsets = [0, 128], sizes = [8, 128], strides = [1, 1]} : vector<8x384xf32> to vector<8x128xf32>
    %60 = vector.extract_strided_slice %57 {offsets = [0, 256], sizes = [8, 128], strides = [1, 1]} : vector<8x384xf32> to vector<8x128xf32>
    %61 = vector.extract_strided_slice %51 {offsets = [0, 384], sizes = [8, 128], strides = [1, 1]} : vector<8x512xf32> to vector<8x128xf32>
    %62 = math.tanh %61 : vector<8x128xf32>
    %63 = arith.mulf %59, %16 : vector<8x128xf32>
    %64 = arith.mulf %58, %62 : vector<8x128xf32>
    %65 = arith.addf %63, %64 : vector<8x128xf32>
    %66 = math.tanh %65 : vector<8x128xf32>
    %67 = arith.mulf %60, %66 : vector<8x128xf32>
    %c1_i32 = arith.constant 1 : i32
    %68 = arith.index_cast %c1_i32 : i32 to index
    %c0_16 = arith.constant 0 : index
    %c0_17 = arith.constant 0 : index
    %69 = vector.load %arg0[%68, %c0_16, %c0_17] : memref<8x8x2xf32, #tpu.memory_space<vmem>>, vector<1x8x2xf32>
    %70 = vector.shape_cast %69 : vector<1x8x2xf32> to vector<8x2xf32>
    %71 = vector.extract_strided_slice %70 {offsets = [0, 0], sizes = [8, 1], strides = [1, 1]} : vector<8x2xf32> to vector<8x1xf32>
    %72 = vector.extract_strided_slice %70 {offsets = [0, 1], sizes = [8, 1], strides = [1, 1]} : vector<8x2xf32> to vector<8x1xf32>
    %73 = vector.broadcast %71 : vector<8x1xf32> to vector<8x512xf32>
    %74 = arith.mulf %73, %6 : vector<8x512xf32>
    %75 = vector.broadcast %72 : vector<8x1xf32> to vector<8x512xf32>
    %76 = arith.mulf %75, %9 : vector<8x512xf32>
    %77 = arith.addf %74, %76 : vector<8x512xf32>
    %78 = arith.addf %77, %12 : vector<8x512xf32>
    %79 = arith.truncf %46 : vector<8x128xf32> to vector<8x128xbf16>
    %cst_18 = arith.constant dense<0.000000e+00> : vector<8x512xf32>
    %80 = tpu.matmul %79, %1, %cst_18 {dimension_numbers = #tpu.dot_dimension_numbers<[1], [0], [0], [1], [0, 0, 1, 1], [], []>} : vector<8x128xbf16>, vector<128x512xbf16>, vector<8x512xf32> -> vector<8x512xf32>
    %81 = arith.addf %78, %80 : vector<8x512xf32>
    %82 = vector.extract_strided_slice %81 {offsets = [0, 0], sizes = [8, 384], strides = [1, 1]} : vector<8x512xf32> to vector<8x384xf32>
    %83 = arith.negf %82 : vector<8x384xf32>
    %84 = math.exp %83 : vector<8x384xf32>
    %cst_19 = arith.constant 1.000000e+00 : f32
    %85 = vector.broadcast %cst_19 : f32 to vector<8x384xf32>
    %86 = arith.addf %85, %84 : vector<8x384xf32>
    %87 = arith.divf %85, %86 : vector<8x384xf32>
    %88 = vector.extract_strided_slice %87 {offsets = [0, 0], sizes = [8, 128], strides = [1, 1]} : vector<8x384xf32> to vector<8x128xf32>
    %89 = vector.extract_strided_slice %87 {offsets = [0, 128], sizes = [8, 128], strides = [1, 1]} : vector<8x384xf32> to vector<8x128xf32>
    %90 = vector.extract_strided_slice %87 {offsets = [0, 256], sizes = [8, 128], strides = [1, 1]} : vector<8x384xf32> to vector<8x128xf32>
    %91 = vector.extract_strided_slice %81 {offsets = [0, 384], sizes = [8, 128], strides = [1, 1]} : vector<8x512xf32> to vector<8x128xf32>
    %92 = math.tanh %91 : vector<8x128xf32>
    %93 = arith.mulf %89, %44 : vector<8x128xf32>
    %94 = arith.mulf %88, %92 : vector<8x128xf32>
    %95 = arith.addf %93, %94 : vector<8x128xf32>
    %96 = math.tanh %95 : vector<8x128xf32>
    %97 = arith.mulf %90, %96 : vector<8x128xf32>
    %98 = arith.truncf %97 : vector<8x128xf32> to vector<8x128xbf16>
    %99 = arith.truncf %67 : vector<8x128xf32> to vector<8x128xbf16>
    %100 = tpu.concatenate %98, %99 in 1 : vector<8x128xbf16>, vector<8x128xbf16> -> vector<8x256xbf16>
    %cst_20 = arith.constant dense<0.000000e+00> : vector<8x512xf32>
    %101 = tpu.matmul %100, %3, %cst_20 {dimension_numbers = #tpu.dot_dimension_numbers<[1], [0], [0], [1], [0, 0, 1, 1], [], []>} : vector<8x256xbf16>, vector<256x512xbf16>, vector<8x512xf32> -> vector<8x512xf32>
    %102 = arith.addf %101, %15 : vector<8x512xf32>
    %103 = vector.extract_strided_slice %102 {offsets = [0, 0], sizes = [8, 384], strides = [1, 1]} : vector<8x512xf32> to vector<8x384xf32>
    %104 = arith.negf %103 : vector<8x384xf32>
    %105 = math.exp %104 : vector<8x384xf32>
    %cst_21 = arith.constant 1.000000e+00 : f32
    %106 = vector.broadcast %cst_21 : f32 to vector<8x384xf32>
    %107 = arith.addf %106, %105 : vector<8x384xf32>
    %108 = arith.divf %106, %107 : vector<8x384xf32>
    %109 = vector.extract_strided_slice %108 {offsets = [0, 0], sizes = [8, 128], strides = [1, 1]} : vector<8x384xf32> to vector<8x128xf32>
    %110 = vector.extract_strided_slice %108 {offsets = [0, 128], sizes = [8, 128], strides = [1, 1]} : vector<8x384xf32> to vector<8x128xf32>
    %111 = vector.extract_strided_slice %108 {offsets = [0, 256], sizes = [8, 128], strides = [1, 1]} : vector<8x384xf32> to vector<8x128xf32>
    %112 = vector.extract_strided_slice %102 {offsets = [0, 384], sizes = [8, 128], strides = [1, 1]} : vector<8x512xf32> to vector<8x128xf32>
    %113 = math.tanh %112 : vector<8x128xf32>
    %114 = arith.mulf %110, %65 : vector<8x128xf32>
    %115 = arith.mulf %109, %113 : vector<8x128xf32>
    %116 = arith.addf %114, %115 : vector<8x128xf32>
    %117 = math.tanh %116 : vector<8x128xf32>
    %118 = arith.mulf %111, %117 : vector<8x128xf32>
    %c2_i32 = arith.constant 2 : i32
    %119 = arith.index_cast %c2_i32 : i32 to index
    %c0_22 = arith.constant 0 : index
    %c0_23 = arith.constant 0 : index
    %120 = vector.load %arg0[%119, %c0_22, %c0_23] : memref<8x8x2xf32, #tpu.memory_space<vmem>>, vector<1x8x2xf32>
    %121 = vector.shape_cast %120 : vector<1x8x2xf32> to vector<8x2xf32>
    %122 = vector.extract_strided_slice %121 {offsets = [0, 0], sizes = [8, 1], strides = [1, 1]} : vector<8x2xf32> to vector<8x1xf32>
    %123 = vector.extract_strided_slice %121 {offsets = [0, 1], sizes = [8, 1], strides = [1, 1]} : vector<8x2xf32> to vector<8x1xf32>
    %124 = vector.broadcast %122 : vector<8x1xf32> to vector<8x512xf32>
    %125 = arith.mulf %124, %6 : vector<8x512xf32>
    %126 = vector.broadcast %123 : vector<8x1xf32> to vector<8x512xf32>
    %127 = arith.mulf %126, %9 : vector<8x512xf32>
    %128 = arith.addf %125, %127 : vector<8x512xf32>
    %129 = arith.addf %128, %12 : vector<8x512xf32>
    %130 = arith.truncf %97 : vector<8x128xf32> to vector<8x128xbf16>
    %cst_24 = arith.constant dense<0.000000e+00> : vector<8x512xf32>
    %131 = tpu.matmul %130, %1, %cst_24 {dimension_numbers = #tpu.dot_dimension_numbers<[1], [0], [0], [1], [0, 0, 1, 1], [], []>} : vector<8x128xbf16>, vector<128x512xbf16>, vector<8x512xf32> -> vector<8x512xf32>
    %132 = arith.addf %129, %131 : vector<8x512xf32>
    %133 = vector.extract_strided_slice %132 {offsets = [0, 0], sizes = [8, 384], strides = [1, 1]} : vector<8x512xf32> to vector<8x384xf32>
    %134 = arith.negf %133 : vector<8x384xf32>
    %135 = math.exp %134 : vector<8x384xf32>
    %cst_25 = arith.constant 1.000000e+00 : f32
    %136 = vector.broadcast %cst_25 : f32 to vector<8x384xf32>
    %137 = arith.addf %136, %135 : vector<8x384xf32>
    %138 = arith.divf %136, %137 : vector<8x384xf32>
    %139 = vector.extract_strided_slice %138 {offsets = [0, 0], sizes = [8, 128], strides = [1, 1]} : vector<8x384xf32> to vector<8x128xf32>
    %140 = vector.extract_strided_slice %138 {offsets = [0, 128], sizes = [8, 128], strides = [1, 1]} : vector<8x384xf32> to vector<8x128xf32>
    %141 = vector.extract_strided_slice %138 {offsets = [0, 256], sizes = [8, 128], strides = [1, 1]} : vector<8x384xf32> to vector<8x128xf32>
    %142 = vector.extract_strided_slice %132 {offsets = [0, 384], sizes = [8, 128], strides = [1, 1]} : vector<8x512xf32> to vector<8x128xf32>
    %143 = math.tanh %142 : vector<8x128xf32>
    %144 = arith.mulf %140, %95 : vector<8x128xf32>
    %145 = arith.mulf %139, %143 : vector<8x128xf32>
    %146 = arith.addf %144, %145 : vector<8x128xf32>
    %147 = math.tanh %146 : vector<8x128xf32>
    %148 = arith.mulf %141, %147 : vector<8x128xf32>
    %149 = arith.truncf %148 : vector<8x128xf32> to vector<8x128xbf16>
    %150 = arith.truncf %118 : vector<8x128xf32> to vector<8x128xbf16>
    %151 = tpu.concatenate %149, %150 in 1 : vector<8x128xbf16>, vector<8x128xbf16> -> vector<8x256xbf16>
    %cst_26 = arith.constant dense<0.000000e+00> : vector<8x512xf32>
    %152 = tpu.matmul %151, %3, %cst_26 {dimension_numbers = #tpu.dot_dimension_numbers<[1], [0], [0], [1], [0, 0, 1, 1], [], []>} : vector<8x256xbf16>, vector<256x512xbf16>, vector<8x512xf32> -> vector<8x512xf32>
    %153 = arith.addf %152, %15 : vector<8x512xf32>
    %154 = vector.extract_strided_slice %153 {offsets = [0, 0], sizes = [8, 384], strides = [1, 1]} : vector<8x512xf32> to vector<8x384xf32>
    %155 = arith.negf %154 : vector<8x384xf32>
    %156 = math.exp %155 : vector<8x384xf32>
    %cst_27 = arith.constant 1.000000e+00 : f32
    %157 = vector.broadcast %cst_27 : f32 to vector<8x384xf32>
    %158 = arith.addf %157, %156 : vector<8x384xf32>
    %159 = arith.divf %157, %158 : vector<8x384xf32>
    %160 = vector.extract_strided_slice %159 {offsets = [0, 0], sizes = [8, 128], strides = [1, 1]} : vector<8x384xf32> to vector<8x128xf32>
    %161 = vector.extract_strided_slice %159 {offsets = [0, 128], sizes = [8, 128], strides = [1, 1]} : vector<8x384xf32> to vector<8x128xf32>
    %162 = vector.extract_strided_slice %159 {offsets = [0, 256], sizes = [8, 128], strides = [1, 1]} : vector<8x384xf32> to vector<8x128xf32>
    %163 = vector.extract_strided_slice %153 {offsets = [0, 384], sizes = [8, 128], strides = [1, 1]} : vector<8x512xf32> to vector<8x128xf32>
    %164 = math.tanh %163 : vector<8x128xf32>
    %165 = arith.mulf %161, %116 : vector<8x128xf32>
    %166 = arith.mulf %160, %164 : vector<8x128xf32>
    %167 = arith.addf %165, %166 : vector<8x128xf32>
    %168 = math.tanh %167 : vector<8x128xf32>
    %169 = arith.mulf %162, %168 : vector<8x128xf32>
    %c3_i32 = arith.constant 3 : i32
    %170 = arith.index_cast %c3_i32 : i32 to index
    %c0_28 = arith.constant 0 : index
    %c0_29 = arith.constant 0 : index
    %171 = vector.load %arg0[%170, %c0_28, %c0_29] : memref<8x8x2xf32, #tpu.memory_space<vmem>>, vector<1x8x2xf32>
    %172 = vector.shape_cast %171 : vector<1x8x2xf32> to vector<8x2xf32>
    %173 = vector.extract_strided_slice %172 {offsets = [0, 0], sizes = [8, 1], strides = [1, 1]} : vector<8x2xf32> to vector<8x1xf32>
    %174 = vector.extract_strided_slice %172 {offsets = [0, 1], sizes = [8, 1], strides = [1, 1]} : vector<8x2xf32> to vector<8x1xf32>
    %175 = vector.broadcast %173 : vector<8x1xf32> to vector<8x512xf32>
    %176 = arith.mulf %175, %6 : vector<8x512xf32>
    %177 = vector.broadcast %174 : vector<8x1xf32> to vector<8x512xf32>
    %178 = arith.mulf %177, %9 : vector<8x512xf32>
    %179 = arith.addf %176, %178 : vector<8x512xf32>
    %180 = arith.addf %179, %12 : vector<8x512xf32>
    %181 = arith.truncf %148 : vector<8x128xf32> to vector<8x128xbf16>
    %cst_30 = arith.constant dense<0.000000e+00> : vector<8x512xf32>
    %182 = tpu.matmul %181, %1, %cst_30 {dimension_numbers = #tpu.dot_dimension_numbers<[1], [0], [0], [1], [0, 0, 1, 1], [], []>} : vector<8x128xbf16>, vector<128x512xbf16>, vector<8x512xf32> -> vector<8x512xf32>
    %183 = arith.addf %180, %182 : vector<8x512xf32>
    %184 = vector.extract_strided_slice %183 {offsets = [0, 0], sizes = [8, 384], strides = [1, 1]} : vector<8x512xf32> to vector<8x384xf32>
    %185 = arith.negf %184 : vector<8x384xf32>
    %186 = math.exp %185 : vector<8x384xf32>
    %cst_31 = arith.constant 1.000000e+00 : f32
    %187 = vector.broadcast %cst_31 : f32 to vector<8x384xf32>
    %188 = arith.addf %187, %186 : vector<8x384xf32>
    %189 = arith.divf %187, %188 : vector<8x384xf32>
    %190 = vector.extract_strided_slice %189 {offsets = [0, 0], sizes = [8, 128], strides = [1, 1]} : vector<8x384xf32> to vector<8x128xf32>
    %191 = vector.extract_strided_slice %189 {offsets = [0, 128], sizes = [8, 128], strides = [1, 1]} : vector<8x384xf32> to vector<8x128xf32>
    %192 = vector.extract_strided_slice %189 {offsets = [0, 256], sizes = [8, 128], strides = [1, 1]} : vector<8x384xf32> to vector<8x128xf32>
    %193 = vector.extract_strided_slice %183 {offsets = [0, 384], sizes = [8, 128], strides = [1, 1]} : vector<8x512xf32> to vector<8x128xf32>
    %194 = math.tanh %193 : vector<8x128xf32>
    %195 = arith.mulf %191, %146 : vector<8x128xf32>
    %196 = arith.mulf %190, %194 : vector<8x128xf32>
    %197 = arith.addf %195, %196 : vector<8x128xf32>
    %198 = math.tanh %197 : vector<8x128xf32>
    %199 = arith.mulf %192, %198 : vector<8x128xf32>
    %200 = arith.truncf %199 : vector<8x128xf32> to vector<8x128xbf16>
    %201 = arith.truncf %169 : vector<8x128xf32> to vector<8x128xbf16>
    %202 = tpu.concatenate %200, %201 in 1 : vector<8x128xbf16>, vector<8x128xbf16> -> vector<8x256xbf16>
    %cst_32 = arith.constant dense<0.000000e+00> : vector<8x512xf32>
    %203 = tpu.matmul %202, %3, %cst_32 {dimension_numbers = #tpu.dot_dimension_numbers<[1], [0], [0], [1], [0, 0, 1, 1], [], []>} : vector<8x256xbf16>, vector<256x512xbf16>, vector<8x512xf32> -> vector<8x512xf32>
    %204 = arith.addf %203, %15 : vector<8x512xf32>
    %205 = vector.extract_strided_slice %204 {offsets = [0, 0], sizes = [8, 384], strides = [1, 1]} : vector<8x512xf32> to vector<8x384xf32>
    %206 = arith.negf %205 : vector<8x384xf32>
    %207 = math.exp %206 : vector<8x384xf32>
    %cst_33 = arith.constant 1.000000e+00 : f32
    %208 = vector.broadcast %cst_33 : f32 to vector<8x384xf32>
    %209 = arith.addf %208, %207 : vector<8x384xf32>
    %210 = arith.divf %208, %209 : vector<8x384xf32>
    %211 = vector.extract_strided_slice %210 {offsets = [0, 0], sizes = [8, 128], strides = [1, 1]} : vector<8x384xf32> to vector<8x128xf32>
    %212 = vector.extract_strided_slice %210 {offsets = [0, 128], sizes = [8, 128], strides = [1, 1]} : vector<8x384xf32> to vector<8x128xf32>
    %213 = vector.extract_strided_slice %210 {offsets = [0, 256], sizes = [8, 128], strides = [1, 1]} : vector<8x384xf32> to vector<8x128xf32>
    %214 = vector.extract_strided_slice %204 {offsets = [0, 384], sizes = [8, 128], strides = [1, 1]} : vector<8x512xf32> to vector<8x128xf32>
    %215 = math.tanh %214 : vector<8x128xf32>
    %216 = arith.mulf %212, %167 : vector<8x128xf32>
    %217 = arith.mulf %211, %215 : vector<8x128xf32>
    %218 = arith.addf %216, %217 : vector<8x128xf32>
    %219 = math.tanh %218 : vector<8x128xf32>
    %220 = arith.mulf %213, %219 : vector<8x128xf32>
    %c4_i32 = arith.constant 4 : i32
    %221 = arith.index_cast %c4_i32 : i32 to index
    %c0_34 = arith.constant 0 : index
    %c0_35 = arith.constant 0 : index
    %222 = vector.load %arg0[%221, %c0_34, %c0_35] : memref<8x8x2xf32, #tpu.memory_space<vmem>>, vector<1x8x2xf32>
    %223 = vector.shape_cast %222 : vector<1x8x2xf32> to vector<8x2xf32>
    %224 = vector.extract_strided_slice %223 {offsets = [0, 0], sizes = [8, 1], strides = [1, 1]} : vector<8x2xf32> to vector<8x1xf32>
    %225 = vector.extract_strided_slice %223 {offsets = [0, 1], sizes = [8, 1], strides = [1, 1]} : vector<8x2xf32> to vector<8x1xf32>
    %226 = vector.broadcast %224 : vector<8x1xf32> to vector<8x512xf32>
    %227 = arith.mulf %226, %6 : vector<8x512xf32>
    %228 = vector.broadcast %225 : vector<8x1xf32> to vector<8x512xf32>
    %229 = arith.mulf %228, %9 : vector<8x512xf32>
    %230 = arith.addf %227, %229 : vector<8x512xf32>
    %231 = arith.addf %230, %12 : vector<8x512xf32>
    %232 = arith.truncf %199 : vector<8x128xf32> to vector<8x128xbf16>
    %cst_36 = arith.constant dense<0.000000e+00> : vector<8x512xf32>
    %233 = tpu.matmul %232, %1, %cst_36 {dimension_numbers = #tpu.dot_dimension_numbers<[1], [0], [0], [1], [0, 0, 1, 1], [], []>} : vector<8x128xbf16>, vector<128x512xbf16>, vector<8x512xf32> -> vector<8x512xf32>
    %234 = arith.addf %231, %233 : vector<8x512xf32>
    %235 = vector.extract_strided_slice %234 {offsets = [0, 0], sizes = [8, 384], strides = [1, 1]} : vector<8x512xf32> to vector<8x384xf32>
    %236 = arith.negf %235 : vector<8x384xf32>
    %237 = math.exp %236 : vector<8x384xf32>
    %cst_37 = arith.constant 1.000000e+00 : f32
    %238 = vector.broadcast %cst_37 : f32 to vector<8x384xf32>
    %239 = arith.addf %238, %237 : vector<8x384xf32>
    %240 = arith.divf %238, %239 : vector<8x384xf32>
    %241 = vector.extract_strided_slice %240 {offsets = [0, 0], sizes = [8, 128], strides = [1, 1]} : vector<8x384xf32> to vector<8x128xf32>
    %242 = vector.extract_strided_slice %240 {offsets = [0, 128], sizes = [8, 128], strides = [1, 1]} : vector<8x384xf32> to vector<8x128xf32>
    %243 = vector.extract_strided_slice %240 {offsets = [0, 256], sizes = [8, 128], strides = [1, 1]} : vector<8x384xf32> to vector<8x128xf32>
    %244 = vector.extract_strided_slice %234 {offsets = [0, 384], sizes = [8, 128], strides = [1, 1]} : vector<8x512xf32> to vector<8x128xf32>
    %245 = math.tanh %244 : vector<8x128xf32>
    %246 = arith.mulf %242, %197 : vector<8x128xf32>
    %247 = arith.mulf %241, %245 : vector<8x128xf32>
    %248 = arith.addf %246, %247 : vector<8x128xf32>
    %249 = math.tanh %248 : vector<8x128xf32>
    %250 = arith.mulf %243, %249 : vector<8x128xf32>
    %251 = arith.truncf %250 : vector<8x128xf32> to vector<8x128xbf16>
    %252 = arith.truncf %220 : vector<8x128xf32> to vector<8x128xbf16>
    %253 = tpu.concatenate %251, %252 in 1 : vector<8x128xbf16>, vector<8x128xbf16> -> vector<8x256xbf16>
    %cst_38 = arith.constant dense<0.000000e+00> : vector<8x512xf32>
    %254 = tpu.matmul %253, %3, %cst_38 {dimension_numbers = #tpu.dot_dimension_numbers<[1], [0], [0], [1], [0, 0, 1, 1], [], []>} : vector<8x256xbf16>, vector<256x512xbf16>, vector<8x512xf32> -> vector<8x512xf32>
    %255 = arith.addf %254, %15 : vector<8x512xf32>
    %256 = vector.extract_strided_slice %255 {offsets = [0, 0], sizes = [8, 384], strides = [1, 1]} : vector<8x512xf32> to vector<8x384xf32>
    %257 = arith.negf %256 : vector<8x384xf32>
    %258 = math.exp %257 : vector<8x384xf32>
    %cst_39 = arith.constant 1.000000e+00 : f32
    %259 = vector.broadcast %cst_39 : f32 to vector<8x384xf32>
    %260 = arith.addf %259, %258 : vector<8x384xf32>
    %261 = arith.divf %259, %260 : vector<8x384xf32>
    %262 = vector.extract_strided_slice %261 {offsets = [0, 0], sizes = [8, 128], strides = [1, 1]} : vector<8x384xf32> to vector<8x128xf32>
    %263 = vector.extract_strided_slice %261 {offsets = [0, 128], sizes = [8, 128], strides = [1, 1]} : vector<8x384xf32> to vector<8x128xf32>
    %264 = vector.extract_strided_slice %261 {offsets = [0, 256], sizes = [8, 128], strides = [1, 1]} : vector<8x384xf32> to vector<8x128xf32>
    %265 = vector.extract_strided_slice %255 {offsets = [0, 384], sizes = [8, 128], strides = [1, 1]} : vector<8x512xf32> to vector<8x128xf32>
    %266 = math.tanh %265 : vector<8x128xf32>
    %267 = arith.mulf %263, %218 : vector<8x128xf32>
    %268 = arith.mulf %262, %266 : vector<8x128xf32>
    %269 = arith.addf %267, %268 : vector<8x128xf32>
    %270 = math.tanh %269 : vector<8x128xf32>
    %271 = arith.mulf %264, %270 : vector<8x128xf32>
    %c5_i32 = arith.constant 5 : i32
    %272 = arith.index_cast %c5_i32 : i32 to index
    %c0_40 = arith.constant 0 : index
    %c0_41 = arith.constant 0 : index
    %273 = vector.load %arg0[%272, %c0_40, %c0_41] : memref<8x8x2xf32, #tpu.memory_space<vmem>>, vector<1x8x2xf32>
    %274 = vector.shape_cast %273 : vector<1x8x2xf32> to vector<8x2xf32>
    %275 = vector.extract_strided_slice %274 {offsets = [0, 0], sizes = [8, 1], strides = [1, 1]} : vector<8x2xf32> to vector<8x1xf32>
    %276 = vector.extract_strided_slice %274 {offsets = [0, 1], sizes = [8, 1], strides = [1, 1]} : vector<8x2xf32> to vector<8x1xf32>
    %277 = vector.broadcast %275 : vector<8x1xf32> to vector<8x512xf32>
    %278 = arith.mulf %277, %6 : vector<8x512xf32>
    %279 = vector.broadcast %276 : vector<8x1xf32> to vector<8x512xf32>
    %280 = arith.mulf %279, %9 : vector<8x512xf32>
    %281 = arith.addf %278, %280 : vector<8x512xf32>
    %282 = arith.addf %281, %12 : vector<8x512xf32>
    %283 = arith.truncf %250 : vector<8x128xf32> to vector<8x128xbf16>
    %cst_42 = arith.constant dense<0.000000e+00> : vector<8x512xf32>
    %284 = tpu.matmul %283, %1, %cst_42 {dimension_numbers = #tpu.dot_dimension_numbers<[1], [0], [0], [1], [0, 0, 1, 1], [], []>} : vector<8x128xbf16>, vector<128x512xbf16>, vector<8x512xf32> -> vector<8x512xf32>
    %285 = arith.addf %282, %284 : vector<8x512xf32>
    %286 = vector.extract_strided_slice %285 {offsets = [0, 0], sizes = [8, 384], strides = [1, 1]} : vector<8x512xf32> to vector<8x384xf32>
    %287 = arith.negf %286 : vector<8x384xf32>
    %288 = math.exp %287 : vector<8x384xf32>
    %cst_43 = arith.constant 1.000000e+00 : f32
    %289 = vector.broadcast %cst_43 : f32 to vector<8x384xf32>
    %290 = arith.addf %289, %288 : vector<8x384xf32>
    %291 = arith.divf %289, %290 : vector<8x384xf32>
    %292 = vector.extract_strided_slice %291 {offsets = [0, 0], sizes = [8, 128], strides = [1, 1]} : vector<8x384xf32> to vector<8x128xf32>
    %293 = vector.extract_strided_slice %291 {offsets = [0, 128], sizes = [8, 128], strides = [1, 1]} : vector<8x384xf32> to vector<8x128xf32>
    %294 = vector.extract_strided_slice %291 {offsets = [0, 256], sizes = [8, 128], strides = [1, 1]} : vector<8x384xf32> to vector<8x128xf32>
    %295 = vector.extract_strided_slice %285 {offsets = [0, 384], sizes = [8, 128], strides = [1, 1]} : vector<8x512xf32> to vector<8x128xf32>
    %296 = math.tanh %295 : vector<8x128xf32>
    %297 = arith.mulf %293, %248 : vector<8x128xf32>
    %298 = arith.mulf %292, %296 : vector<8x128xf32>
    %299 = arith.addf %297, %298 : vector<8x128xf32>
    %300 = math.tanh %299 : vector<8x128xf32>
    %301 = arith.mulf %294, %300 : vector<8x128xf32>
    %302 = arith.truncf %301 : vector<8x128xf32> to vector<8x128xbf16>
    %303 = arith.truncf %271 : vector<8x128xf32> to vector<8x128xbf16>
    %304 = tpu.concatenate %302, %303 in 1 : vector<8x128xbf16>, vector<8x128xbf16> -> vector<8x256xbf16>
    %cst_44 = arith.constant dense<0.000000e+00> : vector<8x512xf32>
    %305 = tpu.matmul %304, %3, %cst_44 {dimension_numbers = #tpu.dot_dimension_numbers<[1], [0], [0], [1], [0, 0, 1, 1], [], []>} : vector<8x256xbf16>, vector<256x512xbf16>, vector<8x512xf32> -> vector<8x512xf32>
    %306 = arith.addf %305, %15 : vector<8x512xf32>
    %307 = vector.extract_strided_slice %306 {offsets = [0, 0], sizes = [8, 384], strides = [1, 1]} : vector<8x512xf32> to vector<8x384xf32>
    %308 = arith.negf %307 : vector<8x384xf32>
    %309 = math.exp %308 : vector<8x384xf32>
    %cst_45 = arith.constant 1.000000e+00 : f32
    %310 = vector.broadcast %cst_45 : f32 to vector<8x384xf32>
    %311 = arith.addf %310, %309 : vector<8x384xf32>
    %312 = arith.divf %310, %311 : vector<8x384xf32>
    %313 = vector.extract_strided_slice %312 {offsets = [0, 0], sizes = [8, 128], strides = [1, 1]} : vector<8x384xf32> to vector<8x128xf32>
    %314 = vector.extract_strided_slice %312 {offsets = [0, 128], sizes = [8, 128], strides = [1, 1]} : vector<8x384xf32> to vector<8x128xf32>
    %315 = vector.extract_strided_slice %312 {offsets = [0, 256], sizes = [8, 128], strides = [1, 1]} : vector<8x384xf32> to vector<8x128xf32>
    %316 = vector.extract_strided_slice %306 {offsets = [0, 384], sizes = [8, 128], strides = [1, 1]} : vector<8x512xf32> to vector<8x128xf32>
    %317 = math.tanh %316 : vector<8x128xf32>
    %318 = arith.mulf %314, %269 : vector<8x128xf32>
    %319 = arith.mulf %313, %317 : vector<8x128xf32>
    %320 = arith.addf %318, %319 : vector<8x128xf32>
    %321 = math.tanh %320 : vector<8x128xf32>
    %322 = arith.mulf %315, %321 : vector<8x128xf32>
    %c6_i32 = arith.constant 6 : i32
    %323 = arith.index_cast %c6_i32 : i32 to index
    %c0_46 = arith.constant 0 : index
    %c0_47 = arith.constant 0 : index
    %324 = vector.load %arg0[%323, %c0_46, %c0_47] : memref<8x8x2xf32, #tpu.memory_space<vmem>>, vector<1x8x2xf32>
    %325 = vector.shape_cast %324 : vector<1x8x2xf32> to vector<8x2xf32>
    %326 = vector.extract_strided_slice %325 {offsets = [0, 0], sizes = [8, 1], strides = [1, 1]} : vector<8x2xf32> to vector<8x1xf32>
    %327 = vector.extract_strided_slice %325 {offsets = [0, 1], sizes = [8, 1], strides = [1, 1]} : vector<8x2xf32> to vector<8x1xf32>
    %328 = vector.broadcast %326 : vector<8x1xf32> to vector<8x512xf32>
    %329 = arith.mulf %328, %6 : vector<8x512xf32>
    %330 = vector.broadcast %327 : vector<8x1xf32> to vector<8x512xf32>
    %331 = arith.mulf %330, %9 : vector<8x512xf32>
    %332 = arith.addf %329, %331 : vector<8x512xf32>
    %333 = arith.addf %332, %12 : vector<8x512xf32>
    %334 = arith.truncf %301 : vector<8x128xf32> to vector<8x128xbf16>
    %cst_48 = arith.constant dense<0.000000e+00> : vector<8x512xf32>
    %335 = tpu.matmul %334, %1, %cst_48 {dimension_numbers = #tpu.dot_dimension_numbers<[1], [0], [0], [1], [0, 0, 1, 1], [], []>} : vector<8x128xbf16>, vector<128x512xbf16>, vector<8x512xf32> -> vector<8x512xf32>
    %336 = arith.addf %333, %335 : vector<8x512xf32>
    %337 = vector.extract_strided_slice %336 {offsets = [0, 0], sizes = [8, 384], strides = [1, 1]} : vector<8x512xf32> to vector<8x384xf32>
    %338 = arith.negf %337 : vector<8x384xf32>
    %339 = math.exp %338 : vector<8x384xf32>
    %cst_49 = arith.constant 1.000000e+00 : f32
    %340 = vector.broadcast %cst_49 : f32 to vector<8x384xf32>
    %341 = arith.addf %340, %339 : vector<8x384xf32>
    %342 = arith.divf %340, %341 : vector<8x384xf32>
    %343 = vector.extract_strided_slice %342 {offsets = [0, 0], sizes = [8, 128], strides = [1, 1]} : vector<8x384xf32> to vector<8x128xf32>
    %344 = vector.extract_strided_slice %342 {offsets = [0, 128], sizes = [8, 128], strides = [1, 1]} : vector<8x384xf32> to vector<8x128xf32>
    %345 = vector.extract_strided_slice %342 {offsets = [0, 256], sizes = [8, 128], strides = [1, 1]} : vector<8x384xf32> to vector<8x128xf32>
    %346 = vector.extract_strided_slice %336 {offsets = [0, 384], sizes = [8, 128], strides = [1, 1]} : vector<8x512xf32> to vector<8x128xf32>
    %347 = math.tanh %346 : vector<8x128xf32>
    %348 = arith.mulf %344, %299 : vector<8x128xf32>
    %349 = arith.mulf %343, %347 : vector<8x128xf32>
    %350 = arith.addf %348, %349 : vector<8x128xf32>
    %351 = math.tanh %350 : vector<8x128xf32>
    %352 = arith.mulf %345, %351 : vector<8x128xf32>
    %353 = arith.truncf %352 : vector<8x128xf32> to vector<8x128xbf16>
    %354 = arith.truncf %322 : vector<8x128xf32> to vector<8x128xbf16>
    %355 = tpu.concatenate %353, %354 in 1 : vector<8x128xbf16>, vector<8x128xbf16> -> vector<8x256xbf16>
    %cst_50 = arith.constant dense<0.000000e+00> : vector<8x512xf32>
    %356 = tpu.matmul %355, %3, %cst_50 {dimension_numbers = #tpu.dot_dimension_numbers<[1], [0], [0], [1], [0, 0, 1, 1], [], []>} : vector<8x256xbf16>, vector<256x512xbf16>, vector<8x512xf32> -> vector<8x512xf32>
    %357 = arith.addf %356, %15 : vector<8x512xf32>
    %358 = vector.extract_strided_slice %357 {offsets = [0, 0], sizes = [8, 384], strides = [1, 1]} : vector<8x512xf32> to vector<8x384xf32>
    %359 = arith.negf %358 : vector<8x384xf32>
    %360 = math.exp %359 : vector<8x384xf32>
    %cst_51 = arith.constant 1.000000e+00 : f32
    %361 = vector.broadcast %cst_51 : f32 to vector<8x384xf32>
    %362 = arith.addf %361, %360 : vector<8x384xf32>
    %363 = arith.divf %361, %362 : vector<8x384xf32>
    %364 = vector.extract_strided_slice %363 {offsets = [0, 0], sizes = [8, 128], strides = [1, 1]} : vector<8x384xf32> to vector<8x128xf32>
    %365 = vector.extract_strided_slice %363 {offsets = [0, 128], sizes = [8, 128], strides = [1, 1]} : vector<8x384xf32> to vector<8x128xf32>
    %366 = vector.extract_strided_slice %363 {offsets = [0, 256], sizes = [8, 128], strides = [1, 1]} : vector<8x384xf32> to vector<8x128xf32>
    %367 = vector.extract_strided_slice %357 {offsets = [0, 384], sizes = [8, 128], strides = [1, 1]} : vector<8x512xf32> to vector<8x128xf32>
    %368 = math.tanh %367 : vector<8x128xf32>
    %369 = arith.mulf %365, %320 : vector<8x128xf32>
    %370 = arith.mulf %364, %368 : vector<8x128xf32>
    %371 = arith.addf %369, %370 : vector<8x128xf32>
    %372 = math.tanh %371 : vector<8x128xf32>
    %373 = arith.mulf %366, %372 : vector<8x128xf32>
    %c7_i32 = arith.constant 7 : i32
    %374 = arith.index_cast %c7_i32 : i32 to index
    %c0_52 = arith.constant 0 : index
    %c0_53 = arith.constant 0 : index
    %375 = vector.load %arg0[%374, %c0_52, %c0_53] : memref<8x8x2xf32, #tpu.memory_space<vmem>>, vector<1x8x2xf32>
    %376 = vector.shape_cast %375 : vector<1x8x2xf32> to vector<8x2xf32>
    %377 = vector.extract_strided_slice %376 {offsets = [0, 0], sizes = [8, 1], strides = [1, 1]} : vector<8x2xf32> to vector<8x1xf32>
    %378 = vector.extract_strided_slice %376 {offsets = [0, 1], sizes = [8, 1], strides = [1, 1]} : vector<8x2xf32> to vector<8x1xf32>
    %379 = vector.broadcast %377 : vector<8x1xf32> to vector<8x512xf32>
    %380 = arith.mulf %379, %6 : vector<8x512xf32>
    %381 = vector.broadcast %378 : vector<8x1xf32> to vector<8x512xf32>
    %382 = arith.mulf %381, %9 : vector<8x512xf32>
    %383 = arith.addf %380, %382 : vector<8x512xf32>
    %384 = arith.addf %383, %12 : vector<8x512xf32>
    %385 = arith.truncf %352 : vector<8x128xf32> to vector<8x128xbf16>
    %cst_54 = arith.constant dense<0.000000e+00> : vector<8x512xf32>
    %386 = tpu.matmul %385, %1, %cst_54 {dimension_numbers = #tpu.dot_dimension_numbers<[1], [0], [0], [1], [0, 0, 1, 1], [], []>} : vector<8x128xbf16>, vector<128x512xbf16>, vector<8x512xf32> -> vector<8x512xf32>
    %387 = arith.addf %384, %386 : vector<8x512xf32>
    %388 = vector.extract_strided_slice %387 {offsets = [0, 0], sizes = [8, 384], strides = [1, 1]} : vector<8x512xf32> to vector<8x384xf32>
    %389 = arith.negf %388 : vector<8x384xf32>
    %390 = math.exp %389 : vector<8x384xf32>
    %cst_55 = arith.constant 1.000000e+00 : f32
    %391 = vector.broadcast %cst_55 : f32 to vector<8x384xf32>
    %392 = arith.addf %391, %390 : vector<8x384xf32>
    %393 = arith.divf %391, %392 : vector<8x384xf32>
    %394 = vector.extract_strided_slice %393 {offsets = [0, 0], sizes = [8, 128], strides = [1, 1]} : vector<8x384xf32> to vector<8x128xf32>
    %395 = vector.extract_strided_slice %393 {offsets = [0, 128], sizes = [8, 128], strides = [1, 1]} : vector<8x384xf32> to vector<8x128xf32>
    %396 = vector.extract_strided_slice %393 {offsets = [0, 256], sizes = [8, 128], strides = [1, 1]} : vector<8x384xf32> to vector<8x128xf32>
    %397 = vector.extract_strided_slice %387 {offsets = [0, 384], sizes = [8, 128], strides = [1, 1]} : vector<8x512xf32> to vector<8x128xf32>
    %398 = math.tanh %397 : vector<8x128xf32>
    %399 = arith.mulf %395, %350 : vector<8x128xf32>
    %400 = arith.mulf %394, %398 : vector<8x128xf32>
    %401 = arith.addf %399, %400 : vector<8x128xf32>
    %402 = math.tanh %401 : vector<8x128xf32>
    %403 = arith.mulf %396, %402 : vector<8x128xf32>
    %404 = arith.truncf %403 : vector<8x128xf32> to vector<8x128xbf16>
    %405 = arith.truncf %373 : vector<8x128xf32> to vector<8x128xbf16>
    %406 = tpu.concatenate %404, %405 in 1 : vector<8x128xbf16>, vector<8x128xbf16> -> vector<8x256xbf16>
    %cst_56 = arith.constant dense<0.000000e+00> : vector<8x512xf32>
    %407 = tpu.matmul %406, %3, %cst_56 {dimension_numbers = #tpu.dot_dimension_numbers<[1], [0], [0], [1], [0, 0, 1, 1], [], []>} : vector<8x256xbf16>, vector<256x512xbf16>, vector<8x512xf32> -> vector<8x512xf32>
    %408 = arith.addf %407, %15 : vector<8x512xf32>
    %409 = vector.extract_strided_slice %408 {offsets = [0, 0], sizes = [8, 384], strides = [1, 1]} : vector<8x512xf32> to vector<8x384xf32>
    %410 = arith.negf %409 : vector<8x384xf32>
    %411 = math.exp %410 : vector<8x384xf32>
    %cst_57 = arith.constant 1.000000e+00 : f32
    %412 = vector.broadcast %cst_57 : f32 to vector<8x384xf32>
    %413 = arith.addf %412, %411 : vector<8x384xf32>
    %414 = arith.divf %412, %413 : vector<8x384xf32>
    %415 = vector.extract_strided_slice %414 {offsets = [0, 0], sizes = [8, 128], strides = [1, 1]} : vector<8x384xf32> to vector<8x128xf32>
    %416 = vector.extract_strided_slice %414 {offsets = [0, 128], sizes = [8, 128], strides = [1, 1]} : vector<8x384xf32> to vector<8x128xf32>
    %417 = vector.extract_strided_slice %414 {offsets = [0, 256], sizes = [8, 128], strides = [1, 1]} : vector<8x384xf32> to vector<8x128xf32>
    %418 = vector.extract_strided_slice %408 {offsets = [0, 384], sizes = [8, 128], strides = [1, 1]} : vector<8x512xf32> to vector<8x128xf32>
    %419 = math.tanh %418 : vector<8x128xf32>
    %420 = arith.mulf %416, %371 : vector<8x128xf32>
    %421 = arith.mulf %415, %419 : vector<8x128xf32>
    %422 = arith.addf %420, %421 : vector<8x128xf32>
    %423 = math.tanh %422 : vector<8x128xf32>
    %424 = arith.mulf %417, %423 : vector<8x128xf32>
    %c8_i32 = arith.constant 8 : i32
    %c0_58 = arith.constant 0 : index
    %c0_59 = arith.constant 0 : index
    %425 = vector.load %arg6[%c0_58, %c0_59] : memref<128x128xf32, #tpu.memory_space<vmem>>, vector<128x128xf32>
    %cst_60 = arith.constant dense<0.000000e+00> : vector<8x128xf32>
    %426 = tpu.matmul %424, %425, %cst_60 {dimension_numbers = #tpu.dot_dimension_numbers<[1], [0], [0], [1], [0, 0, 1, 1], [], []>} : vector<8x128xf32>, vector<128x128xf32>, vector<8x128xf32> -> vector<8x128xf32>
    %c0_61 = arith.constant 0 : index
    %c0_62 = arith.constant 0 : index
    %427 = vector.load %arg7[%c0_61, %c0_62] : memref<1x128xf32, #tpu.memory_space<vmem>>, vector<1x128xf32>
    %428 = vector.broadcast %427 : vector<1x128xf32> to vector<8x128xf32>
    %429 = arith.addf %426, %428 : vector<8x128xf32>
    %c0_63 = arith.constant 0 : index
    %c0_64 = arith.constant 0 : index
    %430 = vector.load %arg8[%c0_63, %c0_64] : memref<8x128xf32, #tpu.memory_space<vmem>>, vector<8x128xf32>
    tpu.vector_store %arg8[%c0_63, %c0_64], %429 {strides = array<i32>} : memref<8x128xf32, #tpu.memory_space<vmem>>, vector<8x128xf32>,
    return
  }
}

</mosaic_0001>

<bundles_post_ra>
// kernel: lstm_forward.1
= control target key start
LH: loop header
LB: loop body
LE: loop exit
PB: predicated region body
PF: predicated region fallthrough
CT: control target
= control target key end

     0   :  { %v4886_v3 = vmov 0   ;;  %vm2840_vm0 = vmmov 0   ;;  %s4877_s2 = inlined_call_operand.vmem [shape: f32[128,512], index: 2, kind: input, shape index: {}]   ;;  %s4878_s0 = inlined_call_operand.vmem [shape: f32[8,8,2], index: 0, kind: input, shape index: {}]   ;;  %s4879_s4 = inlined_call_operand.vmem [shape: f32[256,512], index: 4, kind: input, shape index: {}]   ;;  %s4880_s1 = inlined_call_operand.vmem [shape: f32[2,512], index: 1, kind: input, shape index: {}]   ;;  %s4881_s3 = inlined_call_operand.vmem [shape: f32[1,512], index: 3, kind: input, shape index: {}]   ;;  %s4882_s5 = inlined_call_operand.vmem [shape: f32[1,512], index: 5, kind: input, shape index: {}]   ;;  %s4883_s6 = inlined_call_operand.vmem [shape: f32[128,128], index: 6, kind: input, shape index: {}]   ;;  %s4884_s7 = inlined_call_operand.vmem [shape: f32[1,128], index: 7, kind: input, shape index: {}]   ;;  %s4885_s8 = inlined_call_operand.vmem [shape: f32[8,128], index: 8, kind: output, shape index: {}]  }
   0x1   :  { %v87_v0 = vld [vmem:[%s4877_s2 + $0x1c8] sm:$0xff]  ;;  %v89_v2 = vld [vmem:[%s4877_s2 + $0x1d8] sm:$0xff]  ;;  %465 = vmatprep.mubr.bf16.mxu0 %v4886_v3  ;;  %506 = vmatprep.mubr.bf16.mxu1 %v4886_v3  ;;  %v86_v6 = vld [vmem:[%s4877_s2 + $0x1c0] sm:$0xff] }
   0x2   :  { %v91_v1 = vld [vmem:[%s4877_s2 + $0x1e8] sm:$0xff]  ;;  %v93_v5 = vld [vmem:[%s4877_s2 + $0x1f8] sm:$0xff]  ;;  %v90_v7 = vld [vmem:[%s4877_s2 + $0x1e0] sm:$0xff]  ;;  %2578 = vset.pattern.permute.xlu1 %v4886_v3  ;;  %2576 = vset.pattern.permute.xlu0 %v4886_v3 }
   0x3   :  { %v2897_v4 = vpack.c.bf16 %v91_v1, %v87_v0  ;;  %v2910_v8 = vpack.c.bf16 %v93_v5, %v89_v2  ;;  %v2912_v9 = vpack.c.bf16 %v90_v7, %v86_v6  ;;  %v88_v10 = vld [vmem:[%s4877_s2 + $0x1d0] sm:$0xff]  ;;  %v79_v12 = vld [vmem:[%s4877_s2 + $0x188] sm:$0xff]  ;;  %v81_v15 = vld [vmem:[%s4877_s2 + $0x198] sm:$0xff] }
   0x4   :  { %v92_v11 = vld [vmem:[%s4877_s2 + $0x1f0] sm:$0xff]  ;;  %v83_v14 = vld [vmem:[%s4877_s2 + $0x1a8] sm:$0xff]  ;;  %v85_v16 = vld [vmem:[%s4877_s2 + $0x1b8] sm:$0xff] }
   0x5   :  { %5037 = vst [vmem:[#allocation2_spill] sm:$0xff] %v2897_v4  ;;  %5038 = vst [vmem:[#allocation3_spill] sm:$0xff] %v2910_v8  ;;  %433 = vmatprep.subr.bf16.mxu0 %v2897_v4  ;;  %v2924_v13 = vpack.c.bf16 %v92_v11, %v88_v10  ;;  %474 = vmatprep.subr.bf16.mxu1 %v2910_v8  ;;  %v2937_v17 = vpack.c.bf16 %v83_v14, %v79_v12  ;;  %v78_v19 = vld [vmem:[%s4877_s2 + $0x180] sm:$0xff]  ;;  %v80_v21 = vld [vmem:[%s4877_s2 + $0x190] sm:$0xff] }
   0x6   :  { %434 = vmatpush1.bf16.msra.mxu0 %v2912_v9  ;;  %v2939_v18 = vpack.c.bf16 %v85_v16, %v81_v15  ;;  %v82_v20 = vld [vmem:[%s4877_s2 + $0x1a0] sm:$0xff]  ;;  %v84_v23 = vld [vmem:[%s4877_s2 + $0x1b0] sm:$0xff]  ;;  %v71_v24 = vld [vmem:[%s4877_s2 + $0x148] sm:$0xff] }
   0x7   :  { %475 = vmatpush1.bf16.msra.mxu1 %v2924_v13  ;;  %v2951_v22 = vpack.c.bf16 %v82_v20, %v78_v19  ;;  %v75_v25 = vld [vmem:[%s4877_s2 + $0x168] sm:$0xff]  ;;  %435 = vmatprep.subr.bf16.mxu0 %v2937_v17  ;;  %v2964_v26 = vpack.c.bf16 %v84_v23, %v80_v21  ;;  %v73_v28 = vld [vmem:[%s4877_s2 + $0x158] sm:$0xff]  ;;  %v70_v30 = vld [vmem:[%s4877_s2 + $0x140] sm:$0xff] }
   0x8   :  { %476 = vmatprep.subr.bf16.mxu1 %v2939_v18  ;;  %v2966_v27 = vpack.c.bf16 %v75_v25, %v71_v24  ;;  %v77_v29 = vld [vmem:[%s4877_s2 + $0x178] sm:$0xff]  ;;  %v74_v32 = vld [vmem:[%s4877_s2 + $0x160] sm:$0xff]  ;;  %v72_v33 = vld [vmem:[%s4877_s2 + $0x150] sm:$0xff] }
   0x9   :  { %v2977_v31 = vpack.c.bf16 %v77_v29, %v73_v28  ;;  %v76_v34 = vld [vmem:[%s4877_s2 + $0x170] sm:$0xff]  ;;  %v2989_v35 = vpack.c.bf16 %v74_v32, %v70_v30  ;;  %v63_v36 = vld [vmem:[%s4877_s2 + $0x108] sm:$0xff]  ;;  %v65_v38 = vld [vmem:[%s4877_s2 + $0x118] sm:$0xff] }
   0xa   :  { %436 = vmatpush1.bf16.msra.mxu0 %v2951_v22  ;;  %v67_v37 = vld [vmem:[%s4877_s2 + $0x128] sm:$0xff]  ;;  %v3002_v39 = vpack.c.bf16 %v76_v34, %v72_v33  ;;  %v69_v41 = vld [vmem:[%s4877_s2 + $0x138] sm:$0xff]  ;;  %v62_v42 = vld [vmem:[%s4877_s2 + $0x100] sm:$0xff] }
   0xb   :  { %477 = vmatpush1.bf16.msra.mxu1 %v2964_v26  ;;  %437 = vmatprep.subr.bf16.mxu0 %v2966_v27  ;;  %v3004_v40 = vpack.c.bf16 %v67_v37, %v63_v36  ;;  %v66_v43 = vld [vmem:[%s4877_s2 + $0x120] sm:$0xff]  ;;  %v3016_v44 = vpack.c.bf16 %v69_v41, %v65_v38  ;;  %v64_v45 = vld [vmem:[%s4877_s2 + $0x110] sm:$0xff]  ;;  %v55_v47 = vld [vmem:[%s4877_s2 + $0xc8] sm:$0xff] }
   0xc   :  { %478 = vmatprep.subr.bf16.mxu1 %v2977_v31  ;;  %v68_v46 = vld [vmem:[%s4877_s2 + $0x130] sm:$0xff]  ;;  %v59_v48 = vld [vmem:[%s4877_s2 + $0xe8] sm:$0xff]  ;;  %v57_v49 = vld [vmem:[%s4877_s2 + $0xd8] sm:$0xff]  ;;  %v3037_v51 = vpack.c.bf16 %v66_v43, %v62_v42 }
   0xd   :  { %v61_v50 = vld [vmem:[%s4877_s2 + $0xf8] sm:$0xff]  ;;  %v3041_v52 = vpack.c.bf16 %v68_v46, %v64_v45  ;;  %v3043_v53 = vpack.c.bf16 %v59_v48, %v55_v47  ;;  %v54_v54 = vld [vmem:[%s4877_s2 + $0xc0] sm:$0xff]  ;;  %v56_v56 = vld [vmem:[%s4877_s2 + $0xd0] sm:$0xff]  ;;  %v2838_v48 = vmov 1  }
   0xe   :  { %438 = vmatpush1.bf16.msra.mxu0 %v2989_v35  ;;  %v58_v55 = vld [vmem:[%s4877_s2 + $0xe0] sm:$0xff]  ;;  %v3055_v57 = vpack.c.bf16 %v61_v50, %v57_v49  ;;  %v60_v58 = vld [vmem:[%s4877_s2 + $0xf0] sm:$0xff]  ;;  %v47_v59 = vld [vmem:[%s4877_s2 + $0x88] sm:$0xff] }
   0xf   :  { %479 = vmatpush1.bf16.msra.mxu1 %v3002_v39  ;;  %439 = vmatprep.subr.bf16.mxu0 %v3004_v40  ;;  %v51_v60 = vld [vmem:[%s4877_s2 + $0xa8] sm:$0xff]  ;;  %v49_v61 = vld [vmem:[%s4877_s2 + $0x98] sm:$0xff]  ;;  %v3073_v63 = vpack.c.bf16 %v58_v55, %v54_v54  ;;  %v3077_v0 = vpack.c.bf16 %v60_v58, %v56_v56  ;;  %v46_v2 = vld [vmem:[%s4877_s2 + $0x80] sm:$0xff] }
  0x10   :  { %480 = vmatprep.subr.bf16.mxu1 %v3016_v44  ;;  %v53_v62 = vld [vmem:[%s4877_s2 + $0xb8] sm:$0xff]  ;;  %v3079_v1 = vpack.c.bf16 %v51_v60, %v47_v59  ;;  %v50_v5 = vld [vmem:[%s4877_s2 + $0xa0] sm:$0xff]  ;;  %v48_v6 = vld [vmem:[%s4877_s2 + $0x90] sm:$0xff] }
  0x11   :  { %v3091_v7 = vpack.c.bf16 %v53_v62, %v49_v61  ;;  %v52_v10 = vld [vmem:[%s4877_s2 + $0xb0] sm:$0xff]  ;;  %v39_v11 = vld [vmem:[%s4877_s2 + $0x48] sm:$0xff]  ;;  %v41_v14 = vld [vmem:[%s4877_s2 + $0x58] sm:$0xff]  ;;  %v3109_v16 = vpack.c.bf16 %v50_v5, %v46_v2 }
  0x12   :  { %440 = vmatpush1.bf16.msra.mxu0 %v3037_v51  ;;  %v43_v12 = vld [vmem:[%s4877_s2 + $0x68] sm:$0xff]  ;;  %v45_v15 = vld [vmem:[%s4877_s2 + $0x78] sm:$0xff]  ;;  %v38_v19 = vld [vmem:[%s4877_s2 + $0x40] sm:$0xff]  ;;  %v3119_v21 = vpack.c.bf16 %v52_v10, %v48_v6 }
  0x13   :  { %481 = vmatpush1.bf16.msra.mxu1 %v3041_v52  ;;  %441 = vmatprep.subr.bf16.mxu0 %v3043_v53  ;;  %v42_v20 = vld [vmem:[%s4877_s2 + $0x60] sm:$0xff]  ;;  %v3121_v23 = vpack.c.bf16 %v43_v12, %v39_v11  ;;  %v40_v24 = vld [vmem:[%s4877_s2 + $0x50] sm:$0xff]  ;;  %v2470_v25 = vld [vmem:[%s4878_s0 + $0x8] sm:$0xff]  ;;  %v3133_v29 = vpack.c.bf16 %v45_v15, %v41_v14 }
  0x14   :  { %482 = vmatprep.subr.bf16.mxu1 %v3055_v57  ;;  %v407_v28 = vld [vmem:[%s4878_s0] sm:$0xff]  ;;  %v44_v30 = vld [vmem:[%s4877_s2 + $0x70] sm:$0xff]  ;;  %v31_v32 = vld [vmem:[%s4877_s2 + $0x8] sm:$0xff]  ;;  %654 = vperm.xlu1 %2578, %v2470_v25   ;;  %v3151_v37 = vpack.c.bf16 %v42_v20, %v38_v19 }
  0x15   :  { %v35_v33 = vld [vmem:[%s4877_s2 + $0x28] sm:$0xff]  ;;  %v33_v34 = vld [vmem:[%s4877_s2 + $0x18] sm:$0xff]  ;;  %410 = vperm.xlu0 %2576, %v407_v28   ;;  %v3155_v38 = vpack.c.bf16 %v44_v30, %v40_v24  ;;  %v30_v42 = vld [vmem:[%s4877_s2] sm:$0xff] }
  0x16   :  { %442 = vmatpush1.bf16.msra.mxu0 %v3073_v63  ;;  %v37_v36 = vld [vmem:[%s4877_s2 + $0x38] sm:$0xff]  ;;  %v3157_v41 = vpack.c.bf16 %v35_v33, %v31_v32  ;;  %v34_v43 = vld [vmem:[%s4877_s2 + $0x20] sm:$0xff]  ;;  %v32_v46 = vld [vmem:[%s4877_s2 + $0x10] sm:$0xff] }
  0x17   :  { %483 = vmatpush1.bf16.msra.mxu1 %v3077_v0  ;;  %443 = vmatprep.subr.bf16.mxu0 %v3079_v1  ;;  %v3166_v45 = vpack.c.bf16 %v37_v36, %v33_v34  ;;  %v36_v47 = vld [vmem:[%s4877_s2 + $0x30] sm:$0xff]  ;;  %v3175_v49 = vpack.c.bf16 %v34_v43, %v30_v42  ;;  %v2484_v55 = vld [vmem:[%s4878_s0 + $0x18] sm:$0xff]  ;;  %v2491_v56 = vld [vmem:[%s4878_s0 + $0x20] sm:$0xff] }
  0x18   :  { %484 = vmatprep.subr.bf16.mxu1 %v3091_v7  ;;  %2579 = vset.pattern.permute.xlu1 %v2838_v48  ;;  %v3179_v50 = vpack.c.bf16 %v36_v47, %v32_v46  ;;  %v2477_v54 = vld [vmem:[%s4878_s0 + $0x10] sm:$0xff]  ;;  %v2498_v58 = vld [vmem:[%s4878_s0 + $0x28] sm:$0xff]  ;;  %v185_v62 = vld [vmem:[%s4879_s4 + $0x1d8] sm:$0xff] }
  0x19   :  { %662 = vperm.xlu1 %2579, %v2470_v25   ;;  %2577 = vset.pattern.permute.xlu0 %v2838_v48  ;;  %v2505_v59 = vld [vmem:[%s4878_s0 + $0x30] sm:$0xff]  ;;  %v183_v60 = vld [vmem:[%s4879_s4 + $0x1c8] sm:$0xff]  ;;  %v189_v5 = vld [vmem:[%s4879_s4 + $0x1f8] sm:$0xff] }
  0x1a   :  { %444 = vmatpush1.bf16.msra.mxu0 %v3109_v16  ;;  %418 = vperm.xlu0 %2577, %v407_v28   ;;  %5039 = vst [vmem:[#allocation4_spill] sm:$0xff] %v3179_v50  ;;  %v187_v61 = vld [vmem:[%s4879_s4 + $0x1e8] sm:$0xff]  ;;  %v182_v6 = vld [vmem:[%s4879_s4 + $0x1c0] sm:$0xff]  ;;  %v2512_v11 = vld [vmem:[%s4878_s0 + $0x38] sm:$0xff]  ;;  %v3227_v12 = vpack.c.bf16 %v189_v5, %v185_v62 }
  0x1b   :  { %485 = vmatpush1.bf16.msra.mxu1 %v3119_v21  ;;  %445 = vmatprep.subr.bf16.mxu0 %v3121_v23  ;;  %v3213_v2 = vpack.c.bf16 %v187_v61, %v183_v60  ;;  %v186_v10 = vld [vmem:[%s4879_s4 + $0x1e0] sm:$0xff]  ;;  %v184_v15 = vld [vmem:[%s4879_s4 + $0x1d0] sm:$0xff]  ;;  %v175_v24 = vld [vmem:[%s4879_s4 + $0x188] sm:$0xff] }
  0x1c   :  { %486 = vmatprep.subr.bf16.mxu1 %v3133_v29  ;;  %5041 = vst [vmem:[#allocation6_spill] sm:$0xff] %v3227_v12  ;;  %v3229_v14 = vpack.c.bf16 %v186_v10, %v182_v6  ;;  %v188_v19 = vld [vmem:[%s4879_s4 + $0x1f0] sm:$0xff]  ;;  %v179_v25 = vld [vmem:[%s4879_s4 + $0x1a8] sm:$0xff]  ;;  %v177_v28 = vld [vmem:[%s4879_s4 + $0x198] sm:$0xff] }
  0x1d   :  { %2580 = vset.pattern.permute.xlu1 %v4886_v3  ;;  %5040 = vst [vmem:[#allocation5_spill] sm:$0xff] %v3213_v2  ;;  %v3238_v20 = vpack.c.bf16 %v188_v19, %v184_v15  ;;  %v3251_v30 = vpack.c.bf16 %v179_v25, %v175_v24  ;;  %v181_v32 = vld [vmem:[%s4879_s4 + $0x1b8] sm:$0xff]  ;;  %v174_v33 = vld [vmem:[%s4879_s4 + $0x180] sm:$0xff]  ;;  %v176_v43 = vld [vmem:[%s4879_s4 + $0x190] sm:$0xff] }
  0x1e   :  { %446 = vmatpush1.bf16.msra.mxu0 %v3151_v37  ;;  %899 = vperm.xlu1 %2580, %v2477_v54   ;;  %5042 = vst [vmem:[#allocation7_spill] sm:$0xff] %v3229_v14  ;;  %v178_v34 = vld [vmem:[%s4879_s4 + $0x1a0] sm:$0xff]  ;;  %v3263_v36 = vpack.c.bf16 %v181_v32, %v177_v28  ;;  %v180_v46 = vld [vmem:[%s4879_s4 + $0x1b0] sm:$0xff]  ;;  %v167_v48 = vld [vmem:[%s4879_s4 + $0x148] sm:$0xff] }
  0x1f   :  { %487 = vmatpush1.bf16.msra.mxu1 %v3155_v38  ;;  %447 = vmatprep.subr.bf16.mxu0 %v3157_v41  ;;  %5043 = vst [vmem:[#allocation8_spill] sm:$0xff] %v3238_v20  ;;  %5044 = vst [vmem:[#allocation9_spill] sm:$0xff] %v3251_v30  ;;  %v3265_v42 = vpack.c.bf16 %v178_v34, %v174_v33  ;;  %v3274_v47 = vpack.c.bf16 %v180_v46, %v176_v43  ;;  %v170_v60 = vld [vmem:[%s4879_s4 + $0x160] sm:$0xff]  ;;  %v168_v5 = vld [vmem:[%s4879_s4 + $0x150] sm:$0xff] }
  0x20   :  { %488 = vmatprep.subr.bf16.mxu1 %v3166_v45  ;;  %907 = vperm.xlu0 %2577, %v2477_v54   ;;  %5045 = vst [vmem:[#allocation10_spill] sm:$0xff] %v3263_v36  ;;  %v171_v54 = vld [vmem:[%s4879_s4 + $0x168] sm:$0xff]  ;;  %v172_v6 = vld [vmem:[%s4879_s4 + $0x170] sm:$0xff]  ;;  %v161_v19 = vld [vmem:[%s4879_s4 + $0x118] sm:$0xff] }
  0x21   :  { %5046 = vst [vmem:[#allocation11_spill] sm:$0xff] %v3265_v42  ;;  %5047 = vst [vmem:[#allocation12_spill] sm:$0xff] %v3274_v47  ;;  %v3310_v10 = vpack.c.bf16 %v172_v6, %v168_v5  ;;  %v163_v15 = vld [vmem:[%s4879_s4 + $0x128] sm:$0xff]  ;;  %v165_v25 = vld [vmem:[%s4879_s4 + $0x138] sm:$0xff] }
  0x22   :  { %448 = vmatpush1.bf16.msra.mxu0 %v3175_v49  ;;  %1144 = vperm.xlu1 %2580, %v2484_v55   ;;  %v158_v28 = vld [vmem:[%s4879_s4 + $0x100] sm:$0xff]  ;;  %v3335_v33 = vpack.c.bf16 %v165_v25, %v161_v19  ;;  %v160_v43 = vld [vmem:[%s4879_s4 + $0x110] sm:$0xff] }
  0x23   :  { %489 = vmatpush1.bf16.msra.mxu1 %v3179_v50  ;;  %544 = vmatprep.subr.bf16.mxu0 %v3213_v2  ;;  %5051 = vst [vmem:[#allocation16_spill] sm:$0xff] %v3310_v10  ;;  %v162_v32 = vld [vmem:[%s4879_s4 + $0x120] sm:$0xff]  ;;  %v164_v46 = vld [vmem:[%s4879_s4 + $0x130] sm:$0xff] }
  0x24   :  { %1152 = vperm.xlu0 %2577, %v2484_v55   ;;  %585 = vmatprep.subr.bf16.mxu1 %v3227_v12  ;;  %v169_v55 = vld [vmem:[%s4879_s4 + $0x158] sm:$0xff]  ;;  %5053 = vst [vmem:[#allocation18_spill] sm:$0xff] %v3335_v33  ;;  %v3337_v34 = vpack.c.bf16 %v162_v32, %v158_v28  ;;  %v150_v5 = vld [vmem:[%s4879_s4 + $0xc0] sm:$0xff]  ;;  %v152_v19 = vld [vmem:[%s4879_s4 + $0xd0] sm:$0xff] }
  0x25   :  { %466 = vmatmul.mubr.bf16.vlgmr.msra.gmra.mxu0 %v4886_v3  ;;  %v154_v6 = vld [vmem:[%s4879_s4 + $0xe0] sm:$0xff]  ;;  %v156_v25 = vld [vmem:[%s4879_s4 + $0xf0] sm:$0xff]  ;;  %v143_v32 = vld [vmem:[%s4879_s4 + $0x88] sm:$0xff] }
  0x26   :  { %507 = vmatmul.mubr.bf16.vlgmr.msra.gmra.mxu1 %v4886_v3  ;;  %576 = vmatprep.mubr.bf16.mxu0 %v4886_v3  ;;  %5054 = vst [vmem:[#allocation19_spill] sm:$0xff] %v3337_v34  ;;  %v3382_v28 = vpack.c.bf16 %v156_v25, %v152_v19  ;;  %v144_v19 = vld [vmem:[%s4879_s4 + $0x90] sm:$0xff] }
  0x27   :  { %617 = vmatprep.mubr.bf16.mxu1 %v4886_v3  ;;  %1389 = vperm.xlu1 %2580, %v2491_v56   ;;  %v148_v25 = vld [vmem:[%s4879_s4 + $0xb0] sm:$0xff] }
  0x28   :  { %1397 = vperm.xlu0 %2577, %v2491_v56   ;;  %545 = vmatpush1.bf16.msra.mxu0 %v3229_v14  ;;  %v3288_v56 = vpack.c.bf16 %v171_v54, %v167_v48  ;;  %v3346_v48 = vpack.c.bf16 %v164_v46, %v160_v43  ;;  %v151_v54 = vld [vmem:[%s4879_s4 + $0xc8] sm:$0xff]  ;;  %5059 = vst [vmem:[#allocation24_spill] sm:$0xff] %v3382_v28  ;;  %v145_v46 = vld [vmem:[%s4879_s4 + $0x98] sm:$0xff] }
  0x29   :  { %586 = vmatpush1.bf16.msra.mxu1 %v3238_v20  ;;  %546 = vmatprep.subr.bf16.mxu0 %v3251_v30  ;;  %v147_v43 = vld [vmem:[%s4879_s4 + $0xa8] sm:$0xff] }
  0x2a   :  { %587 = vmatprep.subr.bf16.mxu1 %v3263_v36  ;;  %5048 = vst [vmem:[#allocation13_spill] sm:$0xff] %v3288_v56  ;;  %5055 = vst [vmem:[#allocation20_spill] sm:$0xff] %v3346_v48 }
  0x2b   :  { %1634 = vperm.xlu1 %2580, %v2498_v58  }
  0x2c   :  { %1642 = vperm.xlu0 %2577, %v2498_v58   ;;  %547 = vmatpush1.bf16.msra.mxu0 %v3265_v42  ;;  %v173_v58 = vld [vmem:[%s4879_s4 + $0x178] sm:$0xff] }
  0x2d   :  { %588 = vmatpush1.bf16.msra.mxu1 %v3274_v47  ;;  %v3299_v61 = vpack.c.bf16 %v173_v58, %v169_v55  ;;  %548 = vmatprep.subr.bf16.mxu0 %v3288_v56  ;;  %v155_v55 = vld [vmem:[%s4879_s4 + $0xe8] sm:$0xff]  ;;  %v153_v58 = vld [vmem:[%s4879_s4 + $0xd8] sm:$0xff] }
  0x2f   :  { %1879 = vperm.xlu1 %2580, %v2505_v59   ;;  %5049 = vst [vmem:[#allocation14_spill] sm:$0xff] %v3299_v61  ;;  %589 = vmatprep.subr.bf16.mxu1 %v3299_v61 }
  0x30   :  { %1887 = vperm.xlu0 %2577, %v2505_v59   ;;  %v166_v59 = vld [vmem:[%s4879_s4 + $0x140] sm:$0xff] }
  0x31   :  { %v3301_v62 = vpack.c.bf16 %v170_v60, %v166_v59  ;;  %590 = vmatpush1.bf16.msra.mxu1 %v3310_v10  ;;  %v3360_v59 = vpack.c.bf16 %v155_v55, %v151_v54  ;;  %v157_v60 = vld [vmem:[%s4879_s4 + $0xf8] sm:$0xff]  ;;  %v3396_v54 = vpack.c.bf16 %v147_v43, %v143_v32  ;;  %v3418_v32 = vpack.c.bf16 %v148_v25, %v144_v19  ;;  %v135_v43 = vld [vmem:[%s4879_s4 + $0x48] sm:$0xff]  ;;  %v134_v19 = vld [vmem:[%s4879_s4 + $0x40] sm:$0xff] }
  0x32   :  { %591 = vmatprep.subr.bf16.mxu1 %v3335_v33  ;;  %v149_v55 = vld [vmem:[%s4879_s4 + $0xb8] sm:$0xff]  ;;  %v138_v25 = vld [vmem:[%s4879_s4 + $0x60] sm:$0xff]  ;;  %v195_v33 = vld [vmem:[%s4879_s4 + $0x228] sm:$0xff] }
  0x33   :  { %2124 = vperm.xlu1 %2580, %v2512_v11   ;;  %5050 = vst [vmem:[#allocation15_spill] sm:$0xff] %v3301_v62  ;;  %549 = vmatpush1.bf16.msra.mxu0 %v3301_v62  ;;  %5056 = vst [vmem:[#allocation21_spill] sm:$0xff] %v3360_v59 }
  0x34   :  { %2132 = vperm.xlu0 %2577, %v2512_v11   ;;  %v159_v11 = vld [vmem:[%s4879_s4 + $0x108] sm:$0xff]  ;;  %5060 = vst [vmem:[#allocation25_spill] sm:$0xff] %v3396_v54  ;;  %5063 = vst [vmem:[#allocation28_spill] sm:$0xff] %v3418_v32 }
  0x35   :  { %v3324_v24 = vpack.c.bf16 %v163_v15, %v159_v11  ;;  %592 = vmatpush1.bf16.msra.mxu1 %v3346_v48  ;;  %v3371_v11 = vpack.c.bf16 %v157_v60, %v153_v58  ;;  %v3373_v15 = vpack.c.bf16 %v154_v6, %v150_v5  ;;  %v142_v58 = vld [vmem:[%s4879_s4 + $0x80] sm:$0xff]  ;;  %v3407_v5 = vpack.c.bf16 %v149_v55, %v145_v46  ;;  %v139_v46 = vld [vmem:[%s4879_s4 + $0x68] sm:$0xff]  ;;  %v137_v55 = vld [vmem:[%s4879_s4 + $0x58] sm:$0xff] }
  0x36   :  { %v146_v60 = vld [vmem:[%s4879_s4 + $0xa0] sm:$0xff] }
  0x37   :  { %5052 = vst [vmem:[#allocation17_spill] sm:$0xff] %v3324_v24  ;;  %550 = vmatprep.subr.bf16.mxu0 %v3324_v24  ;;  %5057 = vst [vmem:[#allocation22_spill] sm:$0xff] %v3371_v11  ;;  %593 = vmatprep.subr.bf16.mxu1 %v3371_v11  ;;  %v3409_v6 = vpack.c.bf16 %v146_v60, %v142_v58  ;;  %v3432_v58 = vpack.c.bf16 %v139_v46, %v135_v43  ;;  %v141_v60 = vld [vmem:[%s4879_s4 + $0x78] sm:$0xff]  ;;  %v136_v43 = vld [vmem:[%s4879_s4 + $0x50] sm:$0xff] }
  0x38   :  { %551 = vmatpush1.bf16.msra.mxu0 %v3337_v34  ;;  %5058 = vst [vmem:[#allocation23_spill] sm:$0xff] %v3373_v15  ;;  %5061 = vst [vmem:[#allocation26_spill] sm:$0xff] %v3407_v5  ;;  %v3443_v3 = vpack.c.bf16 %v141_v60, %v137_v55  ;;  %v140_v46 = vld [vmem:[%s4879_s4 + $0x70] sm:$0xff]  ;;  %v127_v55 = vld [vmem:[%s4879_s4 + $0x8] sm:$0xff] }
  0x39   :  { %552 = vmatprep.subr.bf16.mxu0 %v3360_v59  ;;  %594 = vmatpush1.bf16.msra.mxu1 %v3382_v28  ;;  %5062 = vst [vmem:[#allocation27_spill] sm:$0xff] %v3409_v6  ;;  %5064 = vst [vmem:[#allocation29_spill] sm:$0xff] %v3432_v58  ;;  %v131_v60 = vld [vmem:[%s4879_s4 + $0x28] sm:$0xff]  ;;  %v193_v24 = vld [vmem:[%s4879_s4 + $0x218] sm:$0xff] }
  0x3a   :  { %595 = vmatprep.subr.bf16.mxu1 %v3407_v5  ;;  %5065 = vst [vmem:[#allocation30_spill] sm:$0xff] %v3443_v3  ;;  %v215_v5 = vld [vmem:[%s4879_s4 + $0x2c8] sm:$0xff] }
  0x3c   :  { %553 = vmatpush1.bf16.msra.mxu0 %v3373_v15 }
  0x3d   :  { %554 = vmatprep.subr.bf16.mxu0 %v3396_v54  ;;  %596 = vmatpush1.bf16.msra.mxu1 %v3418_v32  ;;  %v3454_v32 = vpack.c.bf16 %v140_v46, %v136_v43  ;;  %v133_v43 = vld [vmem:[%s4879_s4 + $0x38] sm:$0xff]  ;;  %v126_v46 = vld [vmem:[%s4879_s4] sm:$0xff] }
  0x3e   :  { %597 = vmatprep.subr.bf16.mxu1 %v3443_v3 }
  0x3f   :  { %5067 = vst [vmem:[#allocation32_spill] sm:$0xff] %v3454_v32 }
  0x40   :  { %555 = vmatpush1.bf16.msra.mxu0 %v3409_v6  ;;  %v3445_v6 = vpack.c.bf16 %v138_v25, %v134_v19  ;;  %v129_v19 = vld [vmem:[%s4879_s4 + $0x18] sm:$0xff]  ;;  %v3468_v25 = vpack.c.bf16 %v131_v60, %v127_v55  ;;  %v128_v55 = vld [vmem:[%s4879_s4 + $0x10] sm:$0xff] }
  0x41   :  { %556 = vmatprep.subr.bf16.mxu0 %v3432_v58  ;;  %598 = vmatpush1.bf16.msra.mxu1 %v3454_v32  ;;  %v3479_v3 = vpack.c.bf16 %v133_v43, %v129_v19  ;;  %v132_v60 = vld [vmem:[%s4879_s4 + $0x30] sm:$0xff]  ;;  %v251_v19 = vld [vmem:[%s4879_s4 + $0x3e8] sm:$0xff]  ;;  %v249_v43 = vld [vmem:[%s4879_s4 + $0x3d8] sm:$0xff] }
  0x42   :  { %5066 = vst [vmem:[#allocation31_spill] sm:$0xff] %v3445_v6  ;;  %5068 = vst [vmem:[#allocation33_spill] sm:$0xff] %v3468_v25  ;;  %v3490_v32 = vpack.c.bf16 %v132_v60, %v128_v55  ;;  %v253_v55 = vld [vmem:[%s4879_s4 + $0x3f8] sm:$0xff]  ;;  %v246_v60 = vld [vmem:[%s4879_s4 + $0x3c0] sm:$0xff] }
  0x43   :  { %5069 = vst [vmem:[#allocation34_spill] sm:$0xff] %v3479_v3  ;;  %599 = vmatprep.subr.bf16.mxu1 %v3479_v3  ;;  %v3515_v3 = vpack.c.bf16 %v253_v55, %v249_v43  ;;  %v243_v43 = vld [vmem:[%s4879_s4 + $0x3a8] sm:$0xff]  ;;  %v241_v55 = vld [vmem:[%s4879_s4 + $0x398] sm:$0xff] }
  0x44   :  { %557 = vmatpush1.bf16.msra.mxu0 %v3445_v6  ;;  %v130_v6 = vld [vmem:[%s4879_s4 + $0x20] sm:$0xff]  ;;  %5071 = vst [vmem:[#allocation36_spill] sm:$0xff] %v3490_v32 }
  0x45   :  { %v3481_v58 = vpack.c.bf16 %v130_v6, %v126_v46  ;;  %558 = vmatprep.subr.bf16.mxu0 %v3468_v25  ;;  %v247_v6 = vld [vmem:[%s4879_s4 + $0x3c8] sm:$0xff]  ;;  %600 = vmatpush1.bf16.msra.mxu1 %v3490_v32  ;;  %5073 = vst [vmem:[#allocation38_spill] sm:$0xff] %v3515_v3 }
  0x46   :  { %v3504_v46 = vpack.c.bf16 %v251_v19, %v247_v6  ;;  %v248_v6 = vld [vmem:[%s4879_s4 + $0x3d0] sm:$0xff]  ;;  %601 = vmatprep.subr.bf16.mxu1 %v3515_v3 }
  0x47   :  { %5070 = vst [vmem:[#allocation35_spill] sm:$0xff] %v3481_v58  ;;  %v252_v19 = vld [vmem:[%s4879_s4 + $0x3f0] sm:$0xff] }
  0x48   :  { %559 = vmatpush1.bf16.msra.mxu0 %v3481_v58  ;;  %5072 = vst [vmem:[#allocation37_spill] sm:$0xff] %v3504_v46  ;;  %v250_v58 = vld [vmem:[%s4879_s4 + $0x3e0] sm:$0xff]  ;;  %v3526_v32 = vpack.c.bf16 %v252_v19, %v248_v6  ;;  %v245_v6 = vld [vmem:[%s4879_s4 + $0x3b8] sm:$0xff] }
  0x49   :  { %v3517_v25 = vpack.c.bf16 %v250_v58, %v246_v60  ;;  %560 = vmatprep.subr.bf16.mxu0 %v3504_v46  ;;  %v239_v58 = vld [vmem:[%s4879_s4 + $0x388] sm:$0xff]  ;;  %v238_v19 = vld [vmem:[%s4879_s4 + $0x380] sm:$0xff]  ;;  %v3551_v3 = vpack.c.bf16 %v245_v6, %v241_v55  ;;  %v233_v6 = vld [vmem:[%s4879_s4 + $0x358] sm:$0xff] }
  0x4a   :  { %5075 = vst [vmem:[#allocation40_spill] sm:$0xff] %v3526_v32  ;;  %602 = vmatpush2.bf16.msra.mxu1 %v3526_v32  ;;  %v3540_v60 = vpack.c.bf16 %v243_v43, %v239_v58  ;;  %v240_v58 = vld [vmem:[%s4879_s4 + $0x390] sm:$0xff]  ;;  %v235_v55 = vld [vmem:[%s4879_s4 + $0x368] sm:$0xff] }
  0x4b   :  { %5074 = vst [vmem:[#allocation39_spill] sm:$0xff] %v3517_v25  ;;  %5077 = vst [vmem:[#allocation42_spill] sm:$0xff] %v3551_v3  ;;  %v244_v43 = vld [vmem:[%s4879_s4 + $0x3b0] sm:$0xff]  ;;  %603 = vmatprep.subr.bf16.mxu1 %v3551_v3 }
  0x4c   :  { %561 = vmatpush2.bf16.msra.mxu0 %v3517_v25  ;;  %5076 = vst [vmem:[#allocation41_spill] sm:$0xff] %v3540_v60  ;;  %v242_v25 = vld [vmem:[%s4879_s4 + $0x3a0] sm:$0xff]  ;;  %v3562_v32 = vpack.c.bf16 %v244_v43, %v240_v58  ;;  %v237_v58 = vld [vmem:[%s4879_s4 + $0x378] sm:$0xff] }
  0x4d   :  { %v3553_v46 = vpack.c.bf16 %v242_v25, %v238_v19  ;;  %562 = vmatprep.subr.bf16.mxu0 %v3540_v60  ;;  %v231_v25 = vld [vmem:[%s4879_s4 + $0x348] sm:$0xff]  ;;  %v230_v43 = vld [vmem:[%s4879_s4 + $0x340] sm:$0xff]  ;;  %v3587_v3 = vpack.c.bf16 %v237_v58, %v233_v6  ;;  %v225_v58 = vld [vmem:[%s4879_s4 + $0x318] sm:$0xff] }
  0x4e   :  { %5079 = vst [vmem:[#allocation44_spill] sm:$0xff] %v3562_v32  ;;  %604 = vmatpush2.bf16.msra.mxu1 %v3562_v32  ;;  %v3576_v19 = vpack.c.bf16 %v235_v55, %v231_v25  ;;  %v232_v25 = vld [vmem:[%s4879_s4 + $0x350] sm:$0xff]  ;;  %v227_v6 = vld [vmem:[%s4879_s4 + $0x328] sm:$0xff] }
  0x4f   :  { %5078 = vst [vmem:[#allocation43_spill] sm:$0xff] %v3553_v46  ;;  %5081 = vst [vmem:[#allocation46_spill] sm:$0xff] %v3587_v3  ;;  %v236_v55 = vld [vmem:[%s4879_s4 + $0x370] sm:$0xff]  ;;  %605 = vmatprep.subr.bf16.mxu1 %v3587_v3 }
  0x50   :  { %563 = vmatpush2.bf16.msra.mxu0 %v3553_v46  ;;  %5080 = vst [vmem:[#allocation45_spill] sm:$0xff] %v3576_v19  ;;  %v234_v46 = vld [vmem:[%s4879_s4 + $0x360] sm:$0xff]  ;;  %v3598_v32 = vpack.c.bf16 %v236_v55, %v232_v25  ;;  %v229_v25 = vld [vmem:[%s4879_s4 + $0x338] sm:$0xff] }
  0x51   :  { %v3589_v60 = vpack.c.bf16 %v234_v46, %v230_v43  ;;  %564 = vmatprep.subr.bf16.mxu0 %v3576_v19  ;;  %v223_v46 = vld [vmem:[%s4879_s4 + $0x308] sm:$0xff]  ;;  %v222_v55 = vld [vmem:[%s4879_s4 + $0x300] sm:$0xff]  ;;  %v3623_v3 = vpack.c.bf16 %v229_v25, %v225_v58  ;;  %v217_v58 = vld [vmem:[%s4879_s4 + $0x2d8] sm:$0xff]  ;;  %v320_v25 = vlaneseq }
  0x52   :  { %5083 = vst [vmem:[#allocation48_spill] sm:$0xff] %v3598_v32  ;;  %606 = vmatpush2.bf16.msra.mxu1 %v3598_v32  ;;  %v3612_v43 = vpack.c.bf16 %v227_v6, %v223_v46  ;;  %v224_v46 = vld [vmem:[%s4879_s4 + $0x310] sm:$0xff] }
  0x53   :  { %5082 = vst [vmem:[#allocation47_spill] sm:$0xff] %v3589_v60  ;;  %5085 = vst [vmem:[#allocation50_spill] sm:$0xff] %v3623_v3  ;;  %v228_v6 = vld [vmem:[%s4879_s4 + $0x330] sm:$0xff]  ;;  %607 = vmatprep.subr.bf16.mxu1 %v3623_v3  ;;  %v321_v15 = vshrl.u32 %v320_v25, 7  ;;  %v201_v25 = vld [vmem:[%s4879_s4 + $0x258] sm:$0xff] }
  0x54   :  { %565 = vmatpush2.bf16.msra.mxu0 %v3589_v60  ;;  %5084 = vst [vmem:[#allocation49_spill] sm:$0xff] %v3612_v43  ;;  %v226_v60 = vld [vmem:[%s4879_s4 + $0x320] sm:$0xff]  ;;  %v3634_v32 = vpack.c.bf16 %v228_v6, %v224_v46  ;;  %v221_v46 = vld [vmem:[%s4879_s4 + $0x2f8] sm:$0xff] }
  0x55   :  { %v3625_v19 = vpack.c.bf16 %v226_v60, %v222_v55  ;;  %566 = vmatprep.subr.bf16.mxu0 %v3612_v43  ;;  %v219_v60 = vld [vmem:[%s4879_s4 + $0x2e8] sm:$0xff]  ;;  %v214_v6 = vld [vmem:[%s4879_s4 + $0x2c0] sm:$0xff]  ;;  %v3659_v54 = vpack.c.bf16 %v221_v46, %v217_v58  ;;  %v209_v58 = vld [vmem:[%s4879_s4 + $0x298] sm:$0xff]  ;;  %v3750_v10 = vsub.s32 0, %v321_v15 }
  0x56   :  { %5087 = vst [vmem:[#allocation52_spill] sm:$0xff] %v3634_v32  ;;  %v3647_v55 = vpack.c.bf16 %v219_v60, %v215_v5  ;;  %v218_v43 = vld [vmem:[%s4879_s4 + $0x2e0] sm:$0xff]  ;;  %608 = vmatpush2.bf16.msra.mxu1 %v3634_v32  ;;  %v216_v5 = vld [vmem:[%s4879_s4 + $0x2d0] sm:$0xff]  ;;  %v213_v46 = vld [vmem:[%s4879_s4 + $0x2b8] sm:$0xff] }
  0x57   :  { %5086 = vst [vmem:[#allocation51_spill] sm:$0xff] %v3625_v19  ;;  %5089 = vst [vmem:[#allocation54_spill] sm:$0xff] %v3659_v54  ;;  %v3661_v3 = vpack.c.bf16 %v218_v43, %v214_v6  ;;  %v220_v60 = vld [vmem:[%s4879_s4 + $0x2f0] sm:$0xff]  ;;  %v211_v43 = vld [vmem:[%s4879_s4 + $0x2a8] sm:$0xff]  ;;  %609 = vmatprep.subr.bf16.mxu1 %v3659_v54  ;;  %v3687_v32 = vpack.c.bf16 %v213_v46, %v209_v58 }
  0x58   :  { %567 = vmatpush2.bf16.msra.mxu0 %v3625_v19  ;;  %5088 = vst [vmem:[#allocation53_spill] sm:$0xff] %v3647_v55  ;;  %v207_v19 = vld [vmem:[%s4879_s4 + $0x288] sm:$0xff]  ;;  %v3673_v28 = vpack.c.bf16 %v220_v60, %v216_v5  ;;  %v206_v5 = vld [vmem:[%s4879_s4 + $0x280] sm:$0xff] }
  0x59   :  { %5090 = vst [vmem:[#allocation55_spill] sm:$0xff] %v3661_v3  ;;  %568 = vmatprep.subr.bf16.mxu0 %v3647_v55  ;;  %v3685_v6 = vpack.c.bf16 %v211_v43, %v207_v19  ;;  %5093 = vst [vmem:[#allocation58_spill] sm:$0xff] %v3687_v32  ;;  %v210_v60 = vld [vmem:[%s4879_s4 + $0x2a0] sm:$0xff]  ;;  %v208_v55 = vld [vmem:[%s4879_s4 + $0x290] sm:$0xff] }
  0x5a   :  { %5091 = vst [vmem:[#allocation56_spill] sm:$0xff] %v3673_v28  ;;  %v3701_v19 = vpack.c.bf16 %v210_v60, %v206_v5  ;;  %v212_v43 = vld [vmem:[%s4879_s4 + $0x2b0] sm:$0xff]  ;;  %v199_v58 = vld [vmem:[%s4879_s4 + $0x248] sm:$0xff]  ;;  %610 = vmatpush2.bf16.msra.mxu1 %v3673_v28  ;;  %v205_v5 = vld [vmem:[%s4879_s4 + $0x278] sm:$0xff] }
  0x5b   :  { %5092 = vst [vmem:[#allocation57_spill] sm:$0xff] %v3685_v6  ;;  %v203_v46 = vld [vmem:[%s4879_s4 + $0x268] sm:$0xff]  ;;  %v198_v60 = vld [vmem:[%s4879_s4 + $0x240] sm:$0xff]  ;;  %v200_v28 = vld [vmem:[%s4879_s4 + $0x250] sm:$0xff]  ;;  %611 = vmatprep.subr.bf16.mxu1 %v3687_v32  ;;  %v3735_v59 = vpack.c.bf16 %v212_v43, %v208_v55  ;;  %v3739_v34 = vpack.c.bf16 %v205_v5, %v201_v25  ;;  %v3752_v55 = vsub.s32 1, %v321_v15  ;;  %v3754_v43 = vsub.s32 2, %v321_v15 }
  0x5c   :  { %569 = vmatpush2.bf16.msra.mxu0 %v3661_v3  ;;  %5095 = vst [vmem:[#allocation60_spill] sm:$0xff] %v3701_v19  ;;  %v204_v3 = vld [vmem:[%s4879_s4 + $0x270] sm:$0xff]  ;;  %v3737_v48 = vpack.c.bf16 %v203_v46, %v199_v58  ;;  %v197_v46 = vld [vmem:[%s4879_s4 + $0x238] sm:$0xff]  ;;  %v318_v25 = vld [vmem:[%s4880_s1] ss:$2 sm:$0xf] }
  0x5d   :  { %570 = vmatprep.subr.bf16.mxu0 %v3685_v6  ;;  %5096 = vst [vmem:[#allocation61_spill] sm:$0xff] %v3735_v59  ;;  %5098 = vst [vmem:[#allocation63_spill] sm:$0xff] %v3739_v34  ;;  %v191_v6 = vld [vmem:[%s4879_s4 + $0x208] sm:$0xff]  ;;  %v3765_v5 = vsub.s32 3, %v321_v15  ;;  %v3771_v62 = vpack.c.bf16 %v204_v3, %v200_v28  ;;  %v192_v3 = vld [vmem:[%s4879_s4 + $0x210] sm:$0xff] }
  0x5e   :  { %5097 = vst [vmem:[#allocation62_spill] sm:$0xff] %v3737_v48  ;;  %612 = vmatpush2.bf16.msra.mxu1 %v3735_v59  ;;  %v3782_v15 = vpack.c.bf16 %v195_v33, %v191_v6  ;;  %v196_v28 = vld [vmem:[%s4879_s4 + $0x230] sm:$0xff]  ;;  %v3796_v59 = vrot.slane %v318_v25, %v3750_v10  ;;  %v3805_v6 = vrot.slane %v318_v25, %v3754_v43 }
  0x5f   :  { %5101 = vst [vmem:[#allocation66_spill] sm:$0xff] %v3771_v62  ;;  %613 = vmatprep.subr.bf16.mxu1 %v3739_v34  ;;  %v3811_v34 = vpack.c.bf16 %v196_v28, %v192_v3 }
  0x60   :  { %571 = vmatpush2.bf16.msra.mxu0 %v3701_v19  ;;  %5102 = vst [vmem:[#allocation67_spill] sm:$0xff] %v3782_v15 }
  0x61   :  { %572 = vmatprep.subr.bf16.mxu0 %v3737_v48  ;;  %v2463_v48 = vld [vmem:[%s4880_s1 + $0x1] ss:$2 sm:$0xf]  ;;  %5105 = vst [vmem:[#allocation70_spill] sm:$0xff] %v3811_v34 }
  0x62   :  { %614 = vmatpush2.bf16.msra.mxu1 %v3771_v62  ;;  %v3814_v61 = vrot.slane %v2463_v48, %v3750_v10 }
  0x8f   :  { %v3698_v11 = vpop.permute.xlu1 %654 }
  0x90   :  { %5094 = vst [vmem:[#allocation59_spill] sm:$0xff] %v3698_v11  ;;  %v3712_v54 = vpop.permute.xlu0 %410  ;;  %v202_v11 = vld [vmem:[%s4879_s4 + $0x260] sm:$0xff] }
  0x91   :  { %v3757_v58 = vpack.c.bf16 %v202_v11, %v198_v60  ;;  %v190_v11 = vld [vmem:[%s4879_s4 + $0x200] sm:$0xff] }
  0x92   :  { %v194_v60 = vld [vmem:[%s4879_s4 + $0x220] sm:$0xff] }
  0x93   :  { %5099 = vst [vmem:[#allocation64_spill] sm:$0xff] %v3757_v58  ;;  %573 = vmatpush2.bf16.msra.mxu0 %v3757_v58  ;;  %v3799_v33 = vpack.c.bf16 %v194_v60, %v190_v11  ;;  %v3817_v58 = vrot.slane %v2463_v48, %v3752_v55  ;;  %v3820_v11 = vrot.slane %v2463_v48, %v3754_v43 }
  0x94   :  { %v3767_v32 = vpop.permute.xlu1 %662  ;;  %574 = vmatprep.subr.bf16.mxu0 %v3782_v15 }
  0x95   :  { %5100 = vst [vmem:[#allocation65_spill] sm:$0xff] %v3767_v32  ;;  %v3779_v19 = vpop.permute.xlu0 %418  ;;  %v3784_v32 = vpack.c.bf16 %v197_v46, %v193_v24  ;;  %5104 = vst [vmem:[#allocation69_spill] sm:$0xff] %v3799_v33  ;;  %v3802_v24 = vrot.slane %v318_v25, %v3752_v55  ;;  %v3808_v46 = vrot.slane %v318_v25, %v3765_v5 }
  0x96   :  { %v3825_v25 = vrot.slane %v2463_v48, %v3765_v5 }
  0x97   :  { %5103 = vst [vmem:[#allocation68_spill] sm:$0xff] %v3784_v32  ;;  %615 = vmatprep.subr.bf16.mxu1 %v3784_v32  ;;  %575 = vmatpush2.bf16.msra.mxu0 %v3799_v33 }
  0x98   :  { %616 = vmatpush2.bf16.msra.mxu1 %v3811_v34  ;;  %677 = vmatprep.subr.bf16.mxu0 %v2897_v4 }
  0x99   :  { %v900_v60 = vpop.permute.xlu1 %899  ;;  %718 = vmatprep.subr.bf16.mxu1 %v2910_v8 }
  0x9a   :  { %v902_v3 = vmul.f32 %v900_v60, %v3796_v59  ;;  %v903_v28 = vmul.f32 %v900_v60, %v3802_v24  ;;  %v904_v62 = vmul.f32 %v900_v60, %v3805_v6  ;;  %v905_v32 = vmul.f32 %v900_v60, %v3808_v46 }
  0x9b   :  { %v908_v56 = vpop.permute.xlu0 %907 }
  0x9c   :  { %v910_v47 = vmul.f32 %v908_v56, %v3814_v61  ;;  %v911_v42 = vmul.f32 %v908_v56, %v3817_v58  ;;  %v912_v36 = vmul.f32 %v908_v56, %v3820_v11  ;;  %v913_v48 = vmul.f32 %v908_v56, %v3825_v25 }
  0x9d   :  { %v1145_v15 = vpop.permute.xlu1 %1144 }
  0x9e   :  { %v3839_v30 = vadd.f32 %v910_v47, %v902_v3  ;;  %v3841_v20 = vadd.f32 %v912_v36, %v904_v62  ;;  %v3843_v14 = vadd.f32 %v911_v42, %v903_v28  ;;  %v1147_v12 = vmul.f32 %v1145_v15, %v3796_v59 }
  0x9f   :  { %v1148_v33 = vmul.f32 %v1145_v15, %v3802_v24  ;;  %v1149_v60 = vmul.f32 %v1145_v15, %v3805_v6  ;;  %v1150_v56 = vmul.f32 %v1145_v15, %v3808_v46  ;;  %v1153_v34 = vpop.permute.xlu0 %1152  ;;  %v3853_v62 = vadd.f32 %v913_v48, %v905_v32 }
  0xa0   :  { %5106 = vst [vmem:[#allocation71_spill] sm:$0xff] %v3839_v30  ;;  %5107 = vst [vmem:[#allocation72_spill] sm:$0xff] %v3841_v20  ;;  %v1155_v2 = vmul.f32 %v1153_v34, %v3814_v61  ;;  %v1156_v4 = vmul.f32 %v1153_v34, %v3817_v58  ;;  %v1157_v47 = vmul.f32 %v1153_v34, %v3820_v11 }
  0xa1   :  { %5108 = vst [vmem:[#allocation73_spill] sm:$0xff] %v3843_v14  ;;  %v1158_v36 = vmul.f32 %v1153_v34, %v3825_v25  ;;  %5109 = vst [vmem:[#allocation74_spill] sm:$0xff] %v3853_v62 }
  0xa2   :  { %v1390_v42 = vpop.permute.xlu1 %1389  ;;  %v3855_v3 = vadd.f32 %v1155_v2, %v1147_v12  ;;  %v3857_v28 = vadd.f32 %v1157_v47, %v1149_v60  ;;  %v3859_v20 = vadd.f32 %v1156_v4, %v1148_v33 }
  0xa3   :  { %v3861_v14 = vadd.f32 %v1158_v36, %v1150_v56  ;;  %v1392_v15 = vmul.f32 %v1390_v42, %v3796_v59  ;;  %v1393_v30 = vmul.f32 %v1390_v42, %v3802_v24  ;;  %v1394_v8 = vmul.f32 %v1390_v42, %v3805_v6  ;;  %v1398_v50 = vpop.permute.xlu0 %1397 }
  0xa4   :  { %5110 = vst [vmem:[#allocation75_spill] sm:$0xff] %v3855_v3  ;;  %5111 = vst [vmem:[#allocation76_spill] sm:$0xff] %v3857_v28  ;;  %v1400_v34 = vmul.f32 %v1398_v50, %v3814_v61  ;;  %v1401_v32 = vmul.f32 %v1398_v50, %v3817_v58  ;;  %v1402_v2 = vmul.f32 %v1398_v50, %v3820_v11 }
  0xa5   :  { %5112 = vst [vmem:[#allocation77_spill] sm:$0xff] %v3859_v20  ;;  %5113 = vst [vmem:[#allocation78_spill] sm:$0xff] %v3861_v14  ;;  %v1395_v12 = vmul.f32 %v1390_v42, %v3808_v46  ;;  %v1403_v4 = vmul.f32 %v1398_v50, %v3825_v25 }
  0xa6   :  { %v1635_v33 = vpop.permute.xlu1 %1634  ;;  %v3871_v48 = vadd.f32 %v1400_v34, %v1392_v15  ;;  %v3873_v60 = vadd.f32 %v1402_v2, %v1394_v8  ;;  %v3875_v56 = vadd.f32 %v1401_v32, %v1393_v30 }
  0xa7   :  { %v1637_v47 = vmul.f32 %v1635_v33, %v3796_v59  ;;  %v1638_v36 = vmul.f32 %v1635_v33, %v3802_v24  ;;  %v1639_v14 = vmul.f32 %v1635_v33, %v3805_v6  ;;  %v1640_v28 = vmul.f32 %v1635_v33, %v3808_v46  ;;  %v1643_v20 = vpop.permute.xlu0 %1642 }
  0xa8   :  { %5114 = vst [vmem:[#allocation79_spill] sm:$0xff] %v3871_v48  ;;  %5115 = vst [vmem:[#allocation80_spill] sm:$0xff] %v3873_v60  ;;  %v1645_v42 = vmul.f32 %v1643_v20, %v3814_v61  ;;  %v1646_v50 = vmul.f32 %v1643_v20, %v3817_v58  ;;  %v1647_v15 = vmul.f32 %v1643_v20, %v3820_v11 }
  0xa9   :  { %5116 = vst [vmem:[#allocation81_spill] sm:$0xff] %v3875_v56  ;;  %v1648_v8 = vmul.f32 %v1643_v20, %v3825_v25  ;;  %v3885_v34 = vadd.f32 %v1403_v4, %v1395_v12 }
  0xaa   :  { %v1880_v30 = vpop.permute.xlu1 %1879  ;;  %v3887_v32 = vadd.f32 %v1645_v42, %v1637_v47  ;;  %v3889_v2 = vadd.f32 %v1647_v15, %v1639_v14  ;;  %v3891_v60 = vadd.f32 %v1646_v50, %v1638_v36 }
  0xab   :  { %5117 = vst [vmem:[#allocation82_spill] sm:$0xff] %v3885_v34  ;;  %v3893_v56 = vadd.f32 %v1648_v8, %v1640_v28  ;;  %v1882_v33 = vmul.f32 %v1880_v30, %v3796_v59  ;;  %v1883_v48 = vmul.f32 %v1880_v30, %v3802_v24  ;;  %v1884_v3 = vmul.f32 %v1880_v30, %v3805_v6  ;;  %v1888_v62 = vpop.permute.xlu0 %1887 }
  0xac   :  { %5118 = vst [vmem:[#allocation83_spill] sm:$0xff] %v3887_v32  ;;  %5119 = vst [vmem:[#allocation84_spill] sm:$0xff] %v3889_v2  ;;  %v1890_v20 = vmul.f32 %v1888_v62, %v3814_v61  ;;  %v1891_v12 = vmul.f32 %v1888_v62, %v3817_v58  ;;  %v1892_v4 = vmul.f32 %v1888_v62, %v3820_v11 }
  0xad   :  { %5120 = vst [vmem:[#allocation85_spill] sm:$0xff] %v3891_v60  ;;  %5121 = vst [vmem:[#allocation86_spill] sm:$0xff] %v3893_v56  ;;  %v1885_v14 = vmul.f32 %v1880_v30, %v3808_v46  ;;  %v1893_v47 = vmul.f32 %v1888_v62, %v3825_v25  ;;  %v416_v32 = vmul.f32 %v3712_v54, %v3808_v46 }
  0xae   :  { %v2125_v36 = vpop.permute.xlu1 %2124  ;;  %v3903_v28 = vadd.f32 %v1890_v20, %v1882_v33  ;;  %v3905_v42 = vadd.f32 %v1892_v4, %v1884_v3  ;;  %v3907_v50 = vadd.f32 %v1891_v12, %v1883_v48  ;;  %v424_v34 = vmul.f32 %v3779_v19, %v3825_v25 }
  0xaf   :  { %v2127_v15 = vmul.f32 %v2125_v36, %v3796_v59  ;;  %v2128_v8 = vmul.f32 %v2125_v36, %v3802_v24  ;;  %v2129_v56 = vmul.f32 %v2125_v36, %v3805_v6  ;;  %v2130_v2 = vmul.f32 %v2125_v36, %v3808_v46  ;;  %v2133_v60 = vpop.permute.xlu0 %2132 }
  0xb0   :  { %5122 = vst [vmem:[#allocation87_spill] sm:$0xff] %v3903_v28  ;;  %5123 = vst [vmem:[#allocation88_spill] sm:$0xff] %v3905_v42  ;;  %v2135_v30 = vmul.f32 %v2133_v60, %v3814_v61  ;;  %v2136_v62 = vmul.f32 %v2133_v60, %v3817_v58  ;;  %v2137_v33 = vmul.f32 %v2133_v60, %v3820_v11 }
  0xb1   :  { %5124 = vst [vmem:[#allocation89_spill] sm:$0xff] %v3907_v50  ;;  %v2138_v3 = vmul.f32 %v2133_v60, %v3825_v25  ;;  %v3917_v20 = vadd.f32 %v1893_v47, %v1885_v14  ;;  %v413_v36 = vmul.f32 %v3712_v54, %v3796_v59  ;;  %v421_v50 = vmul.f32 %v3779_v19, %v3814_v61  ;;  %v363_v60 = vld [vmem:[%s4881_s3] sm:$0xf] }
  0xb2   :  { %v3919_v48 = vadd.f32 %v2135_v30, %v2127_v15  ;;  %v3921_v12 = vadd.f32 %v2137_v33, %v2129_v56  ;;  %v3923_v4 = vadd.f32 %v2136_v62, %v2128_v8  ;;  %v414_v14 = vmul.f32 %v3712_v54, %v3802_v24 }
  0xb3   :  { %5125 = vst [vmem:[#allocation90_spill] sm:$0xff] %v3917_v20  ;;  %v3925_v42 = vadd.f32 %v2138_v3, %v2130_v2  ;;  %v422_v56 = vmul.f32 %v3779_v19, %v3817_v58  ;;  %v3939_v47 = vrot.slane %v363_v60, %v3750_v10  ;;  %v425_v2 = vadd.f32 %v421_v50, %v413_v36 }
  0xb4   :  { %5126 = vst [vmem:[#allocation91_spill] sm:$0xff] %v3919_v48  ;;  %5127 = vst [vmem:[#allocation92_spill] sm:$0xff] %v3921_v12  ;;  %v3942_v15 = vrot.slane %v363_v60, %v3752_v55  ;;  %v415_v12 = vmul.f32 %v3712_v54, %v3805_v6 }
  0xb5   :  { %5128 = vst [vmem:[#allocation93_spill] sm:$0xff] %v3923_v4  ;;  %5129 = vst [vmem:[#allocation94_spill] sm:$0xff] %v3925_v42  ;;  %v426_v8 = vadd.f32 %v422_v56, %v414_v14  ;;  %v429_v30 = vadd.f32 %v425_v2, %v3939_v47  ;;  %v423_v4 = vmul.f32 %v3779_v19, %v3820_v11 }
  0xb6   :  { %5130 = vst [vmem:[#allocation95_spill] sm:$0xff] %v3939_v47  ;;  %5131 = vst [vmem:[#allocation96_spill] sm:$0xff] %v3942_v15  ;;  %v3951_v2 = vrot.slane %v363_v60, %v3754_v43 }
  0xb7   :  { %v430_v42 = vadd.f32 %v426_v8, %v3942_v15 }
  0xe5   :  { %v467_v62 = vpop.f32.mrf.mxu0 }
  0xe6   :  { %v515_v33 = vadd.f32 %v467_v62, %v429_v30  ;;  %v508_v3 = vpop.f32.mrf.mxu1  ;;  %v427_v30 = vadd.f32 %v423_v4, %v415_v12 }
  0xe7   :  { %v469_v48 = vpop.f32.mrf.mxu0 }
  0xe8   :  { %v2464_v20 = vmul.f32 -1.442695, %v515_v33  ;;  %v516_v50 = vadd.f32 %v469_v48, %v430_v42  ;;  %v510_v36 = vpop.f32.mrf.mxu1  ;;  %v431_v42 = vadd.f32 %v427_v30, %v3951_v2 }
  0xe9   :  { %v471_v28 = vpop.f32.mrf.mxu0 }
  0xea   :  { %2581 = vpow2.f32 %v2464_v20  ;;  %v2465_v14 = vmul.f32 -1.442695, %v516_v50  ;;  %v512_v56 = vpop.f32.mrf.mxu1  ;;  %v517_v48 = vadd.f32 %v508_v3, %v431_v42  ;;  %v3959_v28 = vrot.slane %v363_v60, %v3765_v5 }
  0xeb   :  { %v472_v62 = vpop.f32.mrf.mxu0  ;;  %v428_v20 = vadd.f32 %v424_v34, %v416_v32 }
  0xec   :  { %2583 = vpow2.f32 %v2465_v14  ;;  %v513_v8 = vpop.f32.mrf.mxu1  ;;  %v2466_v33 = vmul.f32 -1.442695, %v517_v48 }
  0xed   :  { %v432_v50 = vadd.f32 %v428_v20, %v3959_v28 }
  0xee   :  { %2585 = vpow2.f32 %v2466_v33  ;;  %v5132_v33 = vmov 0  }
  0xef   :  { %v518_v4 = vadd.f32 %v510_v36, %v432_v50  ;;  %v5133_v50 = vld [vmem:[#allocation4_spill] sm:$0xff] }
  0xf7   :  { %v2582_v12 = vpop.eup %2581 }
  0xf8   :  { %v528_v14 = vadd.f32 1.0, %v2582_v12  ;;  %v5134_v12 = vld [vmem:[#allocation5_spill] sm:$0xff] }
  0xf9   :  { %v2584_v56 = vpop.eup %2583 }
  0xfa   :  { %2587 = vrcp.f32 %v528_v14  ;;  %v529_v54 = vadd.f32 1.0, %v2584_v56  ;;  %v5136_v14 = vld [vmem:[#allocation7_spill] sm:$0xff]  ;;  %v5137_v56 = vld [vmem:[#allocation8_spill] sm:$0xff] }
  0xfb   :  { %2589 = vtanh.f32 %v518_v4  ;;  %v2586_v19 = vpop.eup %2585  ;;  %v5135_v4 = vld [vmem:[#allocation6_spill] sm:$0xff] }
  0xfc   :  { %2591 = vrcp.f32 %v529_v54  ;;  %v530_v8 = vadd.f32 1.0, %v2586_v19  ;;  %v5138_v54 = vld [vmem:[#allocation9_spill] sm:$0xff]  ;;  %v5139_v19 = vld [vmem:[#allocation10_spill] sm:$0xff] }
  0xfe   :  { %2593 = vrcp.f32 %v530_v8  ;;  %v5143_v8 = vld [vmem:[#allocation14_spill] sm:$0xff] }
 0x107   :  { %v2588_v62 = vpop.eup %2587 }
 0x108   :  { %v2590_v30 = vpop.eup %2589 }
 0x109   :  { %v2592_v3 = vpop.eup %2591  ;;  %v539_v42 = vmul.f32 %v2590_v30, %v2588_v62  ;;  %v5140_v62 = vld [vmem:[#allocation11_spill] sm:$0xff]  ;;  %v5141_v30 = vld [vmem:[#allocation12_spill] sm:$0xff] }
 0x10a   :  { %v538_v60 = vmul.f32 0.0, %v2592_v3  ;;  %v5142_v3 = vld [vmem:[#allocation13_spill] sm:$0xff] }
 0x10b   :  { %v2594_v32 = vpop.eup %2593 }
 0x10c   :  { %v3962_v34 = vadd.f32 %v539_v42, %v538_v60  ;;  %v5144_v60 = vld [vmem:[#allocation15_spill] sm:$0xff]  ;;  %v5145_v42 = vld [vmem:[#allocation16_spill] sm:$0xff] }
 0x10e   :  { %2595 = vtanh.f32 %v3962_v34 }
 0x11b   :  { %v2596_v36 = vpop.eup %2595 }
 0x11c   :  { %v542_v48 = vmul.f32 %v2596_v36, %v2594_v32  ;;  %v5146_v32 = vld [vmem:[#allocation17_spill] sm:$0xff]  ;;  %v5147_v36 = vld [vmem:[#allocation18_spill] sm:$0xff] }
 0x11e   :  { %v543_v20 = vpack.c.bf16 %v542_v48, %v542_v48  ;;  %v5148_v48 = vld [vmem:[#allocation19_spill] sm:$0xff] }
 0x120   :  { %577 = vmatmul.mubr.bf16.vlgmr.msra.gmra.mxu0 %v543_v20  ;;  %618 = vmatmul.mubr.bf16.vlgmr.msra.gmra.mxu1 %v543_v20 }
 0x121   :  { %678 = vmatpush1.bf16.msra.mxu0 %v2912_v9  ;;  %719 = vmatpush1.bf16.msra.mxu1 %v2924_v13 }
 0x122   :  { %679 = vmatprep.subr.bf16.mxu0 %v2937_v17  ;;  %720 = vmatprep.subr.bf16.mxu1 %v2939_v18 }
 0x123   :  { %709 = vmatprep.mubr.bf16.mxu0 %v5132_v33  ;;  %750 = vmatprep.mubr.bf16.mxu1 %v5132_v33 }
 0x125   :  { %680 = vmatpush1.bf16.msra.mxu0 %v2951_v22  ;;  %721 = vmatpush1.bf16.msra.mxu1 %v2964_v26 }
 0x126   :  { %681 = vmatprep.subr.bf16.mxu0 %v2966_v27  ;;  %722 = vmatprep.subr.bf16.mxu1 %v2977_v31 }
 0x129   :  { %682 = vmatpush1.bf16.msra.mxu0 %v2989_v35  ;;  %723 = vmatpush1.bf16.msra.mxu1 %v3002_v39 }
 0x12a   :  { %683 = vmatprep.subr.bf16.mxu0 %v3004_v40  ;;  %724 = vmatprep.subr.bf16.mxu1 %v3016_v44 }
 0x12d   :  { %684 = vmatpush1.bf16.msra.mxu0 %v3037_v51  ;;  %725 = vmatpush1.bf16.msra.mxu1 %v3041_v52 }
 0x12e   :  { %685 = vmatprep.subr.bf16.mxu0 %v3043_v53  ;;  %726 = vmatprep.subr.bf16.mxu1 %v3055_v57 }
 0x131   :  { %686 = vmatpush1.bf16.msra.mxu0 %v3073_v63  ;;  %727 = vmatpush1.bf16.msra.mxu1 %v3077_v0 }
 0x132   :  { %687 = vmatprep.subr.bf16.mxu0 %v3079_v1  ;;  %728 = vmatprep.subr.bf16.mxu1 %v3091_v7 }
 0x135   :  { %688 = vmatpush1.bf16.msra.mxu0 %v3109_v16  ;;  %729 = vmatpush1.bf16.msra.mxu1 %v3119_v21 }
 0x136   :  { %689 = vmatprep.subr.bf16.mxu0 %v3121_v23  ;;  %730 = vmatprep.subr.bf16.mxu1 %v3133_v29 }
 0x139   :  { %690 = vmatpush1.bf16.msra.mxu0 %v3151_v37  ;;  %731 = vmatpush1.bf16.msra.mxu1 %v3155_v38 }
 0x13a   :  { %691 = vmatprep.subr.bf16.mxu0 %v3157_v41  ;;  %732 = vmatprep.subr.bf16.mxu1 %v3166_v45 }
 0x13d   :  { %692 = vmatpush1.bf16.msra.mxu0 %v3175_v49  ;;  %733 = vmatpush1.bf16.msra.mxu1 %v5133_v50 }
 0x13e   :  { %789 = vmatprep.subr.bf16.mxu0 %v5134_v12  ;;  %830 = vmatprep.subr.bf16.mxu1 %v5135_v4 }
 0x140   :  { %710 = vmatmul.mubr.bf16.vlgmr.msra.gmra.mxu0 %v543_v20  ;;  %751 = vmatmul.mubr.bf16.vlgmr.msra.gmra.mxu1 %v543_v20  ;;  %v5149_v20 = vld [vmem:[#allocation20_spill] sm:$0xff] }
 0x141   :  { %790 = vmatpush1.bf16.msra.mxu0 %v5136_v14  ;;  %831 = vmatpush1.bf16.msra.mxu1 %v5137_v56  ;;  %v5200_v56 = vld [vmem:[#allocation2_spill] sm:$0xff] }
 0x142   :  { %791 = vmatprep.subr.bf16.mxu0 %v5138_v54  ;;  %832 = vmatprep.subr.bf16.mxu1 %v5139_v19  ;;  %v5150_v19 = vld [vmem:[#allocation21_spill] sm:$0xff] }
 0x145   :  { %792 = vmatpush1.bf16.msra.mxu0 %v5140_v62  ;;  %833 = vmatpush1.bf16.msra.mxu1 %v5141_v30  ;;  %v5151_v62 = vld [vmem:[#allocation22_spill] sm:$0xff]  ;;  %v5152_v30 = vld [vmem:[#allocation23_spill] sm:$0xff] }
 0x146   :  { %793 = vmatprep.subr.bf16.mxu0 %v5142_v3  ;;  %834 = vmatprep.subr.bf16.mxu1 %v5143_v8  ;;  %v5153_v3 = vld [vmem:[#allocation24_spill] sm:$0xff]  ;;  %v5154_v8 = vld [vmem:[#allocation25_spill] sm:$0xff] }
 0x149   :  { %794 = vmatpush1.bf16.msra.mxu0 %v5144_v60  ;;  %835 = vmatpush1.bf16.msra.mxu1 %v5145_v42  ;;  %v5155_v60 = vld [vmem:[#allocation26_spill] sm:$0xff]  ;;  %v5156_v42 = vld [vmem:[#allocation27_spill] sm:$0xff] }
 0x14a   :  { %795 = vmatprep.subr.bf16.mxu0 %v5146_v32  ;;  %836 = vmatprep.subr.bf16.mxu1 %v5147_v36  ;;  %v5157_v32 = vld [vmem:[#allocation28_spill] sm:$0xff]  ;;  %v5158_v36 = vld [vmem:[#allocation29_spill] sm:$0xff] }
 0x14d   :  { %796 = vmatpush1.bf16.msra.mxu0 %v5148_v48  ;;  %837 = vmatpush1.bf16.msra.mxu1 %v5149_v20  ;;  %v5159_v48 = vld [vmem:[#allocation30_spill] sm:$0xff]  ;;  %v5160_v20 = vld [vmem:[#allocation31_spill] sm:$0xff] }
 0x14e   :  { %797 = vmatprep.subr.bf16.mxu0 %v5150_v19  ;;  %838 = vmatprep.subr.bf16.mxu1 %v5151_v62  ;;  %v5161_v19 = vld [vmem:[#allocation32_spill] sm:$0xff]  ;;  %v5162_v62 = vld [vmem:[#allocation33_spill] sm:$0xff] }
 0x151   :  { %798 = vmatpush1.bf16.msra.mxu0 %v5152_v30  ;;  %839 = vmatpush1.bf16.msra.mxu1 %v5153_v3  ;;  %v5163_v30 = vld [vmem:[#allocation34_spill] sm:$0xff]  ;;  %v5164_v3 = vld [vmem:[#allocation35_spill] sm:$0xff] }
 0x152   :  { %799 = vmatprep.subr.bf16.mxu0 %v5154_v8  ;;  %840 = vmatprep.subr.bf16.mxu1 %v5155_v60  ;;  %v5165_v8 = vld [vmem:[#allocation36_spill] sm:$0xff]  ;;  %v5166_v60 = vld [vmem:[#allocation37_spill] sm:$0xff] }
 0x155   :  { %800 = vmatpush1.bf16.msra.mxu0 %v5156_v42  ;;  %841 = vmatpush1.bf16.msra.mxu1 %v5157_v32  ;;  %v5167_v42 = vld [vmem:[#allocation38_spill] sm:$0xff]  ;;  %v5168_v32 = vld [vmem:[#allocation39_spill] sm:$0xff] }
 0x156   :  { %801 = vmatprep.subr.bf16.mxu0 %v5158_v36  ;;  %842 = vmatprep.subr.bf16.mxu1 %v5159_v48  ;;  %v5169_v36 = vld [vmem:[#allocation40_spill] sm:$0xff]  ;;  %v5170_v48 = vld [vmem:[#allocation41_spill] sm:$0xff] }
 0x159   :  { %802 = vmatpush1.bf16.msra.mxu0 %v5160_v20  ;;  %843 = vmatpush1.bf16.msra.mxu1 %v5161_v19  ;;  %v5171_v20 = vld [vmem:[#allocation42_spill] sm:$0xff]  ;;  %v5172_v19 = vld [vmem:[#allocation43_spill] sm:$0xff] }
 0x15a   :  { %803 = vmatprep.subr.bf16.mxu0 %v5162_v62  ;;  %844 = vmatprep.subr.bf16.mxu1 %v5163_v30  ;;  %v5173_v62 = vld [vmem:[#allocation44_spill] sm:$0xff]  ;;  %v5174_v30 = vld [vmem:[#allocation45_spill] sm:$0xff] }
 0x15d   :  { %804 = vmatpush1.bf16.msra.mxu0 %v5164_v3  ;;  %845 = vmatpush1.bf16.msra.mxu1 %v5165_v8  ;;  %v5175_v3 = vld [vmem:[#allocation46_spill] sm:$0xff]  ;;  %v5176_v8 = vld [vmem:[#allocation47_spill] sm:$0xff] }
 0x15e   :  { %805 = vmatprep.subr.bf16.mxu0 %v5166_v60  ;;  %846 = vmatprep.subr.bf16.mxu1 %v5167_v42  ;;  %v5177_v60 = vld [vmem:[#allocation48_spill] sm:$0xff]  ;;  %v5178_v42 = vld [vmem:[#allocation49_spill] sm:$0xff] }
 0x161   :  { %806 = vmatpush2.bf16.msra.mxu0 %v5168_v32  ;;  %847 = vmatpush2.bf16.msra.mxu1 %v5169_v36  ;;  %v5179_v32 = vld [vmem:[#allocation50_spill] sm:$0xff]  ;;  %v5180_v36 = vld [vmem:[#allocation51_spill] sm:$0xff] }
 0x162   :  { %807 = vmatprep.subr.bf16.mxu0 %v5170_v48  ;;  %848 = vmatprep.subr.bf16.mxu1 %v5171_v20  ;;  %v5181_v48 = vld [vmem:[#allocation52_spill] sm:$0xff]  ;;  %v5182_v20 = vld [vmem:[#allocation53_spill] sm:$0xff] }
 0x165   :  { %808 = vmatpush2.bf16.msra.mxu0 %v5172_v19  ;;  %849 = vmatpush2.bf16.msra.mxu1 %v5173_v62  ;;  %v5183_v19 = vld [vmem:[#allocation54_spill] sm:$0xff]  ;;  %v5184_v62 = vld [vmem:[#allocation55_spill] sm:$0xff] }
 0x166   :  { %809 = vmatprep.subr.bf16.mxu0 %v5174_v30  ;;  %850 = vmatprep.subr.bf16.mxu1 %v5175_v3  ;;  %v5185_v30 = vld [vmem:[#allocation56_spill] sm:$0xff]  ;;  %v5186_v3 = vld [vmem:[#allocation57_spill] sm:$0xff] }
 0x169   :  { %810 = vmatpush2.bf16.msra.mxu0 %v5176_v8  ;;  %851 = vmatpush2.bf16.msra.mxu1 %v5177_v60  ;;  %v5187_v8 = vld [vmem:[#allocation58_spill] sm:$0xff]  ;;  %v5188_v60 = vld [vmem:[#allocation60_spill] sm:$0xff] }
 0x16a   :  { %811 = vmatprep.subr.bf16.mxu0 %v5178_v42  ;;  %852 = vmatprep.subr.bf16.mxu1 %v5179_v32  ;;  %v5189_v42 = vld [vmem:[#allocation61_spill] sm:$0xff]  ;;  %v5190_v32 = vld [vmem:[#allocation62_spill] sm:$0xff] }
 0x16d   :  { %812 = vmatpush2.bf16.msra.mxu0 %v5180_v36  ;;  %853 = vmatpush2.bf16.msra.mxu1 %v5181_v48  ;;  %v5191_v36 = vld [vmem:[#allocation63_spill] sm:$0xff] }
 0x16e   :  { %813 = vmatprep.subr.bf16.mxu0 %v5182_v20  ;;  %854 = vmatprep.subr.bf16.mxu1 %v5183_v19  ;;  %v5192_v20 = vld [vmem:[#allocation59_spill] sm:$0xff]  ;;  %v5197_v19 = vld [vmem:[#allocation68_spill] sm:$0xff] }
 0x16f   :  { %v657_v48 = vmul.f32 %v5192_v20, %v3796_v59 }
 0x171   :  { %814 = vmatpush2.bf16.msra.mxu0 %v5184_v62  ;;  %855 = vmatpush2.bf16.msra.mxu1 %v5185_v30  ;;  %v658_v62 = vmul.f32 %v5192_v20, %v3802_v24  ;;  %v659_v30 = vmul.f32 %v5192_v20, %v3805_v6  ;;  %v5195_v24 = vld [vmem:[#allocation66_spill] sm:$0xff]  ;;  %v5196_v6 = vld [vmem:[#allocation67_spill] sm:$0xff] }
 0x172   :  { %815 = vmatprep.subr.bf16.mxu0 %v5186_v3  ;;  %856 = vmatprep.subr.bf16.mxu1 %v5187_v8  ;;  %v660_v8 = vmul.f32 %v5192_v20, %v3808_v46 }
 0x175   :  { %816 = vmatpush2.bf16.msra.mxu0 %v5188_v60  ;;  %857 = vmatpush2.bf16.msra.mxu1 %v5189_v42  ;;  %v5193_v60 = vld [vmem:[#allocation65_spill] sm:$0xff]  ;;  %v5194_v42 = vld [vmem:[#allocation64_spill] sm:$0xff] }
 0x176   :  { %817 = vmatprep.subr.bf16.mxu0 %v5190_v32  ;;  %858 = vmatprep.subr.bf16.mxu1 %v5191_v36  ;;  %v665_v3 = vmul.f32 %v5193_v60, %v3814_v61  ;;  %v666_v32 = vmul.f32 %v5193_v60, %v3817_v58  ;;  %v667_v36 = vmul.f32 %v5193_v60, %v3820_v11  ;;  %v5198_v58 = vld [vmem:[#allocation69_spill] sm:$0xff]  ;;  %v5199_v11 = vld [vmem:[#allocation70_spill] sm:$0xff] }
 0x177   :  { %v668_v59 = vmul.f32 %v5193_v60, %v3825_v25  ;;  %v5201_v25 = vld [vmem:[#allocation3_spill] sm:$0xff]  ;;  %v385_v60 = vld [vmem:[%s4882_s5] sm:$0xf] }
 0x178   :  { %v669_v46 = vadd.f32 %v665_v3, %v657_v48  ;;  %v4075_v20 = vadd.f32 %v667_v36, %v659_v30  ;;  %v670_v61 = vadd.f32 %v666_v32, %v658_v62  ;;  %v4090_v30 = vrot.slane %v385_v60, %v3752_v55 }
 0x179   :  { %818 = vmatpush2.bf16.msra.mxu0 %v5194_v42  ;;  %859 = vmatpush2.bf16.msra.mxu1 %v5195_v24  ;;  %v4077_v54 = vadd.f32 %v668_v59, %v660_v8  ;;  %v4099_v24 = vrot.slane %v385_v60, %v3765_v5 }
 0x17a   :  { %819 = vmatprep.subr.bf16.mxu0 %v5196_v6  ;;  %860 = vmatprep.subr.bf16.mxu1 %v5197_v19  ;;  %v4087_v19 = vrot.slane %v385_v60, %v3750_v10  ;;  %5203 = vst [vmem:[#allocation5_spill] sm:$0xff] %v4090_v30  ;;  %v4095_v10 = vrot.slane %v385_v60, %v3754_v43 }
 0x17b   :  { %5205 = vst [vmem:[#allocation7_spill] sm:$0xff] %v4099_v24  ;;  %v674_v5 = vadd.f32 %v670_v61, %v3942_v15  ;;  %v675_v61 = vadd.f32 %v4075_v20, %v3951_v2 }
 0x17c   :  { %5202 = vst [vmem:[#allocation4_spill] sm:$0xff] %v4087_v19  ;;  %5204 = vst [vmem:[#allocation6_spill] sm:$0xff] %v4095_v10 }
 0x17d   :  { %820 = vmatpush2.bf16.msra.mxu0 %v5198_v58  ;;  %861 = vmatpush2.bf16.msra.mxu1 %v5199_v11 }
 0x17e   :  { %922 = vmatprep.subr.bf16.mxu0 %v5200_v56  ;;  %963 = vmatprep.subr.bf16.mxu1 %v5201_v25 }
 0x1e0   :  { %v578_v62 = vpop.f32.mrf.mxu0  ;;  %v619_v3 = vpop.f32.mrf.mxu1 }
 0x1e1   :  { %v579_v8 = vadd.f32 %v578_v62, %v4087_v19  ;;  %v620_v55 = vadd.f32 %v619_v3, %v4095_v10 }
 0x1e2   :  { %v580_v32 = vpop.f32.mrf.mxu0  ;;  %v621_v36 = vpop.f32.mrf.mxu1 }
 0x1e3   :  { %v2467_v48 = vmul.f32 -1.442695, %v579_v8  ;;  %v581_v59 = vadd.f32 %v580_v32, %v4090_v30  ;;  %v2469_v62 = vmul.f32 -1.442695, %v620_v55  ;;  %v622_v8 = vadd.f32 %v621_v36, %v4099_v24 }
 0x1e4   :  { %v582_v25 = vpop.f32.mrf.mxu0  ;;  %v623_v56 = vpop.f32.mrf.mxu1 }
 0x1e5   :  { %2597 = vpow2.f32 %v2467_v48  ;;  %v2468_v11 = vmul.f32 -1.442695, %v581_v59 }
 0x1e6   :  { %v583_v58 = vpop.f32.mrf.mxu0  ;;  %v624_v6 = vpop.f32.mrf.mxu1 }
 0x1e7   :  { %2599 = vpow2.f32 %v2468_v11  ;;  %v673_v6 = vadd.f32 %v669_v46, %v3939_v47 }
 0x1e8   :  { %2601 = vpow2.f32 %v2469_v62 }
 0x1f2   :  { %v2598_v19 = vpop.eup %2597 }
 0x1f3   :  { %v635_v32 = vadd.f32 1.0, %v2598_v19 }
 0x1f4   :  { %v2600_v25 = vpop.eup %2599 }
 0x1f5   :  { %2603 = vrcp.f32 %v635_v32  ;;  %v636_v56 = vadd.f32 1.0, %v2600_v25  ;;  %v2602_v11 = vpop.eup %2601 }
 0x1f6   :  { %2605 = vtanh.f32 %v622_v8  ;;  %v637_v62 = vadd.f32 1.0, %v2602_v11 }
 0x1f7   :  { %2607 = vrcp.f32 %v636_v56 }
 0x200   :  { %v711_v43 = vpop.f32.mrf.mxu0  ;;  %v752_v58 = vpop.f32.mrf.mxu1 }
 0x201   :  { %v759_v3 = vadd.f32 %v711_v43, %v673_v6  ;;  %v761_v6 = vadd.f32 %v752_v58, %v675_v61  ;;  %v676_v43 = vadd.f32 %v4077_v54, %v3959_v28 }
 0x202   :  { %v2604_v60 = vpop.eup %2603  ;;  %v713_v48 = vpop.f32.mrf.mxu0 }
 0x203   :  { %v754_v59 = vpop.f32.mrf.mxu1  ;;  %v2606_v55 = vpop.eup %2605  ;;  %v2471_v36 = vmul.f32 -1.442695, %v759_v3  ;;  %v760_v19 = vadd.f32 %v713_v48, %v674_v5  ;;  %v2473_v11 = vmul.f32 -1.442695, %v761_v6  ;;  %v5207_v6 = vld [vmem:[#allocation9_spill] sm:$0xff] }
 0x204   :  { %v2608_v24 = vpop.eup %2607  ;;  %v715_v32 = vpop.f32.mrf.mxu0  ;;  %v646_v56 = vmul.f32 %v2606_v55, %v2604_v60 }
 0x205   :  { %v756_v25 = vpop.f32.mrf.mxu1  ;;  %v645_v8 = vmul.f32 0.0, %v2608_v24  ;;  %2609 = vpow2.f32 %v2471_v36  ;;  %v2472_v46 = vmul.f32 -1.442695, %v760_v19  ;;  %v762_v24 = vadd.f32 %v754_v59, %v676_v43  ;;  %v5208_v43 = vld [vmem:[#allocation10_spill] sm:$0xff] }
 0x206   :  { %v716_v47 = vpop.f32.mrf.mxu0 }
 0x207   :  { %v757_v10 = vpop.f32.mrf.mxu1  ;;  %v4104_v30 = vadd.f32 %v646_v56, %v645_v8  ;;  %2611 = vpow2.f32 %v2472_v46 }
 0x208   :  { %2613 = vrcp.f32 %v637_v62 }
 0x209   :  { %2615 = vtanh.f32 %v4104_v30 }
 0x20a   :  { %2617 = vpow2.f32 %v2473_v11  ;;  %v5209_v11 = vld [vmem:[#allocation11_spill] sm:$0xff] }
 0x20b   :  { %2619 = vtanh.f32 %v762_v24  ;;  %v5210_v24 = vld [vmem:[#allocation12_spill] sm:$0xff] }
 0x212   :  { %v2610_v3 = vpop.eup %2609 }
 0x213   :  { %v772_v5 = vadd.f32 1.0, %v2610_v3  ;;  %v5211_v3 = vld [vmem:[#allocation13_spill] sm:$0xff] }
 0x214   :  { %v2612_v47 = vpop.eup %2611 }
 0x215   :  { %v2614_v10 = vpop.eup %2613  ;;  %2621 = vrcp.f32 %v772_v5  ;;  %v773_v60 = vadd.f32 1.0, %v2612_v47  ;;  %v5212_v5 = vld [vmem:[#allocation14_spill] sm:$0xff]  ;;  %v5213_v47 = vld [vmem:[#allocation15_spill] sm:$0xff] }
 0x216   :  { %v2616_v48 = vpop.eup %2615 }
 0x217   :  { %2623 = vrcp.f32 %v773_v60  ;;  %v649_v55 = vmul.f32 %v2616_v48, %v2614_v10  ;;  %v2618_v58 = vpop.eup %2617  ;;  %v5214_v10 = vld [vmem:[#allocation16_spill] sm:$0xff]  ;;  %v5215_v60 = vld [vmem:[#allocation17_spill] sm:$0xff]  ;;  %v5216_v48 = vld [vmem:[#allocation18_spill] sm:$0xff] }
 0x218   :  { %v2620_v36 = vpop.eup %2619  ;;  %v774_v59 = vadd.f32 1.0, %v2618_v58  ;;  %v5219_v58 = vld [vmem:[#allocation21_spill] sm:$0xff] }
 0x219   :  { %v788_v20 = vpack.c.bf16 %v649_v55, %v649_v55  ;;  %v5217_v55 = vld [vmem:[#allocation19_spill] sm:$0xff] }
 0x21a   :  { %2625 = vrcp.f32 %v774_v59  ;;  %v5224_v59 = vld [vmem:[#allocation26_spill] sm:$0xff] }
 0x21b   :  { %821 = vmatprep.mubr.bf16.mxu0 %v788_v20  ;;  %862 = vmatprep.mubr.bf16.mxu1 %v788_v20  ;;  %v5218_v20 = vld [vmem:[#allocation20_spill] sm:$0xff] }
 0x222   :  { %v2622_v19 = vpop.eup %2621 }
 0x223   :  { %v783_v54 = vmul.f32 %v2622_v19, %v2620_v36  ;;  %v5220_v36 = vld [vmem:[#allocation22_spill] sm:$0xff]  ;;  %v5221_v19 = vld [vmem:[#allocation23_spill] sm:$0xff] }
 0x224   :  { %v2624_v62 = vpop.eup %2623 }
 0x225   :  { %v782_v32 = vmul.f32 %v2624_v62, %v3962_v34  ;;  %v5206_v34 = vld [vmem:[#allocation8_spill] sm:$0xff]  ;;  %v5223_v62 = vld [vmem:[#allocation25_spill] sm:$0xff] }
 0x227   :  { %v4112_v25 = vadd.f32 %v783_v54, %v782_v32  ;;  %v2626_v8 = vpop.eup %2625  ;;  %v5222_v54 = vld [vmem:[#allocation24_spill] sm:$0xff]  ;;  %v5225_v32 = vld [vmem:[#allocation27_spill] sm:$0xff] }
 0x229   :  { %2627 = vtanh.f32 %v4112_v25 }
 0x236   :  { %v2628_v56 = vpop.eup %2627 }
 0x237   :  { %v786_v46 = vmul.f32 %v2628_v56, %v2626_v8  ;;  %v5226_v8 = vld [vmem:[#allocation28_spill] sm:$0xff]  ;;  %v5227_v56 = vld [vmem:[#allocation29_spill] sm:$0xff] }
 0x239   :  { %v787_v61 = vpack.c.bf16 %v786_v46, %v786_v46  ;;  %v5228_v46 = vld [vmem:[#allocation30_spill] sm:$0xff] }
 0x23b   :  { %822 = vmatmul.mubr.bf16.vlgmr.msra.gmra.mxu0 %v787_v61  ;;  %863 = vmatmul.mubr.bf16.vlgmr.msra.gmra.mxu1 %v787_v61 }
 0x23c   :  { %923 = vmatpush1.bf16.msra.mxu0 %v2912_v9  ;;  %964 = vmatpush1.bf16.msra.mxu1 %v2924_v13 }
 0x23d   :  { %924 = vmatprep.subr.bf16.mxu0 %v2937_v17  ;;  %965 = vmatprep.subr.bf16.mxu1 %v2939_v18 }
 0x23e   :  { %954 = vmatprep.mubr.bf16.mxu0 %v5132_v33  ;;  %995 = vmatprep.mubr.bf16.mxu1 %v5132_v33 }
 0x240   :  { %925 = vmatpush1.bf16.msra.mxu0 %v2951_v22  ;;  %966 = vmatpush1.bf16.msra.mxu1 %v2964_v26 }
 0x241   :  { %926 = vmatprep.subr.bf16.mxu0 %v2966_v27  ;;  %967 = vmatprep.subr.bf16.mxu1 %v2977_v31 }
 0x244   :  { %927 = vmatpush1.bf16.msra.mxu0 %v2989_v35  ;;  %968 = vmatpush1.bf16.msra.mxu1 %v3002_v39 }
 0x245   :  { %928 = vmatprep.subr.bf16.mxu0 %v3004_v40  ;;  %969 = vmatprep.subr.bf16.mxu1 %v3016_v44 }
 0x248   :  { %929 = vmatpush1.bf16.msra.mxu0 %v3037_v51  ;;  %970 = vmatpush1.bf16.msra.mxu1 %v3041_v52 }
 0x249   :  { %930 = vmatprep.subr.bf16.mxu0 %v3043_v53  ;;  %971 = vmatprep.subr.bf16.mxu1 %v3055_v57 }
 0x24c   :  { %931 = vmatpush1.bf16.msra.mxu0 %v3073_v63  ;;  %972 = vmatpush1.bf16.msra.mxu1 %v3077_v0 }
 0x24d   :  { %932 = vmatprep.subr.bf16.mxu0 %v3079_v1  ;;  %973 = vmatprep.subr.bf16.mxu1 %v3091_v7 }
 0x250   :  { %933 = vmatpush1.bf16.msra.mxu0 %v3109_v16  ;;  %974 = vmatpush1.bf16.msra.mxu1 %v3119_v21 }
 0x251   :  { %934 = vmatprep.subr.bf16.mxu0 %v3121_v23  ;;  %975 = vmatprep.subr.bf16.mxu1 %v3133_v29 }
 0x254   :  { %935 = vmatpush1.bf16.msra.mxu0 %v3151_v37  ;;  %976 = vmatpush1.bf16.msra.mxu1 %v3155_v38 }
 0x255   :  { %936 = vmatprep.subr.bf16.mxu0 %v3157_v41  ;;  %977 = vmatprep.subr.bf16.mxu1 %v3166_v45 }
 0x258   :  { %937 = vmatpush1.bf16.msra.mxu0 %v3175_v49  ;;  %978 = vmatpush1.bf16.msra.mxu1 %v5133_v50 }
 0x259   :  { %1034 = vmatprep.subr.bf16.mxu0 %v5134_v12  ;;  %1075 = vmatprep.subr.bf16.mxu1 %v5135_v4 }
 0x25b   :  { %955 = vmatmul.mubr.bf16.vlgmr.msra.gmra.mxu0 %v787_v61  ;;  %996 = vmatmul.mubr.bf16.vlgmr.msra.gmra.mxu1 %v787_v61  ;;  %v5229_v61 = vld [vmem:[#allocation31_spill] sm:$0xff] }
 0x25c   :  { %1035 = vmatpush1.bf16.msra.mxu0 %v5136_v14  ;;  %1076 = vmatpush1.bf16.msra.mxu1 %v5206_v34 }
 0x25d   :  { %1036 = vmatprep.subr.bf16.mxu0 %v5207_v6  ;;  %1077 = vmatprep.subr.bf16.mxu1 %v5208_v43 }
 0x260   :  { %1037 = vmatpush1.bf16.msra.mxu0 %v5209_v11  ;;  %1078 = vmatpush1.bf16.msra.mxu1 %v5210_v24 }
 0x261   :  { %1038 = vmatprep.subr.bf16.mxu0 %v5211_v3  ;;  %1079 = vmatprep.subr.bf16.mxu1 %v5212_v5  ;;  %v5271_v5 = vld [vmem:[#allocation7_spill] sm:$0xff] }
 0x264   :  { %1039 = vmatpush1.bf16.msra.mxu0 %v5213_v47  ;;  %1080 = vmatpush1.bf16.msra.mxu1 %v5214_v10 }
 0x265   :  { %1040 = vmatprep.subr.bf16.mxu0 %v5215_v60  ;;  %1081 = vmatprep.subr.bf16.mxu1 %v5216_v48 }
 0x268   :  { %1041 = vmatpush1.bf16.msra.mxu0 %v5217_v55  ;;  %1082 = vmatpush1.bf16.msra.mxu1 %v5218_v20 }
 0x269   :  { %1042 = vmatprep.subr.bf16.mxu0 %v5219_v58  ;;  %1083 = vmatprep.subr.bf16.mxu1 %v5220_v36  ;;  %v5230_v58 = vld [vmem:[#allocation32_spill] sm:$0xff]  ;;  %v5231_v36 = vld [vmem:[#allocation33_spill] sm:$0xff] }
 0x26c   :  { %1043 = vmatpush1.bf16.msra.mxu0 %v5221_v19  ;;  %1084 = vmatpush1.bf16.msra.mxu1 %v5222_v54  ;;  %v5232_v19 = vld [vmem:[#allocation34_spill] sm:$0xff]  ;;  %v5233_v54 = vld [vmem:[#allocation35_spill] sm:$0xff] }
 0x26d   :  { %1044 = vmatprep.subr.bf16.mxu0 %v5223_v62  ;;  %1085 = vmatprep.subr.bf16.mxu1 %v5224_v59  ;;  %v5234_v62 = vld [vmem:[#allocation36_spill] sm:$0xff]  ;;  %v5235_v59 = vld [vmem:[#allocation37_spill] sm:$0xff] }
 0x270   :  { %1045 = vmatpush1.bf16.msra.mxu0 %v5225_v32  ;;  %1086 = vmatpush1.bf16.msra.mxu1 %v5226_v8  ;;  %v5236_v32 = vld [vmem:[#allocation38_spill] sm:$0xff]  ;;  %v5237_v8 = vld [vmem:[#allocation39_spill] sm:$0xff] }
 0x271   :  { %1046 = vmatprep.subr.bf16.mxu0 %v5227_v56  ;;  %1087 = vmatprep.subr.bf16.mxu1 %v5228_v46  ;;  %v5238_v56 = vld [vmem:[#allocation40_spill] sm:$0xff]  ;;  %v5239_v46 = vld [vmem:[#allocation41_spill] sm:$0xff] }
 0x274   :  { %1047 = vmatpush1.bf16.msra.mxu0 %v5229_v61  ;;  %1088 = vmatpush1.bf16.msra.mxu1 %v5230_v58  ;;  %v5240_v61 = vld [vmem:[#allocation42_spill] sm:$0xff]  ;;  %v5241_v58 = vld [vmem:[#allocation43_spill] sm:$0xff] }
 0x275   :  { %1048 = vmatprep.subr.bf16.mxu0 %v5231_v36  ;;  %1089 = vmatprep.subr.bf16.mxu1 %v5232_v19  ;;  %v5242_v36 = vld [vmem:[#allocation44_spill] sm:$0xff]  ;;  %v5243_v19 = vld [vmem:[#allocation45_spill] sm:$0xff] }
 0x278   :  { %1049 = vmatpush1.bf16.msra.mxu0 %v5233_v54  ;;  %1090 = vmatpush1.bf16.msra.mxu1 %v5234_v62  ;;  %v5244_v54 = vld [vmem:[#allocation46_spill] sm:$0xff]  ;;  %v5245_v62 = vld [vmem:[#allocation47_spill] sm:$0xff] }
 0x279   :  { %1050 = vmatprep.subr.bf16.mxu0 %v5235_v59  ;;  %1091 = vmatprep.subr.bf16.mxu1 %v5236_v32  ;;  %v5246_v59 = vld [vmem:[#allocation48_spill] sm:$0xff]  ;;  %v5247_v32 = vld [vmem:[#allocation49_spill] sm:$0xff] }
 0x27c   :  { %1051 = vmatpush2.bf16.msra.mxu0 %v5237_v8  ;;  %1092 = vmatpush2.bf16.msra.mxu1 %v5238_v56  ;;  %v5248_v8 = vld [vmem:[#allocation50_spill] sm:$0xff]  ;;  %v5249_v56 = vld [vmem:[#allocation51_spill] sm:$0xff] }
 0x27d   :  { %1052 = vmatprep.subr.bf16.mxu0 %v5239_v46  ;;  %1093 = vmatprep.subr.bf16.mxu1 %v5240_v61  ;;  %v5250_v46 = vld [vmem:[#allocation52_spill] sm:$0xff]  ;;  %v5251_v61 = vld [vmem:[#allocation53_spill] sm:$0xff] }
 0x280   :  { %1053 = vmatpush2.bf16.msra.mxu0 %v5241_v58  ;;  %1094 = vmatpush2.bf16.msra.mxu1 %v5242_v36  ;;  %v5252_v58 = vld [vmem:[#allocation54_spill] sm:$0xff]  ;;  %v5253_v36 = vld [vmem:[#allocation55_spill] sm:$0xff] }
 0x281   :  { %1054 = vmatprep.subr.bf16.mxu0 %v5243_v19  ;;  %1095 = vmatprep.subr.bf16.mxu1 %v5244_v54  ;;  %v5254_v19 = vld [vmem:[#allocation56_spill] sm:$0xff]  ;;  %v5255_v54 = vld [vmem:[#allocation57_spill] sm:$0xff] }
 0x284   :  { %1055 = vmatpush2.bf16.msra.mxu0 %v5245_v62  ;;  %1096 = vmatpush2.bf16.msra.mxu1 %v5246_v59  ;;  %v5256_v62 = vld [vmem:[#allocation58_spill] sm:$0xff]  ;;  %v5257_v59 = vld [vmem:[#allocation60_spill] sm:$0xff] }
 0x285   :  { %1056 = vmatprep.subr.bf16.mxu0 %v5247_v32  ;;  %1097 = vmatprep.subr.bf16.mxu1 %v5248_v8  ;;  %v5258_v32 = vld [vmem:[#allocation61_spill] sm:$0xff]  ;;  %v5259_v8 = vld [vmem:[#allocation62_spill] sm:$0xff] }
 0x288   :  { %1057 = vmatpush2.bf16.msra.mxu0 %v5249_v56  ;;  %1098 = vmatpush2.bf16.msra.mxu1 %v5250_v46  ;;  %v5260_v56 = vld [vmem:[#allocation63_spill] sm:$0xff]  ;;  %v5268_v46 = vld [vmem:[#allocation4_spill] sm:$0xff] }
 0x289   :  { %1058 = vmatprep.subr.bf16.mxu0 %v5251_v61  ;;  %1099 = vmatprep.subr.bf16.mxu1 %v5252_v58  ;;  %v5261_v61 = vld [vmem:[#allocation66_spill] sm:$0xff]  ;;  %v5262_v58 = vld [vmem:[#allocation67_spill] sm:$0xff] }
 0x28c   :  { %1059 = vmatpush2.bf16.msra.mxu0 %v5253_v36  ;;  %1100 = vmatpush2.bf16.msra.mxu1 %v5254_v19  ;;  %v5263_v36 = vld [vmem:[#allocation68_spill] sm:$0xff]  ;;  %v5264_v19 = vld [vmem:[#allocation69_spill] sm:$0xff] }
 0x28d   :  { %1060 = vmatprep.subr.bf16.mxu0 %v5255_v54  ;;  %1101 = vmatprep.subr.bf16.mxu1 %v5256_v62  ;;  %v5265_v54 = vld [vmem:[#allocation70_spill] sm:$0xff] }
 0x28e   :  { %v5266_v62 = vld [vmem:[#allocation2_spill] sm:$0xff] }
 0x290   :  { %1061 = vmatpush2.bf16.msra.mxu0 %v5257_v59  ;;  %1102 = vmatpush2.bf16.msra.mxu1 %v5258_v32  ;;  %v5267_v59 = vld [vmem:[#allocation3_spill] sm:$0xff] }
 0x291   :  { %1062 = vmatprep.subr.bf16.mxu0 %v5259_v8  ;;  %1103 = vmatprep.subr.bf16.mxu1 %v5260_v56 }
 0x294   :  { %1063 = vmatpush2.bf16.msra.mxu0 %v5194_v42  ;;  %1104 = vmatpush2.bf16.msra.mxu1 %v5261_v61  ;;  %v5269_v61 = vld [vmem:[#allocation5_spill] sm:$0xff] }
 0x295   :  { %1064 = vmatprep.subr.bf16.mxu0 %v5262_v58  ;;  %1105 = vmatprep.subr.bf16.mxu1 %v5263_v36 }
 0x298   :  { %1065 = vmatpush2.bf16.msra.mxu0 %v5264_v19  ;;  %1106 = vmatpush2.bf16.msra.mxu1 %v5265_v54  ;;  %v5270_v54 = vld [vmem:[#allocation6_spill] sm:$0xff] }
 0x299   :  { %1167 = vmatprep.subr.bf16.mxu0 %v5266_v62  ;;  %1208 = vmatprep.subr.bf16.mxu1 %v5267_v59 }
 0x2fb   :  { %v823_v32 = vpop.f32.mrf.mxu0  ;;  %v864_v8 = vpop.f32.mrf.mxu1 }
 0x2fc   :  { %v824_v56 = vadd.f32 %v823_v32, %v5268_v46  ;;  %v865_v62 = vadd.f32 %v864_v8, %v5270_v54 }
 0x2fd   :  { %v825_v20 = vpop.f32.mrf.mxu0  ;;  %v866_v42 = vpop.f32.mrf.mxu1 }
 0x2fe   :  { %v2474_v55 = vmul.f32 -1.442695, %v824_v56  ;;  %v826_v48 = vadd.f32 %v825_v20, %v5269_v61  ;;  %v2476_v47 = vmul.f32 -1.442695, %v865_v62  ;;  %v867_v3 = vadd.f32 %v866_v42, %v5271_v5  ;;  %v5272_v20 = vld [vmem:[#allocation95_spill] sm:$0xff] }
 0x2ff   :  { %v827_v58 = vpop.f32.mrf.mxu0  ;;  %v868_v60 = vpop.f32.mrf.mxu1 }
 0x300   :  { %2629 = vpow2.f32 %v2474_v55  ;;  %v2475_v36 = vmul.f32 -1.442695, %v826_v48  ;;  %v5273_v60 = vld [vmem:[#allocation71_spill] sm:$0xff] }
 0x301   :  { %v828_v19 = vpop.f32.mrf.mxu0  ;;  %v869_v10 = vpop.f32.mrf.mxu1  ;;  %v918_v55 = vadd.f32 %v5273_v60, %v5272_v20 }
 0x302   :  { %2631 = vpow2.f32 %v2475_v36  ;;  %v5274_v19 = vld [vmem:[#allocation73_spill] sm:$0xff] }
 0x303   :  { %2633 = vpow2.f32 %v2476_v47  ;;  %v919_v62 = vadd.f32 %v5274_v19, %v3942_v15  ;;  %v5275_v19 = vld [vmem:[#allocation72_spill] sm:$0xff] }
 0x304   :  { %v920_v15 = vadd.f32 %v5275_v19, %v3951_v2 }
 0x30d   :  { %v2630_v59 = vpop.eup %2629 }
 0x30e   :  { %v880_v24 = vadd.f32 1.0, %v2630_v59 }
 0x30f   :  { %v2632_v32 = vpop.eup %2631 }
 0x310   :  { %2635 = vrcp.f32 %v880_v24  ;;  %v881_v56 = vadd.f32 1.0, %v2632_v32  ;;  %v2634_v10 = vpop.eup %2633 }
 0x311   :  { %2637 = vtanh.f32 %v867_v3  ;;  %v882_v32 = vadd.f32 1.0, %v2634_v10  ;;  %v5276_v10 = vld [vmem:[#allocation74_spill] sm:$0xff] }
 0x312   :  { %2639 = vrcp.f32 %v881_v56 }
 0x31b   :  { %v956_v48 = vpop.f32.mrf.mxu0  ;;  %v997_v58 = vpop.f32.mrf.mxu1 }
 0x31c   :  { %v1004_v36 = vadd.f32 %v956_v48, %v918_v55 }
 0x31d   :  { %v2636_v8 = vpop.eup %2635  ;;  %v958_v54 = vpop.f32.mrf.mxu0 }
 0x31e   :  { %v999_v42 = vpop.f32.mrf.mxu1  ;;  %v2638_v59 = vpop.eup %2637  ;;  %v2478_v5 = vmul.f32 -1.442695, %v1004_v36  ;;  %v1005_v47 = vadd.f32 %v958_v54, %v919_v62  ;;  %v1006_v54 = vadd.f32 %v997_v58, %v920_v15  ;;  %v921_v36 = vadd.f32 %v5276_v10, %v3959_v28 }
 0x31f   :  { %v2640_v24 = vpop.eup %2639  ;;  %v960_v3 = vpop.f32.mrf.mxu0  ;;  %v891_v60 = vmul.f32 %v2638_v59, %v2636_v8 }
 0x320   :  { %v1001_v56 = vpop.f32.mrf.mxu1  ;;  %v890_v61 = vmul.f32 %v2640_v24, %v4104_v30  ;;  %2641 = vpow2.f32 %v2478_v5  ;;  %v2479_v20 = vmul.f32 -1.442695, %v1005_v47  ;;  %v2480_v62 = vmul.f32 -1.442695, %v1006_v54 }
 0x321   :  { %v961_v46 = vpop.f32.mrf.mxu0  ;;  %v1007_v30 = vadd.f32 %v999_v42, %v921_v36 }
 0x322   :  { %v1002_v55 = vpop.f32.mrf.mxu1  ;;  %v4222_v48 = vadd.f32 %v891_v60, %v890_v61  ;;  %2643 = vpow2.f32 %v2479_v20 }
 0x323   :  { %2645 = vrcp.f32 %v882_v32 }
 0x324   :  { %2647 = vtanh.f32 %v4222_v48 }
 0x325   :  { %2649 = vpow2.f32 %v2480_v62  ;;  %v5278_v62 = vld [vmem:[#allocation13_spill] sm:$0xff] }
 0x326   :  { %2651 = vtanh.f32 %v1007_v30  ;;  %v5279_v30 = vld [vmem:[#allocation14_spill] sm:$0xff] }
 0x32d   :  { %v2642_v8 = vpop.eup %2641 }
 0x32e   :  { %v1017_v5 = vadd.f32 1.0, %v2642_v8  ;;  %v5280_v8 = vld [vmem:[#allocation15_spill] sm:$0xff] }
 0x32f   :  { %v2644_v46 = vpop.eup %2643 }
 0x330   :  { %v2646_v61 = vpop.eup %2645  ;;  %2653 = vrcp.f32 %v1017_v5  ;;  %v1018_v20 = vadd.f32 1.0, %v2644_v46  ;;  %v5281_v5 = vld [vmem:[#allocation16_spill] sm:$0xff]  ;;  %v5282_v46 = vld [vmem:[#allocation17_spill] sm:$0xff] }
 0x331   :  { %v2648_v59 = vpop.eup %2647 }
 0x332   :  { %2655 = vrcp.f32 %v1018_v20  ;;  %v894_v47 = vmul.f32 %v2648_v59, %v2646_v61  ;;  %v2650_v15 = vpop.eup %2649  ;;  %v5283_v61 = vld [vmem:[#allocation18_spill] sm:$0xff]  ;;  %v5284_v20 = vld [vmem:[#allocation19_spill] sm:$0xff]  ;;  %v5285_v59 = vld [vmem:[#allocation20_spill] sm:$0xff] }
 0x333   :  { %v2652_v58 = vpop.eup %2651  ;;  %v1019_v42 = vadd.f32 1.0, %v2650_v15  ;;  %v5288_v15 = vld [vmem:[#allocation23_spill] sm:$0xff] }
 0x334   :  { %v1033_v24 = vpack.c.bf16 %v894_v47, %v894_v47  ;;  %v5286_v47 = vld [vmem:[#allocation21_spill] sm:$0xff] }
 0x335   :  { %2657 = vrcp.f32 %v1019_v42  ;;  %v5293_v42 = vld [vmem:[#allocation28_spill] sm:$0xff] }
 0x336   :  { %1066 = vmatprep.mubr.bf16.mxu0 %v1033_v24  ;;  %1107 = vmatprep.mubr.bf16.mxu1 %v1033_v24  ;;  %v5287_v24 = vld [vmem:[#allocation22_spill] sm:$0xff] }
 0x33d   :  { %v2654_v32 = vpop.eup %2653 }
 0x33e   :  { %v1028_v3 = vmul.f32 %v2654_v32, %v2652_v58  ;;  %v5289_v58 = vld [vmem:[#allocation24_spill] sm:$0xff]  ;;  %v5290_v32 = vld [vmem:[#allocation25_spill] sm:$0xff] }
 0x33f   :  { %v2656_v56 = vpop.eup %2655 }
 0x340   :  { %v1027_v60 = vmul.f32 %v2656_v56, %v4112_v25  ;;  %v5277_v25 = vld [vmem:[#allocation12_spill] sm:$0xff]  ;;  %v5292_v56 = vld [vmem:[#allocation27_spill] sm:$0xff] }
 0x342   :  { %v4230_v55 = vadd.f32 %v1028_v3, %v1027_v60  ;;  %v2658_v19 = vpop.eup %2657  ;;  %v5291_v3 = vld [vmem:[#allocation26_spill] sm:$0xff]  ;;  %v5294_v60 = vld [vmem:[#allocation29_spill] sm:$0xff] }
 0x344   :  { %2659 = vtanh.f32 %v4230_v55 }
 0x351   :  { %v2660_v54 = vpop.eup %2659 }
 0x352   :  { %v1031_v10 = vmul.f32 %v2660_v54, %v2658_v19  ;;  %v5295_v19 = vld [vmem:[#allocation30_spill] sm:$0xff]  ;;  %v5296_v54 = vld [vmem:[#allocation31_spill] sm:$0xff] }
 0x354   :  { %v1032_v36 = vpack.c.bf16 %v1031_v10, %v1031_v10  ;;  %v5297_v10 = vld [vmem:[#allocation32_spill] sm:$0xff] }
 0x356   :  { %1067 = vmatmul.mubr.bf16.vlgmr.msra.gmra.mxu0 %v1032_v36  ;;  %1108 = vmatmul.mubr.bf16.vlgmr.msra.gmra.mxu1 %v1032_v36 }
 0x357   :  { %1168 = vmatpush1.bf16.msra.mxu0 %v2912_v9  ;;  %1209 = vmatpush1.bf16.msra.mxu1 %v2924_v13 }
 0x358   :  { %1169 = vmatprep.subr.bf16.mxu0 %v2937_v17  ;;  %1210 = vmatprep.subr.bf16.mxu1 %v2939_v18 }
 0x359   :  { %1199 = vmatprep.mubr.bf16.mxu0 %v5132_v33  ;;  %1240 = vmatprep.mubr.bf16.mxu1 %v5132_v33 }
 0x35b   :  { %1170 = vmatpush1.bf16.msra.mxu0 %v2951_v22  ;;  %1211 = vmatpush1.bf16.msra.mxu1 %v2964_v26 }
 0x35c   :  { %1171 = vmatprep.subr.bf16.mxu0 %v2966_v27  ;;  %1212 = vmatprep.subr.bf16.mxu1 %v2977_v31 }
 0x35f   :  { %1172 = vmatpush1.bf16.msra.mxu0 %v2989_v35  ;;  %1213 = vmatpush1.bf16.msra.mxu1 %v3002_v39 }
 0x360   :  { %1173 = vmatprep.subr.bf16.mxu0 %v3004_v40  ;;  %1214 = vmatprep.subr.bf16.mxu1 %v3016_v44 }
 0x363   :  { %1174 = vmatpush1.bf16.msra.mxu0 %v3037_v51  ;;  %1215 = vmatpush1.bf16.msra.mxu1 %v3041_v52 }
 0x364   :  { %1175 = vmatprep.subr.bf16.mxu0 %v3043_v53  ;;  %1216 = vmatprep.subr.bf16.mxu1 %v3055_v57 }
 0x367   :  { %1176 = vmatpush1.bf16.msra.mxu0 %v3073_v63  ;;  %1217 = vmatpush1.bf16.msra.mxu1 %v3077_v0 }
 0x368   :  { %1177 = vmatprep.subr.bf16.mxu0 %v3079_v1  ;;  %1218 = vmatprep.subr.bf16.mxu1 %v3091_v7 }
 0x36b   :  { %1178 = vmatpush1.bf16.msra.mxu0 %v3109_v16  ;;  %1219 = vmatpush1.bf16.msra.mxu1 %v3119_v21 }
 0x36c   :  { %1179 = vmatprep.subr.bf16.mxu0 %v3121_v23  ;;  %1220 = vmatprep.subr.bf16.mxu1 %v3133_v29 }
 0x36f   :  { %1180 = vmatpush1.bf16.msra.mxu0 %v3151_v37  ;;  %1221 = vmatpush1.bf16.msra.mxu1 %v3155_v38 }
 0x370   :  { %1181 = vmatprep.subr.bf16.mxu0 %v3157_v41  ;;  %1222 = vmatprep.subr.bf16.mxu1 %v3166_v45 }
 0x373   :  { %1182 = vmatpush1.bf16.msra.mxu0 %v3175_v49  ;;  %1223 = vmatpush1.bf16.msra.mxu1 %v5133_v50 }
 0x374   :  { %1279 = vmatprep.subr.bf16.mxu0 %v5134_v12  ;;  %1320 = vmatprep.subr.bf16.mxu1 %v5135_v4 }
 0x376   :  { %1200 = vmatmul.mubr.bf16.vlgmr.msra.gmra.mxu0 %v1032_v36  ;;  %1241 = vmatmul.mubr.bf16.vlgmr.msra.gmra.mxu1 %v1032_v36  ;;  %v5298_v36 = vld [vmem:[#allocation33_spill] sm:$0xff] }
 0x377   :  { %1280 = vmatpush1.bf16.msra.mxu0 %v5136_v14  ;;  %1321 = vmatpush1.bf16.msra.mxu1 %v5206_v34 }
 0x378   :  { %1281 = vmatprep.subr.bf16.mxu0 %v5207_v6  ;;  %1322 = vmatprep.subr.bf16.mxu1 %v5208_v43 }
 0x37b   :  { %1282 = vmatpush1.bf16.msra.mxu0 %v5209_v11  ;;  %1323 = vmatpush1.bf16.msra.mxu1 %v5277_v25 }
 0x37c   :  { %1283 = vmatprep.subr.bf16.mxu0 %v5278_v62  ;;  %1324 = vmatprep.subr.bf16.mxu1 %v5279_v30 }
 0x37f   :  { %1284 = vmatpush1.bf16.msra.mxu0 %v5280_v8  ;;  %1325 = vmatpush1.bf16.msra.mxu1 %v5281_v5  ;;  %v5339_v8 = vld [vmem:[#allocation7_spill] sm:$0xff] }
 0x380   :  { %1285 = vmatprep.subr.bf16.mxu0 %v5282_v46  ;;  %1326 = vmatprep.subr.bf16.mxu1 %v5283_v61 }
 0x383   :  { %1286 = vmatpush1.bf16.msra.mxu0 %v5284_v20  ;;  %1327 = vmatpush1.bf16.msra.mxu1 %v5285_v59 }
 0x384   :  { %1287 = vmatprep.subr.bf16.mxu0 %v5286_v47  ;;  %1328 = vmatprep.subr.bf16.mxu1 %v5287_v24  ;;  %v5336_v24 = vld [vmem:[#allocation4_spill] sm:$0xff] }
 0x387   :  { %1288 = vmatpush1.bf16.msra.mxu0 %v5288_v15  ;;  %1329 = vmatpush1.bf16.msra.mxu1 %v5289_v58  ;;  %v5299_v15 = vld [vmem:[#allocation34_spill] sm:$0xff]  ;;  %v5300_v58 = vld [vmem:[#allocation35_spill] sm:$0xff] }
 0x388   :  { %1289 = vmatprep.subr.bf16.mxu0 %v5290_v32  ;;  %1330 = vmatprep.subr.bf16.mxu1 %v5291_v3  ;;  %v5301_v32 = vld [vmem:[#allocation36_spill] sm:$0xff]  ;;  %v5302_v3 = vld [vmem:[#allocation37_spill] sm:$0xff] }
 0x38b   :  { %1290 = vmatpush1.bf16.msra.mxu0 %v5292_v56  ;;  %1331 = vmatpush1.bf16.msra.mxu1 %v5293_v42  ;;  %v5303_v56 = vld [vmem:[#allocation38_spill] sm:$0xff]  ;;  %v5304_v42 = vld [vmem:[#allocation39_spill] sm:$0xff] }
 0x38c   :  { %1291 = vmatprep.subr.bf16.mxu0 %v5294_v60  ;;  %1332 = vmatprep.subr.bf16.mxu1 %v5295_v19  ;;  %v5305_v60 = vld [vmem:[#allocation40_spill] sm:$0xff]  ;;  %v5306_v19 = vld [vmem:[#allocation41_spill] sm:$0xff] }
 0x38f   :  { %1292 = vmatpush1.bf16.msra.mxu0 %v5296_v54  ;;  %1333 = vmatpush1.bf16.msra.mxu1 %v5297_v10  ;;  %v5307_v54 = vld [vmem:[#allocation42_spill] sm:$0xff]  ;;  %v5308_v10 = vld [vmem:[#allocation43_spill] sm:$0xff] }
 0x390   :  { %1293 = vmatprep.subr.bf16.mxu0 %v5298_v36  ;;  %1334 = vmatprep.subr.bf16.mxu1 %v5299_v15  ;;  %v5309_v36 = vld [vmem:[#allocation44_spill] sm:$0xff]  ;;  %v5310_v15 = vld [vmem:[#allocation45_spill] sm:$0xff] }
 0x393   :  { %1294 = vmatpush1.bf16.msra.mxu0 %v5300_v58  ;;  %1335 = vmatpush1.bf16.msra.mxu1 %v5301_v32  ;;  %v5311_v58 = vld [vmem:[#allocation46_spill] sm:$0xff]  ;;  %v5312_v32 = vld [vmem:[#allocation47_spill] sm:$0xff] }
 0x394   :  { %1295 = vmatprep.subr.bf16.mxu0 %v5302_v3  ;;  %1336 = vmatprep.subr.bf16.mxu1 %v5303_v56  ;;  %v5313_v3 = vld [vmem:[#allocation48_spill] sm:$0xff]  ;;  %v5314_v56 = vld [vmem:[#allocation49_spill] sm:$0xff] }
 0x397   :  { %1296 = vmatpush2.bf16.msra.mxu0 %v5304_v42  ;;  %1337 = vmatpush2.bf16.msra.mxu1 %v5305_v60  ;;  %v5315_v42 = vld [vmem:[#allocation50_spill] sm:$0xff]  ;;  %v5316_v60 = vld [vmem:[#allocation51_spill] sm:$0xff] }
 0x398   :  { %1297 = vmatprep.subr.bf16.mxu0 %v5306_v19  ;;  %1338 = vmatprep.subr.bf16.mxu1 %v5307_v54  ;;  %v5317_v19 = vld [vmem:[#allocation52_spill] sm:$0xff]  ;;  %v5318_v54 = vld [vmem:[#allocation53_spill] sm:$0xff] }
 0x39b   :  { %1298 = vmatpush2.bf16.msra.mxu0 %v5308_v10  ;;  %1339 = vmatpush2.bf16.msra.mxu1 %v5309_v36  ;;  %v5319_v10 = vld [vmem:[#allocation54_spill] sm:$0xff]  ;;  %v5320_v36 = vld [vmem:[#allocation55_spill] sm:$0xff] }
 0x39c   :  { %1299 = vmatprep.subr.bf16.mxu0 %v5310_v15  ;;  %1340 = vmatprep.subr.bf16.mxu1 %v5311_v58  ;;  %v5321_v15 = vld [vmem:[#allocation56_spill] sm:$0xff]  ;;  %v5322_v58 = vld [vmem:[#allocation57_spill] sm:$0xff] }
 0x39f   :  { %1300 = vmatpush2.bf16.msra.mxu0 %v5312_v32  ;;  %1341 = vmatpush2.bf16.msra.mxu1 %v5313_v3  ;;  %v5323_v32 = vld [vmem:[#allocation58_spill] sm:$0xff]  ;;  %v5324_v3 = vld [vmem:[#allocation60_spill] sm:$0xff] }
 0x3a0   :  { %1301 = vmatprep.subr.bf16.mxu0 %v5314_v56  ;;  %1342 = vmatprep.subr.bf16.mxu1 %v5315_v42  ;;  %v5325_v56 = vld [vmem:[#allocation61_spill] sm:$0xff]  ;;  %v5326_v42 = vld [vmem:[#allocation62_spill] sm:$0xff] }
 0x3a3   :  { %1302 = vmatpush2.bf16.msra.mxu0 %v5316_v60  ;;  %1343 = vmatpush2.bf16.msra.mxu1 %v5317_v19  ;;  %v5327_v60 = vld [vmem:[#allocation63_spill] sm:$0xff]  ;;  %v5328_v19 = vld [vmem:[#allocation64_spill] sm:$0xff] }
 0x3a4   :  { %1303 = vmatprep.subr.bf16.mxu0 %v5318_v54  ;;  %1344 = vmatprep.subr.bf16.mxu1 %v5319_v10  ;;  %v5329_v54 = vld [vmem:[#allocation66_spill] sm:$0xff]  ;;  %v5330_v10 = vld [vmem:[#allocation67_spill] sm:$0xff] }
 0x3a7   :  { %1304 = vmatpush2.bf16.msra.mxu0 %v5320_v36  ;;  %1345 = vmatpush2.bf16.msra.mxu1 %v5321_v15  ;;  %v5331_v36 = vld [vmem:[#allocation68_spill] sm:$0xff]  ;;  %v5332_v15 = vld [vmem:[#allocation69_spill] sm:$0xff] }
 0x3a8   :  { %1305 = vmatprep.subr.bf16.mxu0 %v5322_v58  ;;  %1346 = vmatprep.subr.bf16.mxu1 %v5323_v32  ;;  %v5333_v58 = vld [vmem:[#allocation70_spill] sm:$0xff] }
 0x3a9   :  { %v5334_v32 = vld [vmem:[#allocation2_spill] sm:$0xff] }
 0x3ab   :  { %1306 = vmatpush2.bf16.msra.mxu0 %v5324_v3  ;;  %1347 = vmatpush2.bf16.msra.mxu1 %v5325_v56  ;;  %v5335_v3 = vld [vmem:[#allocation3_spill] sm:$0xff] }
 0x3ac   :  { %1307 = vmatprep.subr.bf16.mxu0 %v5326_v42  ;;  %1348 = vmatprep.subr.bf16.mxu1 %v5327_v60 }
 0x3af   :  { %1308 = vmatpush2.bf16.msra.mxu0 %v5328_v19  ;;  %1349 = vmatpush2.bf16.msra.mxu1 %v5329_v54  ;;  %v5337_v54 = vld [vmem:[#allocation5_spill] sm:$0xff] }
 0x3b0   :  { %1309 = vmatprep.subr.bf16.mxu0 %v5330_v10  ;;  %1350 = vmatprep.subr.bf16.mxu1 %v5331_v36 }
 0x3b3   :  { %1310 = vmatpush2.bf16.msra.mxu0 %v5332_v15  ;;  %1351 = vmatpush2.bf16.msra.mxu1 %v5333_v58  ;;  %v5338_v58 = vld [vmem:[#allocation6_spill] sm:$0xff] }
 0x3b4   :  { %1412 = vmatprep.subr.bf16.mxu0 %v5334_v32  ;;  %1453 = vmatprep.subr.bf16.mxu1 %v5335_v3 }
 0x416   :  { %v1068_v56 = vpop.f32.mrf.mxu0  ;;  %v1109_v42 = vpop.f32.mrf.mxu1 }
 0x417   :  { %v1069_v60 = vadd.f32 %v1068_v56, %v5336_v24  ;;  %v1110_v32 = vadd.f32 %v1109_v42, %v5338_v58  ;;  %v5343_v42 = vld [vmem:[#allocation77_spill] sm:$0xff] }
 0x418   :  { %v1070_v47 = vpop.f32.mrf.mxu0  ;;  %v1111_v19 = vpop.f32.mrf.mxu1 }
 0x419   :  { %v2481_v59 = vmul.f32 -1.442695, %v1069_v60  ;;  %v1071_v20 = vadd.f32 %v1070_v47, %v5337_v54  ;;  %v2483_v5 = vmul.f32 -1.442695, %v1110_v32  ;;  %v1112_v30 = vadd.f32 %v1111_v19, %v5339_v8  ;;  %v5340_v47 = vld [vmem:[#allocation95_spill] sm:$0xff] }
 0x41a   :  { %v1072_v10 = vpop.f32.mrf.mxu0  ;;  %v1113_v61 = vpop.f32.mrf.mxu1 }
 0x41b   :  { %2661 = vpow2.f32 %v2481_v59  ;;  %v2482_v36 = vmul.f32 -1.442695, %v1071_v20  ;;  %v5341_v61 = vld [vmem:[#allocation75_spill] sm:$0xff] }
 0x41c   :  { %v1073_v15 = vpop.f32.mrf.mxu0  ;;  %v1114_v46 = vpop.f32.mrf.mxu1  ;;  %v1163_v59 = vadd.f32 %v5341_v61, %v5340_v47 }
 0x41d   :  { %2663 = vpow2.f32 %v2482_v36  ;;  %v5342_v36 = vld [vmem:[#allocation96_spill] sm:$0xff] }
 0x41e   :  { %2665 = vpow2.f32 %v2483_v5  ;;  %v1164_v32 = vadd.f32 %v5343_v42, %v5342_v36  ;;  %v5344_v42 = vld [vmem:[#allocation76_spill] sm:$0xff] }
 0x41f   :  { %v1165_v36 = vadd.f32 %v5344_v42, %v3951_v2 }
 0x428   :  { %v2662_v3 = vpop.eup %2661 }
 0x429   :  { %v1125_v62 = vadd.f32 1.0, %v2662_v3 }
 0x42a   :  { %v2664_v56 = vpop.eup %2663 }
 0x42b   :  { %2667 = vrcp.f32 %v1125_v62  ;;  %v1126_v60 = vadd.f32 1.0, %v2664_v56  ;;  %v2666_v46 = vpop.eup %2665 }
 0x42c   :  { %2669 = vtanh.f32 %v1112_v30  ;;  %v1127_v56 = vadd.f32 1.0, %v2666_v46  ;;  %v5345_v46 = vld [vmem:[#allocation78_spill] sm:$0xff] }
 0x42d   :  { %2671 = vrcp.f32 %v1126_v60 }
 0x436   :  { %v1201_v20 = vpop.f32.mrf.mxu0  ;;  %v1242_v15 = vpop.f32.mrf.mxu1 }
 0x437   :  { %v1249_v10 = vadd.f32 %v1201_v20, %v1163_v59 }
 0x438   :  { %v2668_v58 = vpop.eup %2667  ;;  %v1203_v54 = vpop.f32.mrf.mxu0 }
 0x439   :  { %v1244_v19 = vpop.f32.mrf.mxu1  ;;  %v2670_v3 = vpop.eup %2669  ;;  %v2485_v8 = vmul.f32 -1.442695, %v1249_v10  ;;  %v1250_v5 = vadd.f32 %v1203_v54, %v1164_v32  ;;  %v1251_v54 = vadd.f32 %v1242_v15, %v1165_v36  ;;  %v1166_v10 = vadd.f32 %v5345_v46, %v3959_v28 }
 0x43a   :  { %v2672_v62 = vpop.eup %2671  ;;  %v1205_v30 = vpop.f32.mrf.mxu0  ;;  %v1136_v61 = vmul.f32 %v2670_v3, %v2668_v58 }
 0x43b   :  { %v1246_v60 = vpop.f32.mrf.mxu1  ;;  %v1135_v24 = vmul.f32 %v2672_v62, %v4222_v48  ;;  %2673 = vpow2.f32 %v2485_v8  ;;  %v2486_v47 = vmul.f32 -1.442695, %v1250_v5  ;;  %v2487_v32 = vmul.f32 -1.442695, %v1251_v54 }
 0x43c   :  { %v1206_v25 = vpop.f32.mrf.mxu0  ;;  %v1252_v48 = vadd.f32 %v1244_v19, %v1166_v10 }
 0x43d   :  { %v1247_v59 = vpop.f32.mrf.mxu1  ;;  %v4340_v20 = vadd.f32 %v1136_v61, %v1135_v24  ;;  %2675 = vpow2.f32 %v2486_v47 }
 0x43e   :  { %2677 = vrcp.f32 %v1127_v56 }
 0x43f   :  { %2679 = vtanh.f32 %v4340_v20 }
 0x440   :  { %2681 = vpow2.f32 %v2487_v32  ;;  %v5347_v32 = vld [vmem:[#allocation13_spill] sm:$0xff] }
 0x441   :  { %2683 = vtanh.f32 %v1252_v48  ;;  %v5348_v48 = vld [vmem:[#allocation14_spill] sm:$0xff] }
 0x448   :  { %v2674_v58 = vpop.eup %2673 }
 0x449   :  { %v1262_v8 = vadd.f32 1.0, %v2674_v58  ;;  %v5349_v58 = vld [vmem:[#allocation15_spill] sm:$0xff] }
 0x44a   :  { %v2676_v25 = vpop.eup %2675 }
 0x44b   :  { %v2678_v24 = vpop.eup %2677  ;;  %2685 = vrcp.f32 %v1262_v8  ;;  %v1263_v47 = vadd.f32 1.0, %v2676_v25  ;;  %v5350_v8 = vld [vmem:[#allocation16_spill] sm:$0xff]  ;;  %v5351_v25 = vld [vmem:[#allocation17_spill] sm:$0xff] }
 0x44c   :  { %v2680_v3 = vpop.eup %2679 }
 0x44d   :  { %2687 = vrcp.f32 %v1263_v47  ;;  %v1139_v5 = vmul.f32 %v2680_v3, %v2678_v24  ;;  %v2682_v15 = vpop.eup %2681  ;;  %v5352_v24 = vld [vmem:[#allocation18_spill] sm:$0xff]  ;;  %v5353_v47 = vld [vmem:[#allocation19_spill] sm:$0xff]  ;;  %v5354_v3 = vld [vmem:[#allocation20_spill] sm:$0xff] }
 0x44e   :  { %v2684_v36 = vpop.eup %2683  ;;  %v1264_v19 = vadd.f32 1.0, %v2682_v15  ;;  %v5357_v15 = vld [vmem:[#allocation23_spill] sm:$0xff] }
 0x44f   :  { %v1278_v62 = vpack.c.bf16 %v1139_v5, %v1139_v5  ;;  %v5355_v5 = vld [vmem:[#allocation21_spill] sm:$0xff] }
 0x450   :  { %2689 = vrcp.f32 %v1264_v19  ;;  %v5362_v19 = vld [vmem:[#allocation28_spill] sm:$0xff] }
 0x451   :  { %1311 = vmatprep.mubr.bf16.mxu0 %v1278_v62  ;;  %1352 = vmatprep.mubr.bf16.mxu1 %v1278_v62  ;;  %v5356_v62 = vld [vmem:[#allocation22_spill] sm:$0xff] }
 0x458   :  { %v2686_v56 = vpop.eup %2685 }
 0x459   :  { %v1273_v30 = vmul.f32 %v2686_v56, %v2684_v36  ;;  %v5358_v36 = vld [vmem:[#allocation24_spill] sm:$0xff]  ;;  %v5359_v56 = vld [vmem:[#allocation25_spill] sm:$0xff] }
 0x45a   :  { %v2688_v60 = vpop.eup %2687 }
 0x45b   :  { %v1272_v61 = vmul.f32 %v2688_v60, %v4230_v55  ;;  %v5346_v55 = vld [vmem:[#allocation12_spill] sm:$0xff]  ;;  %v5361_v60 = vld [vmem:[#allocation27_spill] sm:$0xff] }
 0x45d   :  { %v4348_v59 = vadd.f32 %v1273_v30, %v1272_v61  ;;  %v2690_v42 = vpop.eup %2689  ;;  %v5360_v30 = vld [vmem:[#allocation26_spill] sm:$0xff]  ;;  %v5363_v61 = vld [vmem:[#allocation29_spill] sm:$0xff] }
 0x45f   :  { %2691 = vtanh.f32 %v4348_v59 }
 0x46c   :  { %v2692_v54 = vpop.eup %2691 }
 0x46d   :  { %v1276_v46 = vmul.f32 %v2692_v54, %v2690_v42  ;;  %v5364_v42 = vld [vmem:[#allocation30_spill] sm:$0xff]  ;;  %v5365_v54 = vld [vmem:[#allocation31_spill] sm:$0xff] }
 0x46f   :  { %v1277_v10 = vpack.c.bf16 %v1276_v46, %v1276_v46  ;;  %v5366_v46 = vld [vmem:[#allocation32_spill] sm:$0xff] }
 0x471   :  { %1312 = vmatmul.mubr.bf16.vlgmr.msra.gmra.mxu0 %v1277_v10  ;;  %1353 = vmatmul.mubr.bf16.vlgmr.msra.gmra.mxu1 %v1277_v10 }
 0x472   :  { %1413 = vmatpush1.bf16.msra.mxu0 %v2912_v9  ;;  %1454 = vmatpush1.bf16.msra.mxu1 %v2924_v13 }
 0x473   :  { %1414 = vmatprep.subr.bf16.mxu0 %v2937_v17  ;;  %1455 = vmatprep.subr.bf16.mxu1 %v2939_v18 }
 0x474   :  { %1444 = vmatprep.mubr.bf16.mxu0 %v5132_v33  ;;  %1485 = vmatprep.mubr.bf16.mxu1 %v5132_v33 }
 0x476   :  { %1415 = vmatpush1.bf16.msra.mxu0 %v2951_v22  ;;  %1456 = vmatpush1.bf16.msra.mxu1 %v2964_v26 }
 0x477   :  { %1416 = vmatprep.subr.bf16.mxu0 %v2966_v27  ;;  %1457 = vmatprep.subr.bf16.mxu1 %v2977_v31 }
 0x47a   :  { %1417 = vmatpush1.bf16.msra.mxu0 %v2989_v35  ;;  %1458 = vmatpush1.bf16.msra.mxu1 %v3002_v39 }
 0x47b   :  { %1418 = vmatprep.subr.bf16.mxu0 %v3004_v40  ;;  %1459 = vmatprep.subr.bf16.mxu1 %v3016_v44 }
 0x47e   :  { %1419 = vmatpush1.bf16.msra.mxu0 %v3037_v51  ;;  %1460 = vmatpush1.bf16.msra.mxu1 %v3041_v52 }
 0x47f   :  { %1420 = vmatprep.subr.bf16.mxu0 %v3043_v53  ;;  %1461 = vmatprep.subr.bf16.mxu1 %v3055_v57 }
 0x482   :  { %1421 = vmatpush1.bf16.msra.mxu0 %v3073_v63  ;;  %1462 = vmatpush1.bf16.msra.mxu1 %v3077_v0 }
 0x483   :  { %1422 = vmatprep.subr.bf16.mxu0 %v3079_v1  ;;  %1463 = vmatprep.subr.bf16.mxu1 %v3091_v7 }
 0x486   :  { %1423 = vmatpush1.bf16.msra.mxu0 %v3109_v16  ;;  %1464 = vmatpush1.bf16.msra.mxu1 %v3119_v21 }
 0x487   :  { %1424 = vmatprep.subr.bf16.mxu0 %v3121_v23  ;;  %1465 = vmatprep.subr.bf16.mxu1 %v3133_v29 }
 0x48a   :  { %1425 = vmatpush1.bf16.msra.mxu0 %v3151_v37  ;;  %1466 = vmatpush1.bf16.msra.mxu1 %v3155_v38 }
 0x48b   :  { %1426 = vmatprep.subr.bf16.mxu0 %v3157_v41  ;;  %1467 = vmatprep.subr.bf16.mxu1 %v3166_v45 }
 0x48e   :  { %1427 = vmatpush1.bf16.msra.mxu0 %v3175_v49  ;;  %1468 = vmatpush1.bf16.msra.mxu1 %v5133_v50 }
 0x48f   :  { %1524 = vmatprep.subr.bf16.mxu0 %v5134_v12  ;;  %1565 = vmatprep.subr.bf16.mxu1 %v5135_v4 }
 0x491   :  { %1445 = vmatmul.mubr.bf16.vlgmr.msra.gmra.mxu0 %v1277_v10  ;;  %1486 = vmatmul.mubr.bf16.vlgmr.msra.gmra.mxu1 %v1277_v10  ;;  %v5367_v10 = vld [vmem:[#allocation33_spill] sm:$0xff] }
 0x492   :  { %1525 = vmatpush1.bf16.msra.mxu0 %v5136_v14  ;;  %1566 = vmatpush1.bf16.msra.mxu1 %v5206_v34 }
 0x493   :  { %1526 = vmatprep.subr.bf16.mxu0 %v5207_v6  ;;  %1567 = vmatprep.subr.bf16.mxu1 %v5208_v43 }
 0x496   :  { %1527 = vmatpush1.bf16.msra.mxu0 %v5209_v11  ;;  %1568 = vmatpush1.bf16.msra.mxu1 %v5346_v55 }
 0x497   :  { %1528 = vmatprep.subr.bf16.mxu0 %v5347_v32  ;;  %1569 = vmatprep.subr.bf16.mxu1 %v5348_v48 }
 0x49a   :  { %1529 = vmatpush1.bf16.msra.mxu0 %v5349_v58  ;;  %1570 = vmatpush1.bf16.msra.mxu1 %v5350_v8  ;;  %v5408_v58 = vld [vmem:[#allocation7_spill] sm:$0xff] }
 0x49b   :  { %1530 = vmatprep.subr.bf16.mxu0 %v5351_v25  ;;  %1571 = vmatprep.subr.bf16.mxu1 %v5352_v24 }
 0x49e   :  { %1531 = vmatpush1.bf16.msra.mxu0 %v5353_v47  ;;  %1572 = vmatpush1.bf16.msra.mxu1 %v5354_v3 }
 0x49f   :  { %1532 = vmatprep.subr.bf16.mxu0 %v5355_v5  ;;  %1573 = vmatprep.subr.bf16.mxu1 %v5356_v62  ;;  %v5405_v62 = vld [vmem:[#allocation4_spill] sm:$0xff] }
 0x4a2   :  { %1533 = vmatpush1.bf16.msra.mxu0 %v5357_v15  ;;  %1574 = vmatpush1.bf16.msra.mxu1 %v5358_v36  ;;  %v5368_v15 = vld [vmem:[#allocation34_spill] sm:$0xff]  ;;  %v5369_v36 = vld [vmem:[#allocation35_spill] sm:$0xff] }
 0x4a3   :  { %1534 = vmatprep.subr.bf16.mxu0 %v5359_v56  ;;  %1575 = vmatprep.subr.bf16.mxu1 %v5360_v30  ;;  %v5370_v56 = vld [vmem:[#allocation36_spill] sm:$0xff]  ;;  %v5371_v30 = vld [vmem:[#allocation37_spill] sm:$0xff] }
 0x4a6   :  { %1535 = vmatpush1.bf16.msra.mxu0 %v5361_v60  ;;  %1576 = vmatpush1.bf16.msra.mxu1 %v5362_v19  ;;  %v5372_v60 = vld [vmem:[#allocation38_spill] sm:$0xff]  ;;  %v5373_v19 = vld [vmem:[#allocation39_spill] sm:$0xff] }
 0x4a7   :  { %1536 = vmatprep.subr.bf16.mxu0 %v5363_v61  ;;  %1577 = vmatprep.subr.bf16.mxu1 %v5364_v42  ;;  %v5374_v61 = vld [vmem:[#allocation40_spill] sm:$0xff]  ;;  %v5375_v42 = vld [vmem:[#allocation41_spill] sm:$0xff] }
 0x4aa   :  { %1537 = vmatpush1.bf16.msra.mxu0 %v5365_v54  ;;  %1578 = vmatpush1.bf16.msra.mxu1 %v5366_v46  ;;  %v5376_v54 = vld [vmem:[#allocation42_spill] sm:$0xff]  ;;  %v5377_v46 = vld [vmem:[#allocation43_spill] sm:$0xff] }
 0x4ab   :  { %1538 = vmatprep.subr.bf16.mxu0 %v5367_v10  ;;  %1579 = vmatprep.subr.bf16.mxu1 %v5368_v15  ;;  %v5378_v10 = vld [vmem:[#allocation44_spill] sm:$0xff]  ;;  %v5379_v15 = vld [vmem:[#allocation45_spill] sm:$0xff] }
 0x4ae   :  { %1539 = vmatpush1.bf16.msra.mxu0 %v5369_v36  ;;  %1580 = vmatpush1.bf16.msra.mxu1 %v5370_v56  ;;  %v5380_v36 = vld [vmem:[#allocation46_spill] sm:$0xff]  ;;  %v5381_v56 = vld [vmem:[#allocation47_spill] sm:$0xff] }
 0x4af   :  { %1540 = vmatprep.subr.bf16.mxu0 %v5371_v30  ;;  %1581 = vmatprep.subr.bf16.mxu1 %v5372_v60  ;;  %v5382_v30 = vld [vmem:[#allocation48_spill] sm:$0xff]  ;;  %v5383_v60 = vld [vmem:[#allocation49_spill] sm:$0xff] }
 0x4b2   :  { %1541 = vmatpush2.bf16.msra.mxu0 %v5373_v19  ;;  %1582 = vmatpush2.bf16.msra.mxu1 %v5374_v61  ;;  %v5384_v19 = vld [vmem:[#allocation50_spill] sm:$0xff]  ;;  %v5385_v61 = vld [vmem:[#allocation51_spill] sm:$0xff] }
 0x4b3   :  { %1542 = vmatprep.subr.bf16.mxu0 %v5375_v42  ;;  %1583 = vmatprep.subr.bf16.mxu1 %v5376_v54  ;;  %v5386_v42 = vld [vmem:[#allocation52_spill] sm:$0xff]  ;;  %v5387_v54 = vld [vmem:[#allocation53_spill] sm:$0xff] }
 0x4b6   :  { %1543 = vmatpush2.bf16.msra.mxu0 %v5377_v46  ;;  %1584 = vmatpush2.bf16.msra.mxu1 %v5378_v10  ;;  %v5388_v46 = vld [vmem:[#allocation54_spill] sm:$0xff]  ;;  %v5389_v10 = vld [vmem:[#allocation55_spill] sm:$0xff] }
 0x4b7   :  { %1544 = vmatprep.subr.bf16.mxu0 %v5379_v15  ;;  %1585 = vmatprep.subr.bf16.mxu1 %v5380_v36  ;;  %v5390_v15 = vld [vmem:[#allocation56_spill] sm:$0xff]  ;;  %v5391_v36 = vld [vmem:[#allocation57_spill] sm:$0xff] }
 0x4ba   :  { %1545 = vmatpush2.bf16.msra.mxu0 %v5381_v56  ;;  %1586 = vmatpush2.bf16.msra.mxu1 %v5382_v30  ;;  %v5392_v56 = vld [vmem:[#allocation58_spill] sm:$0xff]  ;;  %v5393_v30 = vld [vmem:[#allocation60_spill] sm:$0xff] }
 0x4bb   :  { %1546 = vmatprep.subr.bf16.mxu0 %v5383_v60  ;;  %1587 = vmatprep.subr.bf16.mxu1 %v5384_v19  ;;  %v5394_v60 = vld [vmem:[#allocation61_spill] sm:$0xff]  ;;  %v5395_v19 = vld [vmem:[#allocation62_spill] sm:$0xff] }
 0x4be   :  { %1547 = vmatpush2.bf16.msra.mxu0 %v5385_v61  ;;  %1588 = vmatpush2.bf16.msra.mxu1 %v5386_v42  ;;  %v5396_v61 = vld [vmem:[#allocation63_spill] sm:$0xff]  ;;  %v5397_v42 = vld [vmem:[#allocation64_spill] sm:$0xff] }
 0x4bf   :  { %1548 = vmatprep.subr.bf16.mxu0 %v5387_v54  ;;  %1589 = vmatprep.subr.bf16.mxu1 %v5388_v46  ;;  %v5398_v54 = vld [vmem:[#allocation66_spill] sm:$0xff]  ;;  %v5399_v46 = vld [vmem:[#allocation67_spill] sm:$0xff] }
 0x4c2   :  { %1549 = vmatpush2.bf16.msra.mxu0 %v5389_v10  ;;  %1590 = vmatpush2.bf16.msra.mxu1 %v5390_v15  ;;  %v5400_v10 = vld [vmem:[#allocation68_spill] sm:$0xff]  ;;  %v5401_v15 = vld [vmem:[#allocation69_spill] sm:$0xff] }
 0x4c3   :  { %1550 = vmatprep.subr.bf16.mxu0 %v5391_v36  ;;  %1591 = vmatprep.subr.bf16.mxu1 %v5392_v56  ;;  %v5402_v36 = vld [vmem:[#allocation70_spill] sm:$0xff] }
 0x4c4   :  { %v5403_v56 = vld [vmem:[#allocation2_spill] sm:$0xff] }
 0x4c6   :  { %1551 = vmatpush2.bf16.msra.mxu0 %v5393_v30  ;;  %1592 = vmatpush2.bf16.msra.mxu1 %v5394_v60  ;;  %v5404_v30 = vld [vmem:[#allocation3_spill] sm:$0xff] }
 0x4c7   :  { %1552 = vmatprep.subr.bf16.mxu0 %v5395_v19  ;;  %1593 = vmatprep.subr.bf16.mxu1 %v5396_v61 }
 0x4ca   :  { %1553 = vmatpush2.bf16.msra.mxu0 %v5397_v42  ;;  %1594 = vmatpush2.bf16.msra.mxu1 %v5398_v54  ;;  %v5406_v54 = vld [vmem:[#allocation5_spill] sm:$0xff] }
 0x4cb   :  { %1554 = vmatprep.subr.bf16.mxu0 %v5399_v46  ;;  %1595 = vmatprep.subr.bf16.mxu1 %v5400_v10 }
 0x4ce   :  { %1555 = vmatpush2.bf16.msra.mxu0 %v5401_v15  ;;  %1596 = vmatpush2.bf16.msra.mxu1 %v5402_v36  ;;  %v5407_v36 = vld [vmem:[#allocation6_spill] sm:$0xff] }
 0x4cf   :  { %1657 = vmatprep.subr.bf16.mxu0 %v5403_v56  ;;  %1698 = vmatprep.subr.bf16.mxu1 %v5404_v30 }
 0x531   :  { %v1313_v60 = vpop.f32.mrf.mxu0  ;;  %v1354_v19 = vpop.f32.mrf.mxu1 }
 0x532   :  { %v1314_v61 = vadd.f32 %v1313_v60, %v5405_v62  ;;  %v1355_v56 = vadd.f32 %v1354_v19, %v5407_v36  ;;  %v5412_v19 = vld [vmem:[#allocation81_spill] sm:$0xff] }
 0x533   :  { %v1315_v5 = vpop.f32.mrf.mxu0  ;;  %v1356_v42 = vpop.f32.mrf.mxu1 }
 0x534   :  { %v2488_v3 = vmul.f32 -1.442695, %v1314_v61  ;;  %v1316_v47 = vadd.f32 %v1315_v5, %v5406_v54  ;;  %v2490_v8 = vmul.f32 -1.442695, %v1355_v56  ;;  %v1357_v48 = vadd.f32 %v1356_v42, %v5408_v58  ;;  %v5409_v5 = vld [vmem:[#allocation95_spill] sm:$0xff] }
 0x535   :  { %v1317_v46 = vpop.f32.mrf.mxu0  ;;  %v1358_v24 = vpop.f32.mrf.mxu1 }
 0x536   :  { %2693 = vpow2.f32 %v2488_v3  ;;  %v2489_v10 = vmul.f32 -1.442695, %v1316_v47  ;;  %v5410_v24 = vld [vmem:[#allocation79_spill] sm:$0xff] }
 0x537   :  { %v1318_v15 = vpop.f32.mrf.mxu0  ;;  %v1359_v25 = vpop.f32.mrf.mxu1  ;;  %v1408_v3 = vadd.f32 %v5410_v24, %v5409_v5 }
 0x538   :  { %2695 = vpow2.f32 %v2489_v10  ;;  %v5411_v10 = vld [vmem:[#allocation96_spill] sm:$0xff] }
 0x539   :  { %2697 = vpow2.f32 %v2490_v8  ;;  %v1409_v56 = vadd.f32 %v5412_v19, %v5411_v10  ;;  %v5413_v19 = vld [vmem:[#allocation80_spill] sm:$0xff] }
 0x53a   :  { %v1410_v10 = vadd.f32 %v5413_v19, %v3951_v2 }
 0x543   :  { %v2694_v30 = vpop.eup %2693 }
 0x544   :  { %v1370_v32 = vadd.f32 1.0, %v2694_v30 }
 0x545   :  { %v2696_v60 = vpop.eup %2695 }
 0x546   :  { %2699 = vrcp.f32 %v1370_v32  ;;  %v1371_v61 = vadd.f32 1.0, %v2696_v60  ;;  %v2698_v25 = vpop.eup %2697 }
 0x547   :  { %2701 = vtanh.f32 %v1357_v48  ;;  %v1372_v60 = vadd.f32 1.0, %v2698_v25  ;;  %v5414_v25 = vld [vmem:[#allocation82_spill] sm:$0xff] }
 0x548   :  { %2703 = vrcp.f32 %v1371_v61 }
 0x551   :  { %v1446_v47 = vpop.f32.mrf.mxu0  ;;  %v1487_v15 = vpop.f32.mrf.mxu1 }
 0x552   :  { %v1494_v46 = vadd.f32 %v1446_v47, %v1408_v3 }
 0x553   :  { %v2700_v36 = vpop.eup %2699  ;;  %v1448_v54 = vpop.f32.mrf.mxu0 }
 0x554   :  { %v1489_v42 = vpop.f32.mrf.mxu1  ;;  %v2702_v30 = vpop.eup %2701  ;;  %v2492_v58 = vmul.f32 -1.442695, %v1494_v46  ;;  %v1495_v8 = vadd.f32 %v1448_v54, %v1409_v56  ;;  %v1496_v54 = vadd.f32 %v1487_v15, %v1410_v10  ;;  %v1411_v46 = vadd.f32 %v5414_v25, %v3959_v28 }
 0x555   :  { %v2704_v32 = vpop.eup %2703  ;;  %v1450_v48 = vpop.f32.mrf.mxu0  ;;  %v1381_v24 = vmul.f32 %v2702_v30, %v2700_v36 }
 0x556   :  { %v1491_v61 = vpop.f32.mrf.mxu1  ;;  %v1380_v62 = vmul.f32 %v2704_v32, %v4340_v20  ;;  %2705 = vpow2.f32 %v2492_v58  ;;  %v2493_v5 = vmul.f32 -1.442695, %v1495_v8  ;;  %v2494_v56 = vmul.f32 -1.442695, %v1496_v54 }
 0x557   :  { %v1451_v55 = vpop.f32.mrf.mxu0  ;;  %v1497_v20 = vadd.f32 %v1489_v42, %v1411_v46 }
 0x558   :  { %v1492_v3 = vpop.f32.mrf.mxu1  ;;  %v4458_v47 = vadd.f32 %v1381_v24, %v1380_v62  ;;  %2707 = vpow2.f32 %v2493_v5 }
 0x559   :  { %2709 = vrcp.f32 %v1372_v60 }
 0x55a   :  { %2711 = vtanh.f32 %v4458_v47 }
 0x55b   :  { %2713 = vpow2.f32 %v2494_v56  ;;  %v5416_v56 = vld [vmem:[#allocation13_spill] sm:$0xff] }
 0x55c   :  { %2715 = vtanh.f32 %v1497_v20  ;;  %v5417_v20 = vld [vmem:[#allocation14_spill] sm:$0xff] }
 0x563   :  { %v2706_v36 = vpop.eup %2705 }
 0x564   :  { %v1507_v58 = vadd.f32 1.0, %v2706_v36  ;;  %v5418_v36 = vld [vmem:[#allocation15_spill] sm:$0xff] }
 0x565   :  { %v2708_v55 = vpop.eup %2707 }
 0x566   :  { %v2710_v62 = vpop.eup %2709  ;;  %2717 = vrcp.f32 %v1507_v58  ;;  %v1508_v5 = vadd.f32 1.0, %v2708_v55  ;;  %v5419_v58 = vld [vmem:[#allocation16_spill] sm:$0xff]  ;;  %v5420_v55 = vld [vmem:[#allocation17_spill] sm:$0xff] }
 0x567   :  { %v2712_v30 = vpop.eup %2711 }
 0x568   :  { %2719 = vrcp.f32 %v1508_v5  ;;  %v1384_v8 = vmul.f32 %v2712_v30, %v2710_v62  ;;  %v2714_v15 = vpop.eup %2713  ;;  %v5421_v62 = vld [vmem:[#allocation18_spill] sm:$0xff]  ;;  %v5422_v5 = vld [vmem:[#allocation19_spill] sm:$0xff]  ;;  %v5423_v30 = vld [vmem:[#allocation20_spill] sm:$0xff] }
 0x569   :  { %v2716_v10 = vpop.eup %2715  ;;  %v1509_v42 = vadd.f32 1.0, %v2714_v15  ;;  %v5426_v15 = vld [vmem:[#allocation23_spill] sm:$0xff] }
 0x56a   :  { %v1523_v32 = vpack.c.bf16 %v1384_v8, %v1384_v8  ;;  %v5424_v8 = vld [vmem:[#allocation21_spill] sm:$0xff] }
 0x56b   :  { %2721 = vrcp.f32 %v1509_v42  ;;  %v5431_v42 = vld [vmem:[#allocation28_spill] sm:$0xff] }
 0x56c   :  { %1556 = vmatprep.mubr.bf16.mxu0 %v1523_v32  ;;  %1597 = vmatprep.mubr.bf16.mxu1 %v1523_v32  ;;  %v5425_v32 = vld [vmem:[#allocation22_spill] sm:$0xff] }
 0x573   :  { %v2718_v60 = vpop.eup %2717 }
 0x574   :  { %v1518_v48 = vmul.f32 %v2718_v60, %v2716_v10  ;;  %v5427_v10 = vld [vmem:[#allocation24_spill] sm:$0xff]  ;;  %v5428_v60 = vld [vmem:[#allocation25_spill] sm:$0xff] }
 0x575   :  { %v2720_v61 = vpop.eup %2719 }
 0x576   :  { %v1517_v24 = vmul.f32 %v2720_v61, %v4348_v59  ;;  %v5415_v59 = vld [vmem:[#allocation12_spill] sm:$0xff]  ;;  %v5430_v61 = vld [vmem:[#allocation27_spill] sm:$0xff] }
 0x578   :  { %v4466_v3 = vadd.f32 %v1518_v48, %v1517_v24  ;;  %v2722_v19 = vpop.eup %2721  ;;  %v5429_v48 = vld [vmem:[#allocation26_spill] sm:$0xff]  ;;  %v5432_v24 = vld [vmem:[#allocation29_spill] sm:$0xff] }
 0x57a   :  { %2723 = vtanh.f32 %v4466_v3 }
 0x587   :  { %v2724_v54 = vpop.eup %2723 }
 0x588   :  { %v1521_v25 = vmul.f32 %v2724_v54, %v2722_v19  ;;  %v5433_v19 = vld [vmem:[#allocation30_spill] sm:$0xff]  ;;  %v5434_v54 = vld [vmem:[#allocation31_spill] sm:$0xff] }
 0x58a   :  { %v1522_v46 = vpack.c.bf16 %v1521_v25, %v1521_v25  ;;  %v5435_v25 = vld [vmem:[#allocation32_spill] sm:$0xff] }
 0x58c   :  { %1557 = vmatmul.mubr.bf16.vlgmr.msra.gmra.mxu0 %v1522_v46  ;;  %1598 = vmatmul.mubr.bf16.vlgmr.msra.gmra.mxu1 %v1522_v46 }
 0x58d   :  { %1658 = vmatpush1.bf16.msra.mxu0 %v2912_v9  ;;  %1699 = vmatpush1.bf16.msra.mxu1 %v2924_v13 }
 0x58e   :  { %1659 = vmatprep.subr.bf16.mxu0 %v2937_v17  ;;  %1700 = vmatprep.subr.bf16.mxu1 %v2939_v18 }
 0x58f   :  { %1689 = vmatprep.mubr.bf16.mxu0 %v5132_v33  ;;  %1730 = vmatprep.mubr.bf16.mxu1 %v5132_v33 }
 0x591   :  { %1660 = vmatpush1.bf16.msra.mxu0 %v2951_v22  ;;  %1701 = vmatpush1.bf16.msra.mxu1 %v2964_v26 }
 0x592   :  { %1661 = vmatprep.subr.bf16.mxu0 %v2966_v27  ;;  %1702 = vmatprep.subr.bf16.mxu1 %v2977_v31 }
 0x595   :  { %1662 = vmatpush1.bf16.msra.mxu0 %v2989_v35  ;;  %1703 = vmatpush1.bf16.msra.mxu1 %v3002_v39 }
 0x596   :  { %1663 = vmatprep.subr.bf16.mxu0 %v3004_v40  ;;  %1704 = vmatprep.subr.bf16.mxu1 %v3016_v44 }
 0x599   :  { %1664 = vmatpush1.bf16.msra.mxu0 %v3037_v51  ;;  %1705 = vmatpush1.bf16.msra.mxu1 %v3041_v52 }
 0x59a   :  { %1665 = vmatprep.subr.bf16.mxu0 %v3043_v53  ;;  %1706 = vmatprep.subr.bf16.mxu1 %v3055_v57 }
 0x59d   :  { %1666 = vmatpush1.bf16.msra.mxu0 %v3073_v63  ;;  %1707 = vmatpush1.bf16.msra.mxu1 %v3077_v0 }
 0x59e   :  { %1667 = vmatprep.subr.bf16.mxu0 %v3079_v1  ;;  %1708 = vmatprep.subr.bf16.mxu1 %v3091_v7 }
 0x5a1   :  { %1668 = vmatpush1.bf16.msra.mxu0 %v3109_v16  ;;  %1709 = vmatpush1.bf16.msra.mxu1 %v3119_v21 }
 0x5a2   :  { %1669 = vmatprep.subr.bf16.mxu0 %v3121_v23  ;;  %1710 = vmatprep.subr.bf16.mxu1 %v3133_v29 }
 0x5a5   :  { %1670 = vmatpush1.bf16.msra.mxu0 %v3151_v37  ;;  %1711 = vmatpush1.bf16.msra.mxu1 %v3155_v38 }
 0x5a6   :  { %1671 = vmatprep.subr.bf16.mxu0 %v3157_v41  ;;  %1712 = vmatprep.subr.bf16.mxu1 %v3166_v45 }
 0x5a9   :  { %1672 = vmatpush1.bf16.msra.mxu0 %v3175_v49  ;;  %1713 = vmatpush1.bf16.msra.mxu1 %v5133_v50 }
 0x5aa   :  { %1769 = vmatprep.subr.bf16.mxu0 %v5134_v12  ;;  %1810 = vmatprep.subr.bf16.mxu1 %v5135_v4 }
 0x5ac   :  { %1690 = vmatmul.mubr.bf16.vlgmr.msra.gmra.mxu0 %v1522_v46  ;;  %1731 = vmatmul.mubr.bf16.vlgmr.msra.gmra.mxu1 %v1522_v46  ;;  %v5436_v46 = vld [vmem:[#allocation33_spill] sm:$0xff] }
 0x5ad   :  { %1770 = vmatpush1.bf16.msra.mxu0 %v5136_v14  ;;  %1811 = vmatpush1.bf16.msra.mxu1 %v5206_v34 }
 0x5ae   :  { %1771 = vmatprep.subr.bf16.mxu0 %v5207_v6  ;;  %1812 = vmatprep.subr.bf16.mxu1 %v5208_v43 }
 0x5b1   :  { %1772 = vmatpush1.bf16.msra.mxu0 %v5209_v11  ;;  %1813 = vmatpush1.bf16.msra.mxu1 %v5415_v59 }
 0x5b2   :  { %1773 = vmatprep.subr.bf16.mxu0 %v5416_v56  ;;  %1814 = vmatprep.subr.bf16.mxu1 %v5417_v20 }
 0x5b5   :  { %1774 = vmatpush1.bf16.msra.mxu0 %v5418_v36  ;;  %1815 = vmatpush1.bf16.msra.mxu1 %v5419_v58  ;;  %v5477_v36 = vld [vmem:[#allocation7_spill] sm:$0xff] }
 0x5b6   :  { %1775 = vmatprep.subr.bf16.mxu0 %v5420_v55  ;;  %1816 = vmatprep.subr.bf16.mxu1 %v5421_v62 }
 0x5b9   :  { %1776 = vmatpush1.bf16.msra.mxu0 %v5422_v5  ;;  %1817 = vmatpush1.bf16.msra.mxu1 %v5423_v30 }
 0x5ba   :  { %1777 = vmatprep.subr.bf16.mxu0 %v5424_v8  ;;  %1818 = vmatprep.subr.bf16.mxu1 %v5425_v32  ;;  %v5474_v32 = vld [vmem:[#allocation4_spill] sm:$0xff] }
 0x5bd   :  { %1778 = vmatpush1.bf16.msra.mxu0 %v5426_v15  ;;  %1819 = vmatpush1.bf16.msra.mxu1 %v5427_v10  ;;  %v5437_v15 = vld [vmem:[#allocation34_spill] sm:$0xff]  ;;  %v5438_v10 = vld [vmem:[#allocation35_spill] sm:$0xff] }
 0x5be   :  { %1779 = vmatprep.subr.bf16.mxu0 %v5428_v60  ;;  %1820 = vmatprep.subr.bf16.mxu1 %v5429_v48  ;;  %v5439_v60 = vld [vmem:[#allocation36_spill] sm:$0xff]  ;;  %v5440_v48 = vld [vmem:[#allocation37_spill] sm:$0xff] }
 0x5c1   :  { %1780 = vmatpush1.bf16.msra.mxu0 %v5430_v61  ;;  %1821 = vmatpush1.bf16.msra.mxu1 %v5431_v42  ;;  %v5441_v61 = vld [vmem:[#allocation38_spill] sm:$0xff]  ;;  %v5442_v42 = vld [vmem:[#allocation39_spill] sm:$0xff] }
 0x5c2   :  { %1781 = vmatprep.subr.bf16.mxu0 %v5432_v24  ;;  %1822 = vmatprep.subr.bf16.mxu1 %v5433_v19  ;;  %v5443_v24 = vld [vmem:[#allocation40_spill] sm:$0xff]  ;;  %v5444_v19 = vld [vmem:[#allocation41_spill] sm:$0xff] }
 0x5c5   :  { %1782 = vmatpush1.bf16.msra.mxu0 %v5434_v54  ;;  %1823 = vmatpush1.bf16.msra.mxu1 %v5435_v25  ;;  %v5445_v54 = vld [vmem:[#allocation42_spill] sm:$0xff]  ;;  %v5446_v25 = vld [vmem:[#allocation43_spill] sm:$0xff] }
 0x5c6   :  { %1783 = vmatprep.subr.bf16.mxu0 %v5436_v46  ;;  %1824 = vmatprep.subr.bf16.mxu1 %v5437_v15  ;;  %v5447_v46 = vld [vmem:[#allocation44_spill] sm:$0xff]  ;;  %v5448_v15 = vld [vmem:[#allocation45_spill] sm:$0xff] }
 0x5c9   :  { %1784 = vmatpush1.bf16.msra.mxu0 %v5438_v10  ;;  %1825 = vmatpush1.bf16.msra.mxu1 %v5439_v60  ;;  %v5449_v10 = vld [vmem:[#allocation46_spill] sm:$0xff]  ;;  %v5450_v60 = vld [vmem:[#allocation47_spill] sm:$0xff] }
 0x5ca   :  { %1785 = vmatprep.subr.bf16.mxu0 %v5440_v48  ;;  %1826 = vmatprep.subr.bf16.mxu1 %v5441_v61  ;;  %v5451_v48 = vld [vmem:[#allocation48_spill] sm:$0xff]  ;;  %v5452_v61 = vld [vmem:[#allocation49_spill] sm:$0xff] }
 0x5cd   :  { %1786 = vmatpush2.bf16.msra.mxu0 %v5442_v42  ;;  %1827 = vmatpush2.bf16.msra.mxu1 %v5443_v24  ;;  %v5453_v42 = vld [vmem:[#allocation50_spill] sm:$0xff]  ;;  %v5454_v24 = vld [vmem:[#allocation51_spill] sm:$0xff] }
 0x5ce   :  { %1787 = vmatprep.subr.bf16.mxu0 %v5444_v19  ;;  %1828 = vmatprep.subr.bf16.mxu1 %v5445_v54  ;;  %v5455_v19 = vld [vmem:[#allocation52_spill] sm:$0xff]  ;;  %v5456_v54 = vld [vmem:[#allocation53_spill] sm:$0xff] }
 0x5d1   :  { %1788 = vmatpush2.bf16.msra.mxu0 %v5446_v25  ;;  %1829 = vmatpush2.bf16.msra.mxu1 %v5447_v46  ;;  %v5457_v25 = vld [vmem:[#allocation54_spill] sm:$0xff]  ;;  %v5458_v46 = vld [vmem:[#allocation55_spill] sm:$0xff] }
 0x5d2   :  { %1789 = vmatprep.subr.bf16.mxu0 %v5448_v15  ;;  %1830 = vmatprep.subr.bf16.mxu1 %v5449_v10  ;;  %v5459_v15 = vld [vmem:[#allocation56_spill] sm:$0xff]  ;;  %v5460_v10 = vld [vmem:[#allocation57_spill] sm:$0xff] }
 0x5d5   :  { %1790 = vmatpush2.bf16.msra.mxu0 %v5450_v60  ;;  %1831 = vmatpush2.bf16.msra.mxu1 %v5451_v48  ;;  %v5461_v60 = vld [vmem:[#allocation58_spill] sm:$0xff]  ;;  %v5462_v48 = vld [vmem:[#allocation60_spill] sm:$0xff] }
 0x5d6   :  { %1791 = vmatprep.subr.bf16.mxu0 %v5452_v61  ;;  %1832 = vmatprep.subr.bf16.mxu1 %v5453_v42  ;;  %v5463_v61 = vld [vmem:[#allocation61_spill] sm:$0xff]  ;;  %v5464_v42 = vld [vmem:[#allocation62_spill] sm:$0xff] }
 0x5d9   :  { %1792 = vmatpush2.bf16.msra.mxu0 %v5454_v24  ;;  %1833 = vmatpush2.bf16.msra.mxu1 %v5455_v19  ;;  %v5465_v24 = vld [vmem:[#allocation63_spill] sm:$0xff]  ;;  %v5466_v19 = vld [vmem:[#allocation64_spill] sm:$0xff] }
 0x5da   :  { %1793 = vmatprep.subr.bf16.mxu0 %v5456_v54  ;;  %1834 = vmatprep.subr.bf16.mxu1 %v5457_v25  ;;  %v5467_v54 = vld [vmem:[#allocation66_spill] sm:$0xff]  ;;  %v5468_v25 = vld [vmem:[#allocation67_spill] sm:$0xff] }
 0x5dd   :  { %1794 = vmatpush2.bf16.msra.mxu0 %v5458_v46  ;;  %1835 = vmatpush2.bf16.msra.mxu1 %v5459_v15  ;;  %v5469_v46 = vld [vmem:[#allocation68_spill] sm:$0xff]  ;;  %v5470_v15 = vld [vmem:[#allocation69_spill] sm:$0xff] }
 0x5de   :  { %1795 = vmatprep.subr.bf16.mxu0 %v5460_v10  ;;  %1836 = vmatprep.subr.bf16.mxu1 %v5461_v60  ;;  %v5471_v10 = vld [vmem:[#allocation70_spill] sm:$0xff] }
 0x5df   :  { %v5472_v60 = vld [vmem:[#allocation2_spill] sm:$0xff] }
 0x5e1   :  { %1796 = vmatpush2.bf16.msra.mxu0 %v5462_v48  ;;  %1837 = vmatpush2.bf16.msra.mxu1 %v5463_v61  ;;  %v5473_v48 = vld [vmem:[#allocation3_spill] sm:$0xff] }
 0x5e2   :  { %1797 = vmatprep.subr.bf16.mxu0 %v5464_v42  ;;  %1838 = vmatprep.subr.bf16.mxu1 %v5465_v24 }
 0x5e5   :  { %1798 = vmatpush2.bf16.msra.mxu0 %v5466_v19  ;;  %1839 = vmatpush2.bf16.msra.mxu1 %v5467_v54  ;;  %v5475_v54 = vld [vmem:[#allocation5_spill] sm:$0xff] }
 0x5e6   :  { %1799 = vmatprep.subr.bf16.mxu0 %v5468_v25  ;;  %1840 = vmatprep.subr.bf16.mxu1 %v5469_v46 }
 0x5e9   :  { %1800 = vmatpush2.bf16.msra.mxu0 %v5470_v15  ;;  %1841 = vmatpush2.bf16.msra.mxu1 %v5471_v10  ;;  %v5476_v10 = vld [vmem:[#allocation6_spill] sm:$0xff] }
 0x5ea   :  { %1902 = vmatprep.subr.bf16.mxu0 %v5472_v60  ;;  %1943 = vmatprep.subr.bf16.mxu1 %v5473_v48 }
 0x64c   :  { %v1558_v61 = vpop.f32.mrf.mxu0  ;;  %v1599_v42 = vpop.f32.mrf.mxu1 }
 0x64d   :  { %v1559_v24 = vadd.f32 %v1558_v61, %v5474_v32  ;;  %v1600_v60 = vadd.f32 %v1599_v42, %v5476_v10  ;;  %v5481_v42 = vld [vmem:[#allocation85_spill] sm:$0xff] }
 0x64e   :  { %v1560_v8 = vpop.f32.mrf.mxu0  ;;  %v1601_v19 = vpop.f32.mrf.mxu1 }
 0x64f   :  { %v2495_v30 = vmul.f32 -1.442695, %v1559_v24  ;;  %v1561_v5 = vadd.f32 %v1560_v8, %v5475_v54  ;;  %v2497_v58 = vmul.f32 -1.442695, %v1600_v60  ;;  %v1602_v20 = vadd.f32 %v1601_v19, %v5477_v36  ;;  %v5478_v8 = vld [vmem:[#allocation95_spill] sm:$0xff] }
 0x650   :  { %v1562_v25 = vpop.f32.mrf.mxu0  ;;  %v1603_v62 = vpop.f32.mrf.mxu1 }
 0x651   :  { %2725 = vpow2.f32 %v2495_v30  ;;  %v2496_v46 = vmul.f32 -1.442695, %v1561_v5  ;;  %v5479_v62 = vld [vmem:[#allocation83_spill] sm:$0xff] }
 0x652   :  { %v1563_v15 = vpop.f32.mrf.mxu0  ;;  %v1604_v55 = vpop.f32.mrf.mxu1  ;;  %v1653_v30 = vadd.f32 %v5479_v62, %v5478_v8 }
 0x653   :  { %2727 = vpow2.f32 %v2496_v46  ;;  %v5480_v46 = vld [vmem:[#allocation96_spill] sm:$0xff] }
 0x654   :  { %2729 = vpow2.f32 %v2497_v58  ;;  %v1654_v60 = vadd.f32 %v5481_v42, %v5480_v46  ;;  %v5482_v42 = vld [vmem:[#allocation84_spill] sm:$0xff] }
 0x655   :  { %v1655_v46 = vadd.f32 %v5482_v42, %v3951_v2 }
 0x65e   :  { %v2726_v48 = vpop.eup %2725 }
 0x65f   :  { %v1615_v56 = vadd.f32 1.0, %v2726_v48 }
 0x660   :  { %v2728_v61 = vpop.eup %2727 }
 0x661   :  { %2731 = vrcp.f32 %v1615_v56  ;;  %v1616_v24 = vadd.f32 1.0, %v2728_v61  ;;  %v2730_v55 = vpop.eup %2729 }
 0x662   :  { %2733 = vtanh.f32 %v1602_v20  ;;  %v1617_v61 = vadd.f32 1.0, %v2730_v55  ;;  %v5483_v55 = vld [vmem:[#allocation86_spill] sm:$0xff] }
 0x663   :  { %2735 = vrcp.f32 %v1616_v24 }
 0x66c   :  { %v1691_v5 = vpop.f32.mrf.mxu0  ;;  %v1732_v15 = vpop.f32.mrf.mxu1 }
 0x66d   :  { %v1739_v25 = vadd.f32 %v1691_v5, %v1653_v30 }
 0x66e   :  { %v2732_v10 = vpop.eup %2731  ;;  %v1693_v54 = vpop.f32.mrf.mxu0 }
 0x66f   :  { %v1734_v19 = vpop.f32.mrf.mxu1  ;;  %v2734_v48 = vpop.eup %2733  ;;  %v2499_v36 = vmul.f32 -1.442695, %v1739_v25  ;;  %v1740_v58 = vadd.f32 %v1693_v54, %v1654_v60  ;;  %v1741_v54 = vadd.f32 %v1732_v15, %v1655_v46  ;;  %v1656_v25 = vadd.f32 %v5483_v55, %v3959_v28 }
 0x670   :  { %v2736_v56 = vpop.eup %2735  ;;  %v1695_v20 = vpop.f32.mrf.mxu0  ;;  %v1626_v62 = vmul.f32 %v2734_v48, %v2732_v10 }
 0x671   :  { %v1736_v24 = vpop.f32.mrf.mxu1  ;;  %v1625_v32 = vmul.f32 %v2736_v56, %v4458_v47  ;;  %2737 = vpow2.f32 %v2499_v36  ;;  %v2500_v8 = vmul.f32 -1.442695, %v1740_v58  ;;  %v2501_v60 = vmul.f32 -1.442695, %v1741_v54 }
 0x672   :  { %v1696_v59 = vpop.f32.mrf.mxu0  ;;  %v1742_v47 = vadd.f32 %v1734_v19, %v1656_v25 }
 0x673   :  { %v1737_v30 = vpop.f32.mrf.mxu1  ;;  %v4576_v5 = vadd.f32 %v1626_v62, %v1625_v32  ;;  %2739 = vpow2.f32 %v2500_v8 }
 0x674   :  { %2741 = vrcp.f32 %v1617_v61 }
 0x675   :  { %2743 = vtanh.f32 %v4576_v5 }
 0x676   :  { %2745 = vpow2.f32 %v2501_v60  ;;  %v5485_v60 = vld [vmem:[#allocation13_spill] sm:$0xff] }
 0x677   :  { %2747 = vtanh.f32 %v1742_v47  ;;  %v5486_v47 = vld [vmem:[#allocation14_spill] sm:$0xff] }
 0x67e   :  { %v2738_v10 = vpop.eup %2737 }
 0x67f   :  { %v1752_v36 = vadd.f32 1.0, %v2738_v10  ;;  %v5487_v10 = vld [vmem:[#allocation15_spill] sm:$0xff] }
 0x680   :  { %v2740_v59 = vpop.eup %2739 }
 0x681   :  { %v2742_v32 = vpop.eup %2741  ;;  %2749 = vrcp.f32 %v1752_v36  ;;  %v1753_v8 = vadd.f32 1.0, %v2740_v59  ;;  %v5488_v36 = vld [vmem:[#allocation16_spill] sm:$0xff]  ;;  %v5489_v59 = vld [vmem:[#allocation17_spill] sm:$0xff] }
 0x682   :  { %v2744_v48 = vpop.eup %2743 }
 0x683   :  { %2751 = vrcp.f32 %v1753_v8  ;;  %v1629_v58 = vmul.f32 %v2744_v48, %v2742_v32  ;;  %v2746_v15 = vpop.eup %2745  ;;  %v5490_v32 = vld [vmem:[#allocation18_spill] sm:$0xff]  ;;  %v5491_v8 = vld [vmem:[#allocation19_spill] sm:$0xff]  ;;  %v5492_v48 = vld [vmem:[#allocation20_spill] sm:$0xff] }
 0x684   :  { %v2748_v46 = vpop.eup %2747  ;;  %v1754_v19 = vadd.f32 1.0, %v2746_v15  ;;  %v5495_v15 = vld [vmem:[#allocation23_spill] sm:$0xff] }
 0x685   :  { %v1768_v56 = vpack.c.bf16 %v1629_v58, %v1629_v58  ;;  %v5493_v58 = vld [vmem:[#allocation21_spill] sm:$0xff] }
 0x686   :  { %2753 = vrcp.f32 %v1754_v19  ;;  %v5500_v19 = vld [vmem:[#allocation28_spill] sm:$0xff] }
 0x687   :  { %1801 = vmatprep.mubr.bf16.mxu0 %v1768_v56  ;;  %1842 = vmatprep.mubr.bf16.mxu1 %v1768_v56  ;;  %v5494_v56 = vld [vmem:[#allocation22_spill] sm:$0xff] }
 0x68e   :  { %v2750_v61 = vpop.eup %2749 }
 0x68f   :  { %v1763_v20 = vmul.f32 %v2750_v61, %v2748_v46  ;;  %v5496_v46 = vld [vmem:[#allocation24_spill] sm:$0xff]  ;;  %v5497_v61 = vld [vmem:[#allocation25_spill] sm:$0xff] }
 0x690   :  { %v2752_v24 = vpop.eup %2751 }
 0x691   :  { %v1762_v62 = vmul.f32 %v2752_v24, %v4466_v3  ;;  %v5484_v3 = vld [vmem:[#allocation12_spill] sm:$0xff]  ;;  %v5499_v24 = vld [vmem:[#allocation27_spill] sm:$0xff] }
 0x693   :  { %v4584_v30 = vadd.f32 %v1763_v20, %v1762_v62  ;;  %v2754_v42 = vpop.eup %2753  ;;  %v5498_v20 = vld [vmem:[#allocation26_spill] sm:$0xff]  ;;  %v5501_v62 = vld [vmem:[#allocation29_spill] sm:$0xff] }
 0x695   :  { %2755 = vtanh.f32 %v4584_v30 }
 0x6a2   :  { %v2756_v54 = vpop.eup %2755 }
 0x6a3   :  { %v1766_v55 = vmul.f32 %v2756_v54, %v2754_v42  ;;  %v5502_v42 = vld [vmem:[#allocation30_spill] sm:$0xff]  ;;  %v5503_v54 = vld [vmem:[#allocation31_spill] sm:$0xff] }
 0x6a5   :  { %v1767_v25 = vpack.c.bf16 %v1766_v55, %v1766_v55  ;;  %v5504_v55 = vld [vmem:[#allocation32_spill] sm:$0xff] }
 0x6a7   :  { %1802 = vmatmul.mubr.bf16.vlgmr.msra.gmra.mxu0 %v1767_v25  ;;  %1843 = vmatmul.mubr.bf16.vlgmr.msra.gmra.mxu1 %v1767_v25 }
 0x6a8   :  { %1903 = vmatpush1.bf16.msra.mxu0 %v2912_v9  ;;  %1944 = vmatpush1.bf16.msra.mxu1 %v2924_v13 }
 0x6a9   :  { %1904 = vmatprep.subr.bf16.mxu0 %v2937_v17  ;;  %1945 = vmatprep.subr.bf16.mxu1 %v2939_v18 }
 0x6aa   :  { %1934 = vmatprep.mubr.bf16.mxu0 %v5132_v33  ;;  %1975 = vmatprep.mubr.bf16.mxu1 %v5132_v33 }
 0x6ac   :  { %1905 = vmatpush1.bf16.msra.mxu0 %v2951_v22  ;;  %1946 = vmatpush1.bf16.msra.mxu1 %v2964_v26 }
 0x6ad   :  { %1906 = vmatprep.subr.bf16.mxu0 %v2966_v27  ;;  %1947 = vmatprep.subr.bf16.mxu1 %v2977_v31 }
 0x6b0   :  { %1907 = vmatpush1.bf16.msra.mxu0 %v2989_v35  ;;  %1948 = vmatpush1.bf16.msra.mxu1 %v3002_v39 }
 0x6b1   :  { %1908 = vmatprep.subr.bf16.mxu0 %v3004_v40  ;;  %1949 = vmatprep.subr.bf16.mxu1 %v3016_v44 }
 0x6b4   :  { %1909 = vmatpush1.bf16.msra.mxu0 %v3037_v51  ;;  %1950 = vmatpush1.bf16.msra.mxu1 %v3041_v52 }
 0x6b5   :  { %1910 = vmatprep.subr.bf16.mxu0 %v3043_v53  ;;  %1951 = vmatprep.subr.bf16.mxu1 %v3055_v57 }
 0x6b8   :  { %1911 = vmatpush1.bf16.msra.mxu0 %v3073_v63  ;;  %1952 = vmatpush1.bf16.msra.mxu1 %v3077_v0 }
 0x6b9   :  { %1912 = vmatprep.subr.bf16.mxu0 %v3079_v1  ;;  %1953 = vmatprep.subr.bf16.mxu1 %v3091_v7 }
 0x6bc   :  { %1913 = vmatpush1.bf16.msra.mxu0 %v3109_v16  ;;  %1954 = vmatpush1.bf16.msra.mxu1 %v3119_v21 }
 0x6bd   :  { %1914 = vmatprep.subr.bf16.mxu0 %v3121_v23  ;;  %1955 = vmatprep.subr.bf16.mxu1 %v3133_v29 }
 0x6c0   :  { %1915 = vmatpush1.bf16.msra.mxu0 %v3151_v37  ;;  %1956 = vmatpush1.bf16.msra.mxu1 %v3155_v38 }
 0x6c1   :  { %1916 = vmatprep.subr.bf16.mxu0 %v3157_v41  ;;  %1957 = vmatprep.subr.bf16.mxu1 %v3166_v45 }
 0x6c4   :  { %1917 = vmatpush1.bf16.msra.mxu0 %v3175_v49  ;;  %1958 = vmatpush1.bf16.msra.mxu1 %v5133_v50 }
 0x6c5   :  { %2014 = vmatprep.subr.bf16.mxu0 %v5134_v12  ;;  %2055 = vmatprep.subr.bf16.mxu1 %v5135_v4 }
 0x6c7   :  { %1935 = vmatmul.mubr.bf16.vlgmr.msra.gmra.mxu0 %v1767_v25  ;;  %1976 = vmatmul.mubr.bf16.vlgmr.msra.gmra.mxu1 %v1767_v25  ;;  %v5505_v25 = vld [vmem:[#allocation33_spill] sm:$0xff] }
 0x6c8   :  { %2015 = vmatpush1.bf16.msra.mxu0 %v5136_v14  ;;  %2056 = vmatpush1.bf16.msra.mxu1 %v5206_v34 }
 0x6c9   :  { %2016 = vmatprep.subr.bf16.mxu0 %v5207_v6  ;;  %2057 = vmatprep.subr.bf16.mxu1 %v5208_v43 }
 0x6cc   :  { %2017 = vmatpush1.bf16.msra.mxu0 %v5209_v11  ;;  %2058 = vmatpush1.bf16.msra.mxu1 %v5484_v3 }
 0x6cd   :  { %2018 = vmatprep.subr.bf16.mxu0 %v5485_v60  ;;  %2059 = vmatprep.subr.bf16.mxu1 %v5486_v47 }
 0x6d0   :  { %2019 = vmatpush1.bf16.msra.mxu0 %v5487_v10  ;;  %2060 = vmatpush1.bf16.msra.mxu1 %v5488_v36  ;;  %v5546_v10 = vld [vmem:[#allocation7_spill] sm:$0xff] }
 0x6d1   :  { %2020 = vmatprep.subr.bf16.mxu0 %v5489_v59  ;;  %2061 = vmatprep.subr.bf16.mxu1 %v5490_v32 }
 0x6d4   :  { %2021 = vmatpush1.bf16.msra.mxu0 %v5491_v8  ;;  %2062 = vmatpush1.bf16.msra.mxu1 %v5492_v48 }
 0x6d5   :  { %2022 = vmatprep.subr.bf16.mxu0 %v5493_v58  ;;  %2063 = vmatprep.subr.bf16.mxu1 %v5494_v56  ;;  %v5543_v56 = vld [vmem:[#allocation4_spill] sm:$0xff] }
 0x6d8   :  { %2023 = vmatpush1.bf16.msra.mxu0 %v5495_v15  ;;  %2064 = vmatpush1.bf16.msra.mxu1 %v5496_v46  ;;  %v5506_v15 = vld [vmem:[#allocation34_spill] sm:$0xff]  ;;  %v5507_v46 = vld [vmem:[#allocation35_spill] sm:$0xff] }
 0x6d9   :  { %2024 = vmatprep.subr.bf16.mxu0 %v5497_v61  ;;  %2065 = vmatprep.subr.bf16.mxu1 %v5498_v20  ;;  %v5508_v61 = vld [vmem:[#allocation36_spill] sm:$0xff]  ;;  %v5509_v20 = vld [vmem:[#allocation37_spill] sm:$0xff] }
 0x6dc   :  { %2025 = vmatpush1.bf16.msra.mxu0 %v5499_v24  ;;  %2066 = vmatpush1.bf16.msra.mxu1 %v5500_v19  ;;  %v5510_v24 = vld [vmem:[#allocation38_spill] sm:$0xff]  ;;  %v5511_v19 = vld [vmem:[#allocation39_spill] sm:$0xff] }
 0x6dd   :  { %2026 = vmatprep.subr.bf16.mxu0 %v5501_v62  ;;  %2067 = vmatprep.subr.bf16.mxu1 %v5502_v42  ;;  %v5512_v62 = vld [vmem:[#allocation40_spill] sm:$0xff]  ;;  %v5513_v42 = vld [vmem:[#allocation41_spill] sm:$0xff] }
 0x6e0   :  { %2027 = vmatpush1.bf16.msra.mxu0 %v5503_v54  ;;  %2068 = vmatpush1.bf16.msra.mxu1 %v5504_v55  ;;  %v5514_v54 = vld [vmem:[#allocation42_spill] sm:$0xff]  ;;  %v5515_v55 = vld [vmem:[#allocation43_spill] sm:$0xff] }
 0x6e1   :  { %2028 = vmatprep.subr.bf16.mxu0 %v5505_v25  ;;  %2069 = vmatprep.subr.bf16.mxu1 %v5506_v15  ;;  %v5516_v25 = vld [vmem:[#allocation44_spill] sm:$0xff]  ;;  %v5517_v15 = vld [vmem:[#allocation45_spill] sm:$0xff] }
 0x6e4   :  { %2029 = vmatpush1.bf16.msra.mxu0 %v5507_v46  ;;  %2070 = vmatpush1.bf16.msra.mxu1 %v5508_v61  ;;  %v5518_v46 = vld [vmem:[#allocation46_spill] sm:$0xff]  ;;  %v5519_v61 = vld [vmem:[#allocation47_spill] sm:$0xff] }
 0x6e5   :  { %2030 = vmatprep.subr.bf16.mxu0 %v5509_v20  ;;  %2071 = vmatprep.subr.bf16.mxu1 %v5510_v24  ;;  %v5520_v20 = vld [vmem:[#allocation48_spill] sm:$0xff]  ;;  %v5521_v24 = vld [vmem:[#allocation49_spill] sm:$0xff] }
 0x6e8   :  { %2031 = vmatpush2.bf16.msra.mxu0 %v5511_v19  ;;  %2072 = vmatpush2.bf16.msra.mxu1 %v5512_v62  ;;  %v5522_v19 = vld [vmem:[#allocation50_spill] sm:$0xff]  ;;  %v5523_v62 = vld [vmem:[#allocation51_spill] sm:$0xff] }
 0x6e9   :  { %2032 = vmatprep.subr.bf16.mxu0 %v5513_v42  ;;  %2073 = vmatprep.subr.bf16.mxu1 %v5514_v54  ;;  %v5524_v42 = vld [vmem:[#allocation52_spill] sm:$0xff]  ;;  %v5525_v54 = vld [vmem:[#allocation53_spill] sm:$0xff] }
 0x6ec   :  { %2033 = vmatpush2.bf16.msra.mxu0 %v5515_v55  ;;  %2074 = vmatpush2.bf16.msra.mxu1 %v5516_v25  ;;  %v5526_v55 = vld [vmem:[#allocation54_spill] sm:$0xff]  ;;  %v5527_v25 = vld [vmem:[#allocation55_spill] sm:$0xff] }
 0x6ed   :  { %2034 = vmatprep.subr.bf16.mxu0 %v5517_v15  ;;  %2075 = vmatprep.subr.bf16.mxu1 %v5518_v46  ;;  %v5528_v15 = vld [vmem:[#allocation56_spill] sm:$0xff]  ;;  %v5529_v46 = vld [vmem:[#allocation57_spill] sm:$0xff] }
 0x6f0   :  { %2035 = vmatpush2.bf16.msra.mxu0 %v5519_v61  ;;  %2076 = vmatpush2.bf16.msra.mxu1 %v5520_v20  ;;  %v5530_v61 = vld [vmem:[#allocation58_spill] sm:$0xff]  ;;  %v5531_v20 = vld [vmem:[#allocation60_spill] sm:$0xff] }
 0x6f1   :  { %2036 = vmatprep.subr.bf16.mxu0 %v5521_v24  ;;  %2077 = vmatprep.subr.bf16.mxu1 %v5522_v19  ;;  %v5532_v24 = vld [vmem:[#allocation61_spill] sm:$0xff]  ;;  %v5533_v19 = vld [vmem:[#allocation62_spill] sm:$0xff] }
 0x6f4   :  { %2037 = vmatpush2.bf16.msra.mxu0 %v5523_v62  ;;  %2078 = vmatpush2.bf16.msra.mxu1 %v5524_v42  ;;  %v5534_v62 = vld [vmem:[#allocation63_spill] sm:$0xff]  ;;  %v5535_v42 = vld [vmem:[#allocation64_spill] sm:$0xff] }
 0x6f5   :  { %2038 = vmatprep.subr.bf16.mxu0 %v5525_v54  ;;  %2079 = vmatprep.subr.bf16.mxu1 %v5526_v55  ;;  %v5536_v54 = vld [vmem:[#allocation66_spill] sm:$0xff]  ;;  %v5537_v55 = vld [vmem:[#allocation67_spill] sm:$0xff] }
 0x6f8   :  { %2039 = vmatpush2.bf16.msra.mxu0 %v5527_v25  ;;  %2080 = vmatpush2.bf16.msra.mxu1 %v5528_v15  ;;  %v5538_v25 = vld [vmem:[#allocation68_spill] sm:$0xff]  ;;  %v5539_v15 = vld [vmem:[#allocation69_spill] sm:$0xff] }
 0x6f9   :  { %2040 = vmatprep.subr.bf16.mxu0 %v5529_v46  ;;  %2081 = vmatprep.subr.bf16.mxu1 %v5530_v61  ;;  %v5540_v46 = vld [vmem:[#allocation70_spill] sm:$0xff] }
 0x6fa   :  { %v5541_v61 = vld [vmem:[#allocation2_spill] sm:$0xff] }
 0x6fc   :  { %2041 = vmatpush2.bf16.msra.mxu0 %v5531_v20  ;;  %2082 = vmatpush2.bf16.msra.mxu1 %v5532_v24  ;;  %v5542_v20 = vld [vmem:[#allocation3_spill] sm:$0xff] }
 0x6fd   :  { %2042 = vmatprep.subr.bf16.mxu0 %v5533_v19  ;;  %2083 = vmatprep.subr.bf16.mxu1 %v5534_v62 }
 0x700   :  { %2043 = vmatpush2.bf16.msra.mxu0 %v5535_v42  ;;  %2084 = vmatpush2.bf16.msra.mxu1 %v5536_v54  ;;  %v5544_v54 = vld [vmem:[#allocation5_spill] sm:$0xff] }
 0x701   :  { %2044 = vmatprep.subr.bf16.mxu0 %v5537_v55  ;;  %2085 = vmatprep.subr.bf16.mxu1 %v5538_v25 }
 0x704   :  { %2045 = vmatpush2.bf16.msra.mxu0 %v5539_v15  ;;  %2086 = vmatpush2.bf16.msra.mxu1 %v5540_v46  ;;  %v5545_v46 = vld [vmem:[#allocation6_spill] sm:$0xff] }
 0x705   :  { %2147 = vmatprep.subr.bf16.mxu0 %v5541_v61  ;;  %2188 = vmatprep.subr.bf16.mxu1 %v5542_v20 }
 0x767   :  { %v1803_v24 = vpop.f32.mrf.mxu0  ;;  %v1844_v19 = vpop.f32.mrf.mxu1 }
 0x768   :  { %v1804_v62 = vadd.f32 %v1803_v24, %v5543_v56  ;;  %v1845_v61 = vadd.f32 %v1844_v19, %v5545_v46  ;;  %v5550_v19 = vld [vmem:[#allocation89_spill] sm:$0xff] }
 0x769   :  { %v1805_v58 = vpop.f32.mrf.mxu0  ;;  %v1846_v42 = vpop.f32.mrf.mxu1 }
 0x76a   :  { %v2502_v48 = vmul.f32 -1.442695, %v1804_v62  ;;  %v1806_v8 = vadd.f32 %v1805_v58, %v5544_v54  ;;  %v2504_v36 = vmul.f32 -1.442695, %v1845_v61  ;;  %v1847_v47 = vadd.f32 %v1846_v42, %v5546_v10  ;;  %v5547_v58 = vld [vmem:[#allocation95_spill] sm:$0xff] }
 0x76b   :  { %v1807_v55 = vpop.f32.mrf.mxu0  ;;  %v1848_v32 = vpop.f32.mrf.mxu1 }
 0x76c   :  { %2757 = vpow2.f32 %v2502_v48  ;;  %v2503_v25 = vmul.f32 -1.442695, %v1806_v8  ;;  %v5548_v32 = vld [vmem:[#allocation87_spill] sm:$0xff] }
 0x76d   :  { %v1808_v15 = vpop.f32.mrf.mxu0  ;;  %v1849_v59 = vpop.f32.mrf.mxu1  ;;  %v1898_v48 = vadd.f32 %v5548_v32, %v5547_v58 }
 0x76e   :  { %2759 = vpow2.f32 %v2503_v25  ;;  %v5549_v25 = vld [vmem:[#allocation96_spill] sm:$0xff] }
 0x76f   :  { %2761 = vpow2.f32 %v2504_v36  ;;  %v1899_v61 = vadd.f32 %v5550_v19, %v5549_v25  ;;  %v5551_v19 = vld [vmem:[#allocation88_spill] sm:$0xff] }
 0x770   :  { %v1900_v25 = vadd.f32 %v5551_v19, %v3951_v2 }
 0x779   :  { %v2758_v20 = vpop.eup %2757 }
 0x77a   :  { %v1860_v60 = vadd.f32 1.0, %v2758_v20 }
 0x77b   :  { %v2760_v24 = vpop.eup %2759 }
 0x77c   :  { %2763 = vrcp.f32 %v1860_v60  ;;  %v1861_v62 = vadd.f32 1.0, %v2760_v24  ;;  %v2762_v59 = vpop.eup %2761 }
 0x77d   :  { %2765 = vtanh.f32 %v1847_v47  ;;  %v1862_v24 = vadd.f32 1.0, %v2762_v59  ;;  %v5552_v59 = vld [vmem:[#allocation90_spill] sm:$0xff] }
 0x77e   :  { %2767 = vrcp.f32 %v1861_v62 }
 0x787   :  { %v1936_v8 = vpop.f32.mrf.mxu0  ;;  %v1977_v15 = vpop.f32.mrf.mxu1 }
 0x788   :  { %v1984_v55 = vadd.f32 %v1936_v8, %v1898_v48 }
 0x789   :  { %v2764_v46 = vpop.eup %2763  ;;  %v1938_v54 = vpop.f32.mrf.mxu0 }
 0x78a   :  { %v1979_v42 = vpop.f32.mrf.mxu1  ;;  %v2766_v20 = vpop.eup %2765  ;;  %v2506_v10 = vmul.f32 -1.442695, %v1984_v55  ;;  %v1985_v36 = vadd.f32 %v1938_v54, %v1899_v61  ;;  %v1986_v54 = vadd.f32 %v1977_v15, %v1900_v25  ;;  %v1901_v55 = vadd.f32 %v5552_v59, %v3959_v28 }
 0x78b   :  { %v2768_v60 = vpop.eup %2767  ;;  %v1940_v47 = vpop.f32.mrf.mxu0  ;;  %v1871_v32 = vmul.f32 %v2766_v20, %v2764_v46 }
 0x78c   :  { %v1981_v62 = vpop.f32.mrf.mxu1  ;;  %v1870_v56 = vmul.f32 %v2768_v60, %v4576_v5  ;;  %2769 = vpow2.f32 %v2506_v10  ;;  %v2507_v58 = vmul.f32 -1.442695, %v1985_v36  ;;  %v2508_v61 = vmul.f32 -1.442695, %v1986_v54 }
 0x78d   :  { %v1941_v3 = vpop.f32.mrf.mxu0  ;;  %v1987_v5 = vadd.f32 %v1979_v42, %v1901_v55 }
 0x78e   :  { %v1982_v48 = vpop.f32.mrf.mxu1  ;;  %v4694_v8 = vadd.f32 %v1871_v32, %v1870_v56  ;;  %2771 = vpow2.f32 %v2507_v58 }
 0x78f   :  { %2773 = vrcp.f32 %v1862_v24 }
 0x790   :  { %2775 = vtanh.f32 %v4694_v8 }
 0x791   :  { %2777 = vpow2.f32 %v2508_v61  ;;  %v5592_v61 = vld [vmem:[#allocation51_spill] sm:$0xff] }
 0x792   :  { %2779 = vtanh.f32 %v1987_v5  ;;  %v5593_v5 = vld [vmem:[#allocation52_spill] sm:$0xff] }
 0x799   :  { %v2770_v46 = vpop.eup %2769 }
 0x79a   :  { %v1997_v10 = vadd.f32 1.0, %v2770_v46  ;;  %v5594_v46 = vld [vmem:[#allocation53_spill] sm:$0xff] }
 0x79b   :  { %v2772_v3 = vpop.eup %2771 }
 0x79c   :  { %v2774_v56 = vpop.eup %2773  ;;  %2781 = vrcp.f32 %v1997_v10  ;;  %v1998_v58 = vadd.f32 1.0, %v2772_v3  ;;  %v5595_v10 = vld [vmem:[#allocation54_spill] sm:$0xff]  ;;  %v5596_v3 = vld [vmem:[#allocation55_spill] sm:$0xff] }
 0x79d   :  { %v2776_v20 = vpop.eup %2775 }
 0x79e   :  { %2783 = vrcp.f32 %v1998_v58  ;;  %v1874_v36 = vmul.f32 %v2776_v20, %v2774_v56  ;;  %v2778_v15 = vpop.eup %2777  ;;  %v5597_v56 = vld [vmem:[#allocation56_spill] sm:$0xff]  ;;  %v5598_v58 = vld [vmem:[#allocation57_spill] sm:$0xff]  ;;  %v5599_v20 = vld [vmem:[#allocation58_spill] sm:$0xff] }
 0x79f   :  { %v2780_v25 = vpop.eup %2779  ;;  %v1999_v42 = vadd.f32 1.0, %v2778_v15  ;;  %v5602_v15 = vld [vmem:[#allocation62_spill] sm:$0xff] }
 0x7a0   :  { %v2013_v60 = vpack.c.bf16 %v1874_v36, %v1874_v36  ;;  %v5600_v36 = vld [vmem:[#allocation60_spill] sm:$0xff] }
 0x7a1   :  { %2785 = vrcp.f32 %v1999_v42  ;;  %v5607_v42 = vld [vmem:[#allocation68_spill] sm:$0xff] }
 0x7a2   :  { %2046 = vmatprep.mubr.bf16.mxu0 %v2013_v60  ;;  %2087 = vmatprep.mubr.bf16.mxu1 %v2013_v60  ;;  %v5601_v60 = vld [vmem:[#allocation61_spill] sm:$0xff] }
 0x7a9   :  { %v2782_v24 = vpop.eup %2781 }
 0x7aa   :  { %v2008_v47 = vmul.f32 %v2782_v24, %v2780_v25  ;;  %v5603_v25 = vld [vmem:[#allocation63_spill] sm:$0xff]  ;;  %v5604_v24 = vld [vmem:[#allocation64_spill] sm:$0xff] }
 0x7ab   :  { %v2784_v62 = vpop.eup %2783 }
 0x7ac   :  { %v2007_v32 = vmul.f32 %v2784_v62, %v4584_v30  ;;  %v5591_v30 = vld [vmem:[#allocation50_spill] sm:$0xff]  ;;  %v5606_v62 = vld [vmem:[#allocation67_spill] sm:$0xff] }
 0x7ae   :  { %v4702_v48 = vadd.f32 %v2008_v47, %v2007_v32  ;;  %v2786_v19 = vpop.eup %2785  ;;  %v5605_v47 = vld [vmem:[#allocation66_spill] sm:$0xff]  ;;  %v5608_v32 = vld [vmem:[#allocation69_spill] sm:$0xff] }
 0x7b0   :  { %2787 = vtanh.f32 %v4702_v48 }
 0x7bd   :  { %v2788_v54 = vpop.eup %2787 }
 0x7be   :  { %v2011_v59 = vmul.f32 %v2788_v54, %v2786_v19  ;;  %v5609_v19 = vld [vmem:[#allocation70_spill] sm:$0xff] }
 0x7c0   :  { %v2012_v55 = vpack.c.bf16 %v2011_v59, %v2011_v59 }
 0x7c2   :  { %2047 = vmatmul.mubr.bf16.vlgmr.msra.gmra.mxu0 %v2012_v55  ;;  %2088 = vmatmul.mubr.bf16.vlgmr.msra.gmra.mxu1 %v2012_v55 }
 0x7c3   :  { %2148 = vmatpush1.bf16.msra.mxu0 %v2912_v9  ;;  %2189 = vmatpush1.bf16.msra.mxu1 %v2924_v13  ;;  %v5553_v9 = vld [vmem:[#allocation12_spill] sm:$0xff]  ;;  %v5554_v13 = vld [vmem:[#allocation13_spill] sm:$0xff] }
 0x7c4   :  { %2149 = vmatprep.subr.bf16.mxu0 %v2937_v17  ;;  %2190 = vmatprep.subr.bf16.mxu1 %v2939_v18  ;;  %v5555_v17 = vld [vmem:[#allocation14_spill] sm:$0xff]  ;;  %v5556_v18 = vld [vmem:[#allocation15_spill] sm:$0xff] }
 0x7c5   :  { %2179 = vmatprep.mubr.bf16.mxu0 %v5132_v33  ;;  %2220 = vmatprep.mubr.bf16.mxu1 %v5132_v33  ;;  %v5582_v33 = vld [vmem:[#allocation41_spill] sm:$0xff] }
 0x7c7   :  { %2150 = vmatpush1.bf16.msra.mxu0 %v2951_v22  ;;  %2191 = vmatpush1.bf16.msra.mxu1 %v2964_v26  ;;  %v5557_v22 = vld [vmem:[#allocation16_spill] sm:$0xff]  ;;  %v5558_v26 = vld [vmem:[#allocation17_spill] sm:$0xff] }
 0x7c8   :  { %2151 = vmatprep.subr.bf16.mxu0 %v2966_v27  ;;  %2192 = vmatprep.subr.bf16.mxu1 %v2977_v31  ;;  %v5559_v27 = vld [vmem:[#allocation18_spill] sm:$0xff]  ;;  %v5560_v31 = vld [vmem:[#allocation19_spill] sm:$0xff] }
 0x7cb   :  { %2152 = vmatpush1.bf16.msra.mxu0 %v2989_v35  ;;  %2193 = vmatpush1.bf16.msra.mxu1 %v3002_v39  ;;  %v5561_v35 = vld [vmem:[#allocation20_spill] sm:$0xff]  ;;  %v5562_v39 = vld [vmem:[#allocation21_spill] sm:$0xff] }
 0x7cc   :  { %2153 = vmatprep.subr.bf16.mxu0 %v3004_v40  ;;  %2194 = vmatprep.subr.bf16.mxu1 %v3016_v44  ;;  %v5563_v40 = vld [vmem:[#allocation22_spill] sm:$0xff]  ;;  %v5564_v44 = vld [vmem:[#allocation23_spill] sm:$0xff] }
 0x7cf   :  { %2154 = vmatpush1.bf16.msra.mxu0 %v3037_v51  ;;  %2195 = vmatpush1.bf16.msra.mxu1 %v3041_v52  ;;  %v5565_v51 = vld [vmem:[#allocation24_spill] sm:$0xff]  ;;  %v5566_v52 = vld [vmem:[#allocation25_spill] sm:$0xff] }
 0x7d0   :  { %2155 = vmatprep.subr.bf16.mxu0 %v3043_v53  ;;  %2196 = vmatprep.subr.bf16.mxu1 %v3055_v57  ;;  %v5567_v53 = vld [vmem:[#allocation26_spill] sm:$0xff]  ;;  %v5568_v57 = vld [vmem:[#allocation27_spill] sm:$0xff] }
 0x7d3   :  { %2156 = vmatpush1.bf16.msra.mxu0 %v3073_v63  ;;  %2197 = vmatpush1.bf16.msra.mxu1 %v3077_v0  ;;  %v5569_v63 = vld [vmem:[#allocation28_spill] sm:$0xff]  ;;  %v5570_v0 = vld [vmem:[#allocation29_spill] sm:$0xff] }
 0x7d4   :  { %2157 = vmatprep.subr.bf16.mxu0 %v3079_v1  ;;  %2198 = vmatprep.subr.bf16.mxu1 %v3091_v7  ;;  %v5571_v1 = vld [vmem:[#allocation30_spill] sm:$0xff]  ;;  %v5572_v7 = vld [vmem:[#allocation31_spill] sm:$0xff] }
 0x7d7   :  { %2158 = vmatpush1.bf16.msra.mxu0 %v3109_v16  ;;  %2199 = vmatpush1.bf16.msra.mxu1 %v3119_v21  ;;  %v5573_v16 = vld [vmem:[#allocation32_spill] sm:$0xff]  ;;  %v5574_v21 = vld [vmem:[#allocation33_spill] sm:$0xff] }
 0x7d8   :  { %2159 = vmatprep.subr.bf16.mxu0 %v3121_v23  ;;  %2200 = vmatprep.subr.bf16.mxu1 %v3133_v29  ;;  %v5575_v23 = vld [vmem:[#allocation34_spill] sm:$0xff]  ;;  %v5576_v29 = vld [vmem:[#allocation35_spill] sm:$0xff] }
 0x7db   :  { %2160 = vmatpush1.bf16.msra.mxu0 %v3151_v37  ;;  %2201 = vmatpush1.bf16.msra.mxu1 %v3155_v38  ;;  %v5577_v37 = vld [vmem:[#allocation36_spill] sm:$0xff]  ;;  %v5578_v38 = vld [vmem:[#allocation37_spill] sm:$0xff] }
 0x7dc   :  { %2161 = vmatprep.subr.bf16.mxu0 %v3157_v41  ;;  %2202 = vmatprep.subr.bf16.mxu1 %v3166_v45  ;;  %v5579_v41 = vld [vmem:[#allocation38_spill] sm:$0xff]  ;;  %v5580_v45 = vld [vmem:[#allocation39_spill] sm:$0xff] }
 0x7df   :  { %2162 = vmatpush1.bf16.msra.mxu0 %v3175_v49  ;;  %2203 = vmatpush1.bf16.msra.mxu1 %v5133_v50  ;;  %v5581_v49 = vld [vmem:[#allocation40_spill] sm:$0xff]  ;;  %v5583_v50 = vld [vmem:[#allocation42_spill] sm:$0xff] }
 0x7e0   :  { %2259 = vmatprep.subr.bf16.mxu0 %v5134_v12  ;;  %2300 = vmatprep.subr.bf16.mxu1 %v5135_v4  ;;  %v5584_v12 = vld [vmem:[#allocation43_spill] sm:$0xff]  ;;  %v5585_v4 = vld [vmem:[#allocation44_spill] sm:$0xff] }
 0x7e2   :  { %2180 = vmatmul.mubr.bf16.vlgmr.msra.gmra.mxu0 %v2012_v55  ;;  %2221 = vmatmul.mubr.bf16.vlgmr.msra.gmra.mxu1 %v2012_v55  ;;  %v5610_v55 = vld [vmem:[#allocation4_spill] sm:$0xff] }
 0x7e3   :  { %2260 = vmatpush1.bf16.msra.mxu0 %v5136_v14  ;;  %2301 = vmatpush1.bf16.msra.mxu1 %v5206_v34  ;;  %v5586_v14 = vld [vmem:[#allocation45_spill] sm:$0xff]  ;;  %v5587_v34 = vld [vmem:[#allocation46_spill] sm:$0xff] }
 0x7e4   :  { %2261 = vmatprep.subr.bf16.mxu0 %v5207_v6  ;;  %2302 = vmatprep.subr.bf16.mxu1 %v5208_v43  ;;  %v5588_v6 = vld [vmem:[#allocation47_spill] sm:$0xff]  ;;  %v5589_v43 = vld [vmem:[#allocation48_spill] sm:$0xff] }
 0x7e7   :  { %2262 = vmatpush1.bf16.msra.mxu0 %v5209_v11  ;;  %2303 = vmatpush1.bf16.msra.mxu1 %v5553_v9  ;;  %v5590_v11 = vld [vmem:[#allocation49_spill] sm:$0xff] }
 0x7e8   :  { %2263 = vmatprep.subr.bf16.mxu0 %v5554_v13  ;;  %2304 = vmatprep.subr.bf16.mxu1 %v5555_v17 }
 0x7eb   :  { %2264 = vmatpush1.bf16.msra.mxu0 %v5556_v18  ;;  %2305 = vmatpush1.bf16.msra.mxu1 %v5557_v22  ;;  %v5611_v22 = vld [vmem:[#allocation5_spill] sm:$0xff] }
 0x7ec   :  { %2265 = vmatprep.subr.bf16.mxu0 %v5558_v26  ;;  %2306 = vmatprep.subr.bf16.mxu1 %v5559_v27 }
 0x7ef   :  { %2266 = vmatpush1.bf16.msra.mxu0 %v5560_v31  ;;  %2307 = vmatpush1.bf16.msra.mxu1 %v5561_v35 }
 0x7f0   :  { %2267 = vmatprep.subr.bf16.mxu0 %v5562_v39  ;;  %2308 = vmatprep.subr.bf16.mxu1 %v5563_v40 }
 0x7f3   :  { %2268 = vmatpush1.bf16.msra.mxu0 %v5564_v44  ;;  %2309 = vmatpush1.bf16.msra.mxu1 %v5565_v51  ;;  %v5612_v44 = vld [vmem:[#allocation6_spill] sm:$0xff] }
 0x7f4   :  { %2269 = vmatprep.subr.bf16.mxu0 %v5566_v52  ;;  %2310 = vmatprep.subr.bf16.mxu1 %v5567_v53 }
 0x7f7   :  { %2270 = vmatpush1.bf16.msra.mxu0 %v5568_v57  ;;  %2311 = vmatpush1.bf16.msra.mxu1 %v5569_v63  ;;  %v5613_v57 = vld [vmem:[#allocation7_spill] sm:$0xff] }
 0x7f8   :  { %2271 = vmatprep.subr.bf16.mxu0 %v5570_v0  ;;  %2312 = vmatprep.subr.bf16.mxu1 %v5571_v1 }
 0x7fb   :  { %2272 = vmatpush1.bf16.msra.mxu0 %v5572_v7  ;;  %2313 = vmatpush1.bf16.msra.mxu1 %v5573_v16  ;;  %v5614_v16 = vld [vmem:[#allocation95_spill] sm:$0xff] }
 0x7fc   :  { %2273 = vmatprep.subr.bf16.mxu0 %v5574_v21  ;;  %2314 = vmatprep.subr.bf16.mxu1 %v5575_v23  ;;  %v5615_v21 = vld [vmem:[#allocation91_spill] sm:$0xff] }
 0x7fd   :  { %v2143_v23 = vadd.f32 %v5615_v21, %v5614_v16  ;;  %v2374_v16 = vld [vmem:[%s4883_s6 + $0x48] sm:$0xff]  ;;  %v2373_v21 = vld [vmem:[%s4883_s6 + $0x40] sm:$0xff] }
 0x7ff   :  { %2274 = vmatpush1.bf16.msra.mxu0 %v5576_v29  ;;  %2315 = vmatpush1.bf16.msra.mxu1 %v5577_v37 }
 0x800   :  { %2275 = vmatprep.subr.bf16.mxu0 %v5578_v38  ;;  %2316 = vmatprep.subr.bf16.mxu1 %v5579_v41 }
 0x803   :  { %2276 = vmatpush2.bf16.msra.mxu0 %v5580_v45  ;;  %2317 = vmatpush2.bf16.msra.mxu1 %v5581_v49  ;;  %v5616_v45 = vld [vmem:[#allocation96_spill] sm:$0xff]  ;;  %v5617_v49 = vld [vmem:[#allocation93_spill] sm:$0xff] }
 0x804   :  { %2277 = vmatprep.subr.bf16.mxu0 %v5582_v33  ;;  %2318 = vmatprep.subr.bf16.mxu1 %v5583_v50  ;;  %v2144_v33 = vadd.f32 %v5617_v49, %v5616_v45  ;;  %v2367_v45 = vld [vmem:[%s4883_s6 + $0x10] sm:$0xff]  ;;  %v2366_v49 = vld [vmem:[%s4883_s6 + $0x8] sm:$0xff] }
 0x807   :  { %2278 = vmatpush2.bf16.msra.mxu0 %v5584_v12  ;;  %2319 = vmatpush2.bf16.msra.mxu1 %v5585_v4 }
 0x808   :  { %2279 = vmatprep.subr.bf16.mxu0 %v5586_v14  ;;  %2320 = vmatprep.subr.bf16.mxu1 %v5587_v34 }
 0x80b   :  { %2280 = vmatpush2.bf16.msra.mxu0 %v5588_v6  ;;  %2321 = vmatpush2.bf16.msra.mxu1 %v5589_v43 }
 0x80c   :  { %2281 = vmatprep.subr.bf16.mxu0 %v5590_v11  ;;  %2322 = vmatprep.subr.bf16.mxu1 %v5591_v30 }
 0x80f   :  { %2282 = vmatpush2.bf16.msra.mxu0 %v5592_v61  ;;  %2323 = vmatpush2.bf16.msra.mxu1 %v5593_v5 }
 0x810   :  { %2283 = vmatprep.subr.bf16.mxu0 %v5594_v46  ;;  %2324 = vmatprep.subr.bf16.mxu1 %v5595_v10 }
 0x813   :  { %2284 = vmatpush2.bf16.msra.mxu0 %v5596_v3  ;;  %2325 = vmatpush2.bf16.msra.mxu1 %v5597_v56 }
 0x814   :  { %2285 = vmatprep.subr.bf16.mxu0 %v5598_v58  ;;  %2326 = vmatprep.subr.bf16.mxu1 %v5599_v20  ;;  %v5618_v20 = vld [vmem:[#allocation92_spill] sm:$0xff] }
 0x817   :  { %2286 = vmatpush2.bf16.msra.mxu0 %v5600_v36  ;;  %2327 = vmatpush2.bf16.msra.mxu1 %v5601_v60  ;;  %v2145_v36 = vadd.f32 %v5618_v20, %v3951_v2 }
 0x818   :  { %2287 = vmatprep.subr.bf16.mxu0 %v5602_v15  ;;  %2328 = vmatprep.subr.bf16.mxu1 %v5603_v25  ;;  %v5619_v15 = vld [vmem:[#allocation94_spill] sm:$0xff] }
 0x819   :  { %v2146_v25 = vadd.f32 %v5619_v15, %v3959_v28 }
 0x81b   :  { %2288 = vmatpush2.bf16.msra.mxu0 %v5604_v24  ;;  %2329 = vmatpush2.bf16.msra.mxu1 %v5605_v47 }
 0x81c   :  { %2289 = vmatprep.subr.bf16.mxu0 %v5606_v62  ;;  %2330 = vmatprep.subr.bf16.mxu1 %v5607_v42 }
 0x81f   :  { %2290 = vmatpush2.bf16.msra.mxu0 %v5608_v32  ;;  %2331 = vmatpush2.bf16.msra.mxu1 %v5609_v19 }
 0x882   :  { %v2048_v54 = vpop.f32.mrf.mxu0  ;;  %v2089_v59 = vpop.f32.mrf.mxu1 }
 0x883   :  { %v2049_v9 = vadd.f32 %v2048_v54, %v5610_v55  ;;  %v2090_v51 = vadd.f32 %v2089_v59, %v5612_v44 }
 0x884   :  { %v2050_v13 = vpop.f32.mrf.mxu0  ;;  %v2091_v17 = vpop.f32.mrf.mxu1 }
 0x885   :  { %v2509_v18 = vmul.f32 -1.442695, %v2049_v9  ;;  %v2051_v26 = vadd.f32 %v2050_v13, %v5611_v22  ;;  %v2511_v52 = vmul.f32 -1.442695, %v2090_v51  ;;  %v2092_v63 = vadd.f32 %v2091_v17, %v5613_v57 }
 0x886   :  { %v2052_v27 = vpop.f32.mrf.mxu0  ;;  %v2093_v31 = vpop.f32.mrf.mxu1 }
 0x887   :  { %2789 = vpow2.f32 %v2509_v18  ;;  %v2510_v35 = vmul.f32 -1.442695, %v2051_v26 }
 0x888   :  { %v2053_v39 = vpop.f32.mrf.mxu0  ;;  %v2094_v40 = vpop.f32.mrf.mxu1 }
 0x889   :  { %2791 = vpow2.f32 %v2510_v35 }
 0x88a   :  { %2793 = vpow2.f32 %v2511_v52  ;;  %v2839_v52 = vmov 0.0  }
 0x88b   :  { %2537 = vmatprep.subr.mxu0 %v2839_v52 }
 0x894   :  { %v2790_v53 = vpop.eup %2789 }
 0x895   :  { %v2105_v0 = vadd.f32 1.0, %v2790_v53  ;;  %v2380_v53 = vld [vmem:[%s4883_s6 + $0x78] sm:$0xff] }
 0x896   :  { %v2792_v1 = vpop.eup %2791 }
 0x897   :  { %2795 = vrcp.f32 %v2105_v0  ;;  %v2106_v7 = vadd.f32 1.0, %v2792_v1  ;;  %v2794_v38 = vpop.eup %2793  ;;  %v2377_v0 = vld [vmem:[%s4883_s6 + $0x60] sm:$0xff]  ;;  %v2376_v1 = vld [vmem:[%s4883_s6 + $0x58] sm:$0xff] }
 0x898   :  { %2797 = vtanh.f32 %v2092_v63  ;;  %v2107_v11 = vadd.f32 1.0, %v2794_v38  ;;  %v2378_v63 = vld [vmem:[%s4883_s6 + $0x68] sm:$0xff]  ;;  %v2369_v38 = vld [vmem:[%s4883_s6 + $0x20] sm:$0xff] }
 0x899   :  { %2799 = vrcp.f32 %v2106_v7  ;;  %v2375_v7 = vld [vmem:[%s4883_s6 + $0x50] sm:$0xff] }
 0x8a2   :  { %v2181_v29 = vpop.f32.mrf.mxu0  ;;  %v2222_v37 = vpop.f32.mrf.mxu1 }
 0x8a3   :  { %v2229_v41 = vadd.f32 %v2181_v29, %v2143_v23  ;;  %v2231_v60 = vadd.f32 %v2222_v37, %v2145_v36  ;;  %v2372_v23 = vld [vmem:[%s4883_s6 + $0x38] sm:$0xff]  ;;  %v2371_v29 = vld [vmem:[%s4883_s6 + $0x30] sm:$0xff]  ;;  %v2370_v37 = vld [vmem:[%s4883_s6 + $0x28] sm:$0xff] }
 0x8a4   :  { %v2796_v50 = vpop.eup %2795  ;;  %v2183_v12 = vpop.f32.mrf.mxu0 }
 0x8a5   :  { %v2224_v4 = vpop.f32.mrf.mxu1  ;;  %v2798_v14 = vpop.eup %2797  ;;  %v2513_v34 = vmul.f32 -1.442695, %v2229_v41  ;;  %v2230_v6 = vadd.f32 %v2183_v12, %v2144_v33  ;;  %v2515_v24 = vmul.f32 -1.442695, %v2231_v60  ;;  %v2368_v41 = vld [vmem:[%s4883_s6 + $0x18] sm:$0xff]  ;;  %v2365_v33 = vld [vmem:[%s4883_s6] sm:$0xff] }
 0x8a6   :  { %v2800_v43 = vpop.eup %2799  ;;  %v2185_v30 = vpop.f32.mrf.mxu0  ;;  %v2116_v46 = vmul.f32 %v2798_v14, %v2796_v50 }
 0x8a7   :  { %v2226_v61 = vpop.f32.mrf.mxu1  ;;  %v2115_v5 = vmul.f32 %v2800_v43, %v4694_v8  ;;  %2801 = vpow2.f32 %v2513_v34  ;;  %v2514_v10 = vmul.f32 -1.442695, %v2230_v6  ;;  %v2232_v8 = vadd.f32 %v2224_v4, %v2146_v25 }
 0x8a8   :  { %v2186_v3 = vpop.f32.mrf.mxu0 }
 0x8a9   :  { %v2227_v56 = vpop.f32.mrf.mxu1  ;;  %v4810_v58 = vadd.f32 %v2116_v46, %v2115_v5  ;;  %2803 = vpow2.f32 %v2514_v10 }
 0x8aa   :  { %2805 = vrcp.f32 %v2107_v11 }
 0x8ab   :  { %2807 = vtanh.f32 %v4810_v58 }
 0x8ac   :  { %2809 = vpow2.f32 %v2515_v24 }
 0x8ad   :  { %2811 = vtanh.f32 %v2232_v8 }
 0x8b4   :  { %v2802_v47 = vpop.eup %2801 }
 0x8b5   :  { %v2242_v62 = vadd.f32 1.0, %v2802_v47 }
 0x8b6   :  { %v2804_v42 = vpop.eup %2803 }
 0x8b7   :  { %v2806_v32 = vpop.eup %2805  ;;  %2813 = vrcp.f32 %v2242_v62  ;;  %v2243_v19 = vadd.f32 1.0, %v2804_v42 }
 0x8b8   :  { %v2808_v54 = vpop.eup %2807 }
 0x8b9   :  { %2815 = vrcp.f32 %v2243_v19  ;;  %v2119_v59 = vmul.f32 %v2808_v54, %v2806_v32  ;;  %v2810_v9 = vpop.eup %2809  ;;  %v2519_v19 = vld [vmem:[%s4884_s7] ss:$0 sm:$0xff] }
 0x8ba   :  { %v2812_v13 = vpop.eup %2811  ;;  %v2244_v26 = vadd.f32 1.0, %v2810_v9 }
 0x8bb   :  { %v2258_v2 = vpack.c.bf16 %v2119_v59, %v2119_v59 }
 0x8bc   :  { %2817 = vrcp.f32 %v2244_v26 }
 0x8bd   :  { %2291 = vmatprep.mubr.bf16.mxu0 %v2258_v2  ;;  %2332 = vmatprep.mubr.bf16.mxu1 %v2258_v2 }
 0x8c4   :  { %v2814_v17 = vpop.eup %2813 }
 0x8c5   :  { %v2253_v28 = vmul.f32 %v2814_v17, %v2812_v13 }
 0x8c6   :  { %v2816_v18 = vpop.eup %2815 }
 0x8c7   :  { %v2252_v27 = vmul.f32 %v2816_v18, %v4702_v48  ;;  %v2379_v48 = vld [vmem:[%s4883_s6 + $0x70] sm:$0xff] }
 0x8c9   :  { %v2254_v31 = vadd.f32 %v2253_v28, %v2252_v27  ;;  %v2818_v35 = vpop.eup %2817 }
 0x8cb   :  { %2819 = vtanh.f32 %v2254_v31 }
 0x8d8   :  { %v2820_v39 = vpop.eup %2819 }
 0x8d9   :  { %v2256_v40 = vmul.f32 %v2820_v39, %v2818_v35 }
 0x8db   :  { %v2257_v51 = vpack.c.bf16 %v2256_v40, %v2256_v40 }
 0x8dd   :  { %2292 = vmatmul.mubr.bf16.vlgmr.msra.gmra.mxu0 %v2257_v51  ;;  %2333 = vmatmul.mubr.bf16.vlgmr.msra.gmra.mxu1 %v2257_v51 }
 0x8de   :  { %2538 = vmatpush3.msra.mxu0 %v2380_v53  ;;  %2569 = vmatprep.mubr.msk.f32.mxu0 %vm2840_vm0, %v2839_v52 }
 0x8df   :  { %2539 = vmatprep.subr.mxu0 %v2839_v52 }
 0x8e0   :  { %2540 = vmatpush3.msra.mxu0 %v2379_v48 }
 0x8e1   :  { %2541 = vmatprep.subr.mxu0 %v2839_v52 }
 0x8e2   :  { %2542 = vmatpush3.msra.mxu0 %v2378_v63 }
 0x8e3   :  { %2543 = vmatprep.subr.mxu0 %v2839_v52 }
 0x8e4   :  { %2544 = vmatpush3.msra.mxu0 %v2377_v0 }
 0x8e5   :  { %2545 = vmatprep.subr.mxu0 %v2839_v52 }
 0x8e6   :  { %2546 = vmatpush3.msra.mxu0 %v2376_v1 }
 0x8e7   :  { %2547 = vmatprep.subr.mxu0 %v2839_v52 }
 0x8e8   :  { %2548 = vmatpush3.msra.mxu0 %v2375_v7 }
 0x8e9   :  { %2549 = vmatprep.subr.mxu0 %v2839_v52 }
 0x8ea   :  { %2550 = vmatpush3.msra.mxu0 %v2374_v16 }
 0x8eb   :  { %2551 = vmatprep.subr.mxu0 %v2839_v52 }
 0x8ec   :  { %2552 = vmatpush3.msra.mxu0 %v2373_v21 }
 0x8ed   :  { %2553 = vmatprep.subr.mxu0 %v2839_v52 }
 0x8ee   :  { %2554 = vmatpush3.msra.mxu0 %v2372_v23 }
 0x8ef   :  { %2555 = vmatprep.subr.mxu0 %v2839_v52 }
 0x8f0   :  { %2556 = vmatpush3.msra.mxu0 %v2371_v29 }
 0x8f1   :  { %2557 = vmatprep.subr.mxu0 %v2839_v52 }
 0x8f2   :  { %2558 = vmatpush3.msra.mxu0 %v2370_v37 }
 0x8f3   :  { %2559 = vmatprep.subr.mxu0 %v2839_v52 }
 0x8f4   :  { %2560 = vmatpush3.msra.mxu0 %v2369_v38 }
 0x8f5   :  { %2561 = vmatprep.subr.mxu0 %v2839_v52 }
 0x8f6   :  { %2562 = vmatpush3.msra.mxu0 %v2368_v41 }
 0x8f7   :  { %2563 = vmatprep.subr.mxu0 %v2839_v52 }
 0x8f8   :  { %2564 = vmatpush3.msra.mxu0 %v2367_v45 }
 0x8f9   :  { %2565 = vmatprep.subr.mxu0 %v2839_v52 }
 0x8fa   :  { %2566 = vmatpush3.msra.mxu0 %v2366_v49 }
 0x8fb   :  { %2567 = vmatprep.subr.mxu0 %v2839_v52 }
 0x8fc   :  { %2568 = vmatpush3.msra.mxu0 %v2365_v33 }
 0x99d   :  { %v2293_v50 = vpop.f32.mrf.mxu0  ;;  %v2334_v12 = vpop.f32.mrf.mxu1 }
 0x99e   :  { %v2294_v4 = vadd.f32 %v2293_v50, %v5610_v55  ;;  %v2335_v10 = vadd.f32 %v2334_v12, %v5612_v44 }
 0x99f   :  { %v2295_v14 = vpop.f32.mrf.mxu0  ;;  %v2336_v34 = vpop.f32.mrf.mxu1 }
 0x9a0   :  { %v2516_v6 = vmul.f32 -1.442695, %v2294_v4  ;;  %v2296_v43 = vadd.f32 %v2295_v14, %v5611_v22  ;;  %v2518_v3 = vmul.f32 -1.442695, %v2335_v10  ;;  %v2337_v20 = vadd.f32 %v2336_v34, %v5613_v57 }
 0x9a1   :  { %v2297_v11 = vpop.f32.mrf.mxu0  ;;  %v2338_v30 = vpop.f32.mrf.mxu1 }
 0x9a2   :  { %2821 = vpow2.f32 %v2516_v6  ;;  %v2517_v61 = vmul.f32 -1.442695, %v2296_v43 }
 0x9a3   :  { %v2298_v5 = vpop.f32.mrf.mxu0  ;;  %v2339_v46 = vpop.f32.mrf.mxu1 }
 0x9a4   :  { %2823 = vpow2.f32 %v2517_v61 }
 0x9a5   :  { %2825 = vpow2.f32 %v2518_v3 }
 0x9af   :  { %v2822_v56 = vpop.eup %2821 }
 0x9b0   :  { %v2350_v36 = vadd.f32 1.0, %v2822_v56 }
 0x9b1   :  { %v2824_v55 = vpop.eup %2823 }
 0x9b2   :  { %2827 = vrcp.f32 %v2350_v36  ;;  %v2351_v60 = vadd.f32 1.0, %v2824_v55  ;;  %v2826_v22 = vpop.eup %2825 }
 0x9b3   :  { %2829 = vtanh.f32 %v2337_v20  ;;  %v2352_v8 = vadd.f32 1.0, %v2826_v22 }
 0x9b4   :  { %2831 = vrcp.f32 %v2351_v60 }
 0x9b5   :  { %2833 = vrcp.f32 %v2352_v8 }
 0x9bf   :  { %v2828_v15 = vpop.eup %2827 }
 0x9c0   :  { %v2830_v25 = vpop.eup %2829 }
 0x9c1   :  { %v2832_v24 = vpop.eup %2831  ;;  %v2361_v62 = vmul.f32 %v2830_v25, %v2828_v15 }
 0x9c2   :  { %v2360_v47 = vmul.f32 %v2832_v24, %v4810_v58  ;;  %v2834_v42 = vpop.eup %2833 }
 0x9c4   :  { %v2362_v44 = vadd.f32 %v2361_v62, %v2360_v47 }
 0x9c6   :  { %2835 = vtanh.f32 %v2362_v44 }
 0x9d3   :  { %v2836_v57 = vpop.eup %2835 }
 0x9d4   :  { %v2364_v32 = vmul.f32 %v2836_v57, %v2834_v42 }
 0x9d6   :  { %2570 = vmatmul.mubr.f32.vlgmr.msra.gmra.mxu0 %v2364_v32 }
 0xa96   :  { %v2454_v54 = vpop.f32.mrf.mxu0 }
 0xa97   :  { %v2455_v59 = vadd.f32 %v2519_v19, %v2454_v54 }
 0xa98   :  { %v2571_v2 = vpop.f32.mrf.mxu0 }
 0xa99   :  { %2458 = vst [vmem:[%s4885_s8] sm:$0xff] %v2455_v59 }

</bundles_post_ra>
